<compile_context>
chip_gen: v6e
topology: v6e:2x2x1
jax: 0.10.0
libtpu: 0.0.40
codegen_flags: <defaults>
</compile_context>

<pallas_src>
import jax
import jax.numpy as jnp
from jax import lax
from jax.experimental import pallas as pl
from jax.experimental.pallas import tpu as pltpu


LANES = 128


def _round_up(x, m):
    return (x + m - 1) // m * m


def _cdiv(a, b):
    return -(-a // b)


# ---------------- cheap JAX glue: weight fold & input rearrangement ----------

def _fold_conv_weights(w, bn_scale, czp, coutp):
    """5x5/s2 conv weight (+ folded eval-BN scale) -> tap-concatenated matrix.

    With z = 2x2 space-to-depth of the pad-2 input (channel order (pi,pj,ci)):
      out[r, :] = concat_{t=ai*3+aj} z[r + ai*wz + aj, :]  @  W,
    where W has shape (9*czp, coutp).  Zero-padded on both dims.
    """
    kh, kw, cin, cout = w.shape
    wf = w * bn_scale[None, None, None, :]                  # fold eval-BN scale
    w2 = jnp.zeros((3, 3, 2, 2, cin, cout), w.dtype)
    for ki in range(kh):
        for kj in range(kw):
            w2 = w2.at[ki // 2, kj // 2, ki % 2, kj % 2].set(wf[ki, kj])
    w2 = w2.reshape(9, 4 * cin, cout)
    w2 = jnp.pad(w2, ((0, 0), (0, czp - 4 * cin), (0, coutp - cout)))
    return w2.reshape(9 * czp, coutp)


def _space_to_depth_flat(x, czp, rpad):
    """(B,H,W,C) -> pad 2, 2x2 space-to-depth, flatten rows -> (B, rpad, czp)."""
    b, h, w, c = x.shape
    hz, wz = h // 2 + 2, w // 2 + 2
    xp = jnp.pad(x, ((0, 0), (2, 2), (2, 2), (0, 0)))
    z = xp.reshape(b, hz, 2, wz, 2, c).transpose(0, 1, 3, 2, 4, 5)
    z = z.reshape(b, hz * wz, 4 * c)
    return jnp.pad(z, ((0, 0), (0, rpad - hz * wz), (0, czp - 4 * c)))


# ------------------------------ Pallas kernels --------------------------------

def _make_conv_kernel(offsets, czp, tm, n_tiles):
    """Conv(5x5,s2,p2) + folded BN + ReLU for one row tile of one image."""

    def kernel(z_ref, w_ref, b_ref, o_ref, patch_ref):
        if n_tiles == 1:
            row_base = 0                                     # fully static slices
        else:
            row_base = pl.multiple_of(pl.program_id(1) * tm, 8)
        # In-VMEM im2col: 9 shifted sublane slices side by side along lanes,
        # then a single wide-K matmul (MXU accumulates internally in f32).
        for t, off in enumerate(offsets):                    # static unroll (9)
            patch_ref[:, t * czp:(t + 1) * czp] = (
                z_ref[0, pl.ds(row_base + off, tm), :])
        y = jnp.dot(patch_ref[...], w_ref[...],
                    preferred_element_type=jnp.float32)
        o_ref[0] = jnp.maximum(y + b_ref[...], 0.0).astype(o_ref.dtype)

    return kernel


def _make_conv_head_kernel(offsets, czp, tm, n_tiles):
    """Last conv block fused with global max-pool + fc + log_softmax."""

    def kernel(mask_ref, z_ref, w_ref, b_ref, fcw_ref, fcb_ref, o_ref,
               patch_ref, mx_ref):
        t = pl.program_id(1)
        if n_tiles == 1:
            row_base = 0
        else:
            row_base = pl.multiple_of(t * tm, 8)
        for ti, off in enumerate(offsets):                   # static unroll (9)
            patch_ref[:, ti * czp:(ti + 1) * czp] = (
                z_ref[0, pl.ds(row_base + off, tm), :])
        y = jnp.dot(patch_ref[...], w_ref[...],
                    preferred_element_type=jnp.float32)
        # Precomputed additive row mask (0 on valid rows, -1e30 on wrap/pad
        # rows) -- no iota/modulo over the full tile.
        y = jnp.maximum(y + b_ref[...], 0.0) + mask_ref[...]

        @pl.when(t == 0)
        def _():
            mx_ref[...] = jnp.full_like(mx_ref, -1e30)

        mx_ref[...] = jnp.maximum(mx_ref[...],
                                  jnp.max(y, axis=0, keepdims=True))

        @pl.when(t == pl.num_programs(1) - 1)
        def _():
            # Padded output channels are exactly 0 after ReLU (zero weights,
            # zero bias) and have zero fc-weight rows -> no effect on logits.
            logits = jnp.dot(mx_ref[...], fcw_ref[...],
                             preferred_element_type=jnp.float32) + fcb_ref[...]
            m = jnp.max(logits, axis=-1, keepdims=True)
            zc = logits - m
            lse = jnp.log(jnp.sum(jnp.exp(zc), axis=-1, keepdims=True))
            o_ref[0] = zc - lse                              # log_softmax

    return kernel


# ------------------------------ layer wrappers --------------------------------

def conv_block(x, w, bn_scale, bn_bias, head=None):
    """One [Conv2d 5x5 s2 p2 (no bias) -> eval BN -> ReLU] block.

    x: (B, H, W, Cin) NHWC with H, W even.
    Returns (B, H/2, W/2, Cout) bf16, or, if head=(fc_w, fc_b), the fused
    global-max-pool + fc + log_softmax output (B, classes) f32.
    """
    bsz, h, wdim, cin = x.shape
    cout = w.shape[-1]
    assert h % 2 == 0 and wdim % 2 == 0, (h, wdim)
    ho, wo = h // 2, wdim // 2
    hz, wz = ho + 2, wo + 2
    czp = _round_up(4 * cin, 8)                  # per-tap contraction width
    kt = 9 * czp                                 # concatenated contraction dim
    coutp = _round_up(cout, LANES)               # lane-dense (128) output block
    m_out = ho * wz                              # valid output rows per image

    tm = min(512, _round_up(m_out, 8))           # output row tile
    n_tiles = _cdiv(m_out, tm)
    m_rows = n_tiles * tm
    rpad = _round_up(m_rows + 2 * wz + 2, 8)     # z rows incl. tap + tile slack

    z = _space_to_depth_flat(x, czp, rpad).astype(jnp.bfloat16)
    w9 = _fold_conv_weights(w, bn_scale, czp, coutp).astype(jnp.bfloat16)
    bias = jnp.pad(bn_bias, (0, coutp - cout)).reshape(1, coutp).astype(jnp.float32)
    offsets = tuple(ai * wz + aj for ai in range(3) for aj in range(3))

    grid = (bsz, n_tiles)
    z_spec = pl.BlockSpec((1, rpad, czp), lambda b, t: (b, 0, 0))
    w_spec = pl.BlockSpec((kt, coutp), lambda b, t: (0, 0))
    b_spec = pl.BlockSpec((1, coutp), lambda b, t: (0, 0))
    patch = pltpu.VMEM((tm, kt), jnp.bfloat16)

    # Explicit VMEM budget so the kernel is portable across v5e (16 MiB scoped
    # default) / v6e (32) / v7x (32 of 64 physical) at realistic input sizes.
    est = (2 * rpad * czp * 2 + 2 * kt * coutp * 2 + 2 * tm * coutp * 2
           + tm * kt * 2 + 2 * tm * coutp * 4 + (2 << 20))
    vmem_limit = int(min(64 << 20, max(est, 16 << 20)))

    if head is None:
        out = pl.pallas_call(
            _make_conv_kernel(offsets, czp, tm, n_tiles),
            out_shape=jax.ShapeDtypeStruct((bsz, m_rows, coutp), jnp.bfloat16),
            grid=grid,
            in_specs=[z_spec, w_spec, b_spec],
            out_specs=pl.BlockSpec((1, tm, coutp), lambda b, t: (b, t, 0)),
            scratch_shapes=[patch],
            compiler_params=pltpu.CompilerParams(
                dimension_semantics=("parallel", "parallel"),
                vmem_limit_bytes=vmem_limit),
        )(z, w9, bias)
        # TODO(synk): fuse this re-layout into the conv epilogue (store the
        # next layer's space-to-depth slab directly) to cut inter-layer HBM
        # traffic; kept as cheap XLA glue here for robustness.
        return out[:, :m_out].reshape(bsz, ho, wz, coutp)[:, :, :wo, :cout]

    fc_w, fc_b = head
    classes = fc_w.shape[-1]
    fcw = jnp.pad(fc_w, ((0, coutp - fc_w.shape[0]), (0, 0))).astype(jnp.float32)
    fcb = fc_b.reshape(1, classes).astype(jnp.float32)
    rows = jnp.arange(m_rows)
    valid = (rows < m_out) & ((rows % wz) < wo)
    mask = jnp.where(valid, 0.0, -1e30).astype(jnp.float32).reshape(m_rows, 1)

    out = pl.pallas_call(
        _make_conv_head_kernel(offsets, czp, tm, n_tiles),
        out_shape=jax.ShapeDtypeStruct((bsz, 1, classes), jnp.float32),
        grid=grid,
        in_specs=[pl.BlockSpec((tm, 1), lambda b, t: (t, 0)),
                  z_spec, w_spec, b_spec,
                  pl.BlockSpec((coutp, classes), lambda b, t: (0, 0)),
                  pl.BlockSpec((1, classes), lambda b, t: (0, 0))],
        out_specs=pl.BlockSpec((1, 1, classes), lambda b, t: (b, 0, 0)),
        scratch_shapes=[patch, pltpu.VMEM((1, coutp), jnp.float32)],
        compiler_params=pltpu.CompilerParams(
            dimension_semantics=("parallel", "arbitrary"),
            vmem_limit_bytes=vmem_limit),
    )(mask, z, w9, bias, fcw, fcb)
    return out.reshape(bsz, classes)


# ------------------------------ full forward ----------------------------------

def baseline_cnn_transfer_forward(x_btf, params):
    b, t, f = x_btf.shape
    x = x_btf.reshape(b, t, f, 1).astype(jnp.bfloat16)       # NCHW(C=1) -> NHWC
    convs = params["convs"]
    for (w, scale, bias) in convs[:-1]:
        x = conv_block(x, w, scale, bias)
    w, scale, bias = convs[-1]
    return conv_block(x, w, scale, bias,
                      head=(params["fc_w"], params["fc_b"]))


# ------------------------------ param init ------------------------------------

def init_params(key, conv_channels=(8, 16, 32, 64), classes_num=9, eps=1e-5):
    # Original BaselineCnn uses channels (64,128,256,512); scaled down for a
    # small synthetic run.  Eval-mode BN is folded into per-channel scale/bias.
    params = {"convs": []}
    cin = 1
    for cout in conv_channels:
        key, k_w, k_g, k_b, k_m, k_v = jax.random.split(key, 6)
        fan_in = 5 * 5 * cin
        w = jax.random.normal(k_w, (5, 5, cin, cout), jnp.float32) \
            * (2.0 / fan_in) ** 0.5
        gamma = 1.0 + 0.1 * jax.random.uniform(k_g, (cout,), jnp.float32)
        beta = 0.05 * jax.random.normal(k_b, (cout,), jnp.float32)
        mean = 0.01 * jax.random.normal(k_m, (cout,), jnp.float32)
        var = 1.0 + 0.1 * jax.random.uniform(k_v, (cout,), jnp.float32)
        scale = gamma / jnp.sqrt(var + eps)
        bias = beta - mean * scale
        params["convs"].append((w, scale, bias))
        cin = cout
    # Replaced fc1: Linear(num_ftrs, classes_num), init_layer -> Xavier, zero b.
    key, k_fw = jax.random.split(key)
    limit = (6.0 / (cin + classes_num)) ** 0.5
    params["fc_w"] = jax.random.uniform(
        k_fw, (cin, classes_num), jnp.float32, -limit, limit)
    params["fc_b"] = jnp.zeros((classes_num,), jnp.float32)
    return params


# ------------------------------ f32 reference ---------------------------------

def reference_forward(x_btf, params):
    x = x_btf[..., None]
    for (w, scale, bias) in params["convs"]:
        y = lax.conv_general_dilated(
            x, w, window_strides=(2, 2), padding=((2, 2), (2, 2)),
            dimension_numbers=("NHWC", "HWIO", "NHWC"))
        x = jnp.maximum(y * scale + bias, 0.0)
    feat = jnp.max(x, axis=(1, 2))
    logits = feat @ params["fc_w"] + params["fc_b"]
    return jax.nn.log_softmax(logits, axis=-1)


def _reference_layer(x_f32, w, scale, bias):
    """Per-layer reference with the same bf16-rounded folded weights."""
    wf = (w * scale[None, None, None, :]).astype(jnp.bfloat16).astype(jnp.float32)
    y = lax.conv_general_dilated(
        x_f32, wf, window_strides=(2, 2), padding=((2, 2), (2, 2)),
        dimension_numbers=("NHWC", "HWIO", "NHWC")) + bias
    return jnp.maximum(y, 0.0)


# TODO(synk): torch.load of the pretrained checkpoint and requires_grad
# freezing are training-time only and have no forward-pass effect; not
# reproduced here.

if __name__ == "__main__":
    key = jax.random.PRNGKey(0)
    key, k_x = jax.random.split(key)

    B, T, Fm = 2, 32, 32          # small (batch, seq_len, mel_bins)
    classes_num = 9
    x = jax.random.normal(k_x, (B, T, Fm), jnp.float32)
    params = init_params(key, conv_channels=(8, 16, 32, 64),
                         classes_num=classes_num)

    # ---- per-layer logic checks (validate the 5x5 -> 9-tap mapping) ----------
    act = x.reshape(B, T, Fm, 1).astype(jnp.bfloat16)
    for li, (w, scale, bias) in enumerate(params["convs"][:-1]):
        y_ref = _reference_layer(act.astype(jnp.float32), w, scale, bias)
        act = conv_block(act, w, scale, bias)
        diff = float(jnp.max(jnp.abs(act.astype(jnp.float32) - y_ref)))
        tol = 0.02 * float(jnp.max(jnp.abs(y_ref))) + 0.02
        assert diff < tol, ("layer", li, diff, tol)

    w, scale, bias = params["convs"][-1]
    y_ref = _reference_layer(act.astype(jnp.float32), w, scale, bias)
    head_ref = jax.nn.log_softmax(
        jnp.max(y_ref, axis=(1, 2)) @ params["fc_w"] + params["fc_b"], axis=-1)
    head_out = conv_block(act, w, scale, bias,
                          head=(params["fc_w"], params["fc_b"]))
    head_diff = float(jnp.max(jnp.abs(head_out - head_ref)))
    assert head_diff < 0.05, head_diff

    # ---- end-to-end jitted forward -------------------------------------------
    fwd = jax.jit(lambda inp: baseline_cnn_transfer_forward(inp, params))
    out = jax.block_until_ready(fwd(x))

    assert out.shape == (B, classes_num), out.shape
    # log_softmax rows must exponentiate-sum to 1 and be finite
    row_sums = jnp.exp(out).sum(axis=-1)
    assert bool(jnp.all(jnp.abs(row_sums - 1.0) < 1e-4)), row_sums
    assert bool(jnp.all(jnp.isfinite(out)))

    # compare against f32 XLA reference (bf16 activations -> loose tolerance)
    ref = reference_forward(x, params)
    max_diff = float(jnp.max(jnp.abs(out - ref)))
    assert max_diff < 0.25, max_diff

    print("KERNEL_OK")
</pallas_src>

<mosaic_0001>
module attributes {stable_mosaic.version = 11 : i64} {
  func.func @kernel(%arg0: i32, %arg1: i32, %arg2: memref<1x328x8xbf16, #tpu.memory_space<vmem>>, %arg3: memref<72x128xbf16, #tpu.memory_space<vmem>>, %arg4: memref<1x128xf32, #tpu.memory_space<vmem>>, %arg5: memref<1x288x128xbf16, #tpu.memory_space<vmem>>, %arg6: memref<288x72xbf16, #tpu.memory_space<vmem>>) attributes {dimension_semantics = [#tpu.dimension_semantics<parallel>, #tpu.dimension_semantics<parallel>], iteration_bounds = array<i64: 2, 1>, scalar_prefetch = 0 : i64, scratch_operands = 1 : i64, tpu.core_type = #tpu.core_type<tc>, window_params = [{transform_indices = @transform_0, window_bounds = array<i64: 1, 328, 8>}, {pipeline_mode = #tpu.pipeline_mode<synchronous>, transform_indices = @transform_1, window_bounds = array<i64: 72, 128>}, {pipeline_mode = #tpu.pipeline_mode<synchronous>, transform_indices = @transform_2, window_bounds = array<i64: 1, 128>}, {transform_indices = @transform_3, window_bounds = array<i64: 1, 288, 128>}]} {
    %c0 = arith.constant 0 : index
    %c0_0 = arith.constant 0 : index
    %c0_1 = arith.constant 0 : index
    %0 = vector.load %arg2[%c0, %c0_0, %c0_1] : memref<1x328x8xbf16, #tpu.memory_space<vmem>>, vector<1x288x8xbf16>
    %1 = vector.shape_cast %0 : vector<1x288x8xbf16> to vector<288x8xbf16>
    %c0_2 = arith.constant 0 : index
    %c0_3 = arith.constant 0 : index
    %2 = vector.load %arg6[%c0_2, %c0_3] : memref<288x72xbf16, #tpu.memory_space<vmem>>, vector<288x8xbf16>
    tpu.vector_store %arg6[%c0_2, %c0_3], %1 {strides = array<i32>} : memref<288x72xbf16, #tpu.memory_space<vmem>>, vector<288x8xbf16>,
    %c0_4 = arith.constant 0 : index
    %c1 = arith.constant 1 : index
    %c0_5 = arith.constant 0 : index
    %3 = vector.load %arg2[%c0_4, %c1, %c0_5] : memref<1x328x8xbf16, #tpu.memory_space<vmem>>, vector<1x288x8xbf16>
    %4 = vector.shape_cast %3 : vector<1x288x8xbf16> to vector<288x8xbf16>
    %c0_6 = arith.constant 0 : index
    %c8 = arith.constant 8 : index
    %5 = vector.load %arg6[%c0_6, %c8] : memref<288x72xbf16, #tpu.memory_space<vmem>>, vector<288x8xbf16>
    tpu.vector_store %arg6[%c0_6, %c8], %4 {strides = array<i32>} : memref<288x72xbf16, #tpu.memory_space<vmem>>, vector<288x8xbf16>,
    %c0_7 = arith.constant 0 : index
    %c2 = arith.constant 2 : index
    %c0_8 = arith.constant 0 : index
    %6 = vector.load %arg2[%c0_7, %c2, %c0_8] : memref<1x328x8xbf16, #tpu.memory_space<vmem>>, vector<1x288x8xbf16>
    %7 = vector.shape_cast %6 : vector<1x288x8xbf16> to vector<288x8xbf16>
    %c0_9 = arith.constant 0 : index
    %c16 = arith.constant 16 : index
    %8 = vector.load %arg6[%c0_9, %c16] : memref<288x72xbf16, #tpu.memory_space<vmem>>, vector<288x8xbf16>
    tpu.vector_store %arg6[%c0_9, %c16], %7 {strides = array<i32>} : memref<288x72xbf16, #tpu.memory_space<vmem>>, vector<288x8xbf16>,
    %c0_10 = arith.constant 0 : index
    %c18 = arith.constant 18 : index
    %c0_11 = arith.constant 0 : index
    %9 = vector.load %arg2[%c0_10, %c18, %c0_11] : memref<1x328x8xbf16, #tpu.memory_space<vmem>>, vector<1x288x8xbf16>
    %10 = vector.shape_cast %9 : vector<1x288x8xbf16> to vector<288x8xbf16>
    %c0_12 = arith.constant 0 : index
    %c24 = arith.constant 24 : index
    %11 = vector.load %arg6[%c0_12, %c24] : memref<288x72xbf16, #tpu.memory_space<vmem>>, vector<288x8xbf16>
    tpu.vector_store %arg6[%c0_12, %c24], %10 {strides = array<i32>} : memref<288x72xbf16, #tpu.memory_space<vmem>>, vector<288x8xbf16>,
    %c0_13 = arith.constant 0 : index
    %c19 = arith.constant 19 : index
    %c0_14 = arith.constant 0 : index
    %12 = vector.load %arg2[%c0_13, %c19, %c0_14] : memref<1x328x8xbf16, #tpu.memory_space<vmem>>, vector<1x288x8xbf16>
    %13 = vector.shape_cast %12 : vector<1x288x8xbf16> to vector<288x8xbf16>
    %c0_15 = arith.constant 0 : index
    %c32 = arith.constant 32 : index
    %14 = vector.load %arg6[%c0_15, %c32] : memref<288x72xbf16, #tpu.memory_space<vmem>>, vector<288x8xbf16>
    tpu.vector_store %arg6[%c0_15, %c32], %13 {strides = array<i32>} : memref<288x72xbf16, #tpu.memory_space<vmem>>, vector<288x8xbf16>,
    %c0_16 = arith.constant 0 : index
    %c20 = arith.constant 20 : index
    %c0_17 = arith.constant 0 : index
    %15 = vector.load %arg2[%c0_16, %c20, %c0_17] : memref<1x328x8xbf16, #tpu.memory_space<vmem>>, vector<1x288x8xbf16>
    %16 = vector.shape_cast %15 : vector<1x288x8xbf16> to vector<288x8xbf16>
    %c0_18 = arith.constant 0 : index
    %c40 = arith.constant 40 : index
    %17 = vector.load %arg6[%c0_18, %c40] : memref<288x72xbf16, #tpu.memory_space<vmem>>, vector<288x8xbf16>
    tpu.vector_store %arg6[%c0_18, %c40], %16 {strides = array<i32>} : memref<288x72xbf16, #tpu.memory_space<vmem>>, vector<288x8xbf16>,
    %c0_19 = arith.constant 0 : index
    %c36 = arith.constant 36 : index
    %c0_20 = arith.constant 0 : index
    %18 = vector.load %arg2[%c0_19, %c36, %c0_20] : memref<1x328x8xbf16, #tpu.memory_space<vmem>>, vector<1x288x8xbf16>
    %19 = vector.shape_cast %18 : vector<1x288x8xbf16> to vector<288x8xbf16>
    %c0_21 = arith.constant 0 : index
    %c48 = arith.constant 48 : index
    %20 = vector.load %arg6[%c0_21, %c48] : memref<288x72xbf16, #tpu.memory_space<vmem>>, vector<288x8xbf16>
    tpu.vector_store %arg6[%c0_21, %c48], %19 {strides = array<i32>} : memref<288x72xbf16, #tpu.memory_space<vmem>>, vector<288x8xbf16>,
    %c0_22 = arith.constant 0 : index
    %c37 = arith.constant 37 : index
    %c0_23 = arith.constant 0 : index
    %21 = vector.load %arg2[%c0_22, %c37, %c0_23] : memref<1x328x8xbf16, #tpu.memory_space<vmem>>, vector<1x288x8xbf16>
    %22 = vector.shape_cast %21 : vector<1x288x8xbf16> to vector<288x8xbf16>
    %c0_24 = arith.constant 0 : index
    %c56 = arith.constant 56 : index
    %23 = vector.load %arg6[%c0_24, %c56] : memref<288x72xbf16, #tpu.memory_space<vmem>>, vector<288x8xbf16>
    tpu.vector_store %arg6[%c0_24, %c56], %22 {strides = array<i32>} : memref<288x72xbf16, #tpu.memory_space<vmem>>, vector<288x8xbf16>,
    %c0_25 = arith.constant 0 : index
    %c38 = arith.constant 38 : index
    %c0_26 = arith.constant 0 : index
    %24 = vector.load %arg2[%c0_25, %c38, %c0_26] : memref<1x328x8xbf16, #tpu.memory_space<vmem>>, vector<1x288x8xbf16>
    %25 = vector.shape_cast %24 : vector<1x288x8xbf16> to vector<288x8xbf16>
    %c0_27 = arith.constant 0 : index
    %c64 = arith.constant 64 : index
    %26 = vector.load %arg6[%c0_27, %c64] : memref<288x72xbf16, #tpu.memory_space<vmem>>, vector<288x8xbf16>
    tpu.vector_store %arg6[%c0_27, %c64], %25 {strides = array<i32>} : memref<288x72xbf16, #tpu.memory_space<vmem>>, vector<288x8xbf16>,
    %c0_28 = arith.constant 0 : index
    %c0_29 = arith.constant 0 : index
    %27 = vector.load %arg6[%c0_28, %c0_29] : memref<288x72xbf16, #tpu.memory_space<vmem>>, vector<288x72xbf16>
    %c0_30 = arith.constant 0 : index
    %c0_31 = arith.constant 0 : index
    %28 = vector.load %arg3[%c0_30, %c0_31] : memref<72x128xbf16, #tpu.memory_space<vmem>>, vector<72x128xbf16>
    %cst = arith.constant dense<0.000000e+00> : vector<288x128xf32>
    %29 = tpu.matmul %27, %28, %cst {dimension_numbers = #tpu.dot_dimension_numbers<[1], [0], [0], [1], [0, 0, 1, 1], [], []>} : vector<288x72xbf16>, vector<72x128xbf16>, vector<288x128xf32> -> vector<288x128xf32>
    %c0_32 = arith.constant 0 : index
    %c0_33 = arith.constant 0 : index
    %30 = vector.load %arg4[%c0_32, %c0_33] : memref<1x128xf32, #tpu.memory_space<vmem>>, vector<1x128xf32>
    %31 = vector.broadcast %30 : vector<1x128xf32> to vector<288x128xf32>
    %32 = arith.addf %29, %31 : vector<288x128xf32>
    %cst_34 = arith.constant 0.000000e+00 : f32
    %33 = vector.broadcast %cst_34 : f32 to vector<288x128xf32>
    %34 = arith.maximumf %32, %33 : vector<288x128xf32>
    %35 = arith.truncf %34 : vector<288x128xf32> to vector<288x128xbf16>
    %c0_35 = arith.constant 0 : index
    %c0_36 = arith.constant 0 : index
    %c0_37 = arith.constant 0 : index
    %36 = vector.load %arg5[%c0_35, %c0_36, %c0_37] : memref<1x288x128xbf16, #tpu.memory_space<vmem>>, vector<1x288x128xbf16>
    %37 = vector.shape_cast %36 : vector<1x288x128xbf16> to vector<288x128xbf16>
    %38 = vector.shape_cast %35 : vector<288x128xbf16> to vector<1x288x128xbf16>
    tpu.vector_store %arg5[%c0_35, %c0_36, %c0_37], %38 {strides = array<i32>} : memref<1x288x128xbf16, #tpu.memory_space<vmem>>, vector<1x288x128xbf16>,
    return
  }
  func.func @transform_0(%arg0: i32, %arg1: i32) -> (i32, i32, i32) {
    %c0_i32 = arith.constant 0 : i32
    %c0_i32_0 = arith.constant 0 : i32
    %c0_i32_1 = arith.constant 0 : i32
    return %arg0, %c0_i32, %c0_i32_0 : i32, i32, i32
  }
  func.func @transform_1(%arg0: i32, %arg1: i32) -> (i32, i32) {
    %c0_i32 = arith.constant 0 : i32
    %c0_i32_0 = arith.constant 0 : i32
    %c0_i32_1 = arith.constant 0 : i32
    return %c0_i32, %c0_i32_0 : i32, i32
  }
  func.func @transform_2(%arg0: i32, %arg1: i32) -> (i32, i32) {
    %c0_i32 = arith.constant 0 : i32
    %c0_i32_0 = arith.constant 0 : i32
    %c0_i32_1 = arith.constant 0 : i32
    return %c0_i32, %c0_i32_0 : i32, i32
  }
  func.func @transform_3(%arg0: i32, %arg1: i32) -> (i32, i32, i32) {
    %c0_i32 = arith.constant 0 : i32
    %c0_i32_0 = arith.constant 0 : i32
    return %arg0, %arg1, %c0_i32 : i32, i32, i32
  }
}

</mosaic_0001>

<bundles_post_ra>
// kernel: tpu_custom_call.1
= control target key start
LH: loop header
LB: loop body
LE: loop exit
PB: predicated region body
PF: predicated region fallthrough
CT: control target
= control target key end

     0   :  { %8 = vsyncpa [#allocation4], 0  ;;  %s6853_s0 = inlined_call_operand.vmem [shape: bf16[2,328,8], index: 0, kind: input, shape index: {}]   ;;  %s6854_s1 = inlined_call_operand.vmem [shape: bf16[72,128], index: 1, kind: input, shape index: {}]   ;;  %s6855_s2 = inlined_call_operand.vmem [shape: f32[1,128], index: 2, kind: input, shape index: {}]   ;;  %s6856_s3 = inlined_call_operand.hbm [shape: bf16[2,288,128], index: 3, kind: output, shape index: {}]  }
   0x1   :  { %10 = vsyncpa [#allocation4 + $0x1], 0  ;;  %s4786_s12 = smov 0   ;;  %s4788_s13 = smov 0  }
   0x2   :  { %s4790_s14 = smov 0   ;;  %s4792_s15 = smov 0  }
   0x3   :  { %s4794_s16 = smov 0   ;;  %s4796_s17 = smov 0  }
   0x4 LB: > { %s4272_s18 = sadd.s32 4294967295, %s4754_s17   ;;  %s4273_s19 = sadd.s32 4294967294, %s4754_s17   ;;  %s4754_s17 = sphi %s4796_s17, %s16_s17   ;;  %s4750_s16 = sphi %s4794_s16, %s6875_s16   ;;  %s4746_s15 = sphi %s4792_s15, %s6874_s15   ;;  %s4742_s14 = sphi %s4790_s14, %s6873_s14   ;;  %s4738_s13 = sphi %s4788_s13, %s6872_s13   ;;  %s4734_s12 = sphi %s4786_s12, %s6871_s12  }
   0x5   : > { %s28_s20 = sadd.s32 1, %s4750_s16  ;;  %s105_s21 = sadd.s32 1, %s4742_s14 }
   0x6   : > { %p30_p0 = scmp.ge.s32.totalorder %s28_s20, 2  ;;  %p115_p1 = scmp.ne.s32.totalorder %s4742_s14, %s4738_s13 }
   0x7   : > { %p116_p2 = scmp.eq.s32.totalorder %s4272_s18, 1  ;;  %p121_p3 = scmp.ne.s32.totalorder %s4738_s13, %s4734_s12 }
   0x8   : > { %s6877_s20 = smov (%p30_p0, %s28_s20), 0  ;;  %p122_p5 = scmp.eq.s32.totalorder %s4273_s19, 1 }
   0x9   : > { %p4826_p4 = por %p116_p2, %p115_p1  ;;  %s100_s23 = ssub.s32 %s4750_s16, %s6877_s20 }
   0xa   : > { %p4276_p6 = scmp.ge.s32.totalorder %s4754_s17, 1  ;;  %p103_p7 = scmp.eq.s32.totalorder %s100_s23, 0 }
   0xb   : > { %p4833_p8 = por %p122_p5, %p121_p3  ;;  %p154_p9 = scmp.lt.s32.totalorder %s4754_s17, 3 }
   0xc   : > { %s4839_s25 = scalar_select %p103_p7, %s4742_s14, %s105_s21  }
   0xd   : > { %p155_p10 = pnand %p4276_p6, %p154_p9 }
   0xe   : > { %p178_p11 = scmp.lt.s32.totalorder (!%p155_p10), %s4746_s15, 1  ;;  %s4756_s4 = smov (!%p155_p10), 8  }
   0xf   : > { %158 = sbr.rel (%p155_p10) target bundleno = 950 (0x3b6), region = 32  ;;  %s4757_s5 = smov (!%p155_p10), 16  }
  0x10   : > { %s4758_s6 = smov (!%p155_p10), 24   ;;  %s4759_s7 = smov (!%p155_p10), 32  }
  0x11   : > { %s4760_s8 = smov (!%p155_p10), 40   ;;  %s4761_s11 = smov (!%p155_p10), 48  }
  0x12   : > { %s4590_s10 = smul.u32 (!%p155_p10), 2304, %s4746_s15 }
  0x14   : > { %s179_s26 = scalar_select %p178_p11, %s4746_s15, 1  ;;  %vm295_vm0 = vsmask.f32 3328  ;;  %vm296_vm1 = vsmask.f32 7440  ;;  %vm221_vm3 = vcmask 60416  }
  0x15   : > { %vm4857_vm2 = vmor %vm295_vm0, %vm296_vm1  ;;  %vm881_vm4 = vcmask 1042432   ;;  %vm882_vm5 = vcmask 1046532   ;;  %vm770_vm7 = vcmask 126016   ;;  %vm1101_vm8 = vcmask 191616   ;;  %s6799_s21 = scalar_lea.hbm %s6856_s3, %s4590_s10 }
  0x16   : > { %s4589_s27 = smul.u32 164, %s179_s26  ;;  %vm5080_vm6 = vmor %vm881_vm4, %vm882_vm5  ;;  %vm1503_vm9 = vsmask.f32 2304  ;;  %vm1504_vm10 = vsmask.f32 6416  ;;  %vm2093_vm12 = vcmask 1041408  }
  0x17   : > { %vm5469_vm11 = vmor %vm1503_vm9, %vm1504_vm10  ;;  %vm2094_vm13 = vcmask 1045508   ;;  %vm1429_vm14 = vcmask 257216   ;;  %vm2715_vm0 = vsmask.f32 1280  ;;  %vm2716_vm1 = vsmask.f32 5392 }
  0x18   : > { %s4846_s30 = scalar_lea.vmem %s6853_s0, %s4589_s27  ;;  %vm5594_vm15 = vmor %vm2093_vm12, %vm2094_vm13  ;;  %vm3305_vm4 = vcmask 1040384   ;;  %vm3306_vm5 = vcmask 1044484   ;;  %s4762_s26 = smov 56   ;;  %vm2641_vm9 = vcmask 454016   ;;  %vm3194_vm10 = vcmask 519616  }
  0x19   : > { %v260_v0 = vld [vmem:[%s4846_s30 + $0x8] sm:$0xf]  ;;  %v261_v1 = vld [vmem:[%s4846_s30 + $0xc] sm:$0xf]  ;;  %v258_v2 = vld [vmem:[%s4846_s30] sm:$0xf] }
  0x1a   : > { %v318_v3 = vshll.u32 %v260_v0, 16  ;;  %v322_v4 = vshrl.u32 %v260_v0, 16  ;;  %v328_v5 = vshll.u32 %v261_v1, 16  ;;  %v332_v6 = vshrl.u32 %v261_v1, 16  ;;  %v259_v7 = vld [vmem:[%s4846_s30 + $0x4] sm:$0xf] }
  0x1b   : > { %v299_v8 = vshrl.u32 %v258_v2, 16  ;;  %v302_v9 = vshll.u32 %v258_v2, 16  ;;  %v308_v10 = vshll.u32 %v259_v7, 16  ;;  %v312_v11 = vshrl.u32 %v259_v7, 16  ;;  %v262_v12 = vld [vmem:[%s4846_s30 + $0x10] sm:$0xf] }
  0x1c   : > { %v320_v13 = vrot.slane %v318_v3, 5  ;;  %v324_v14 = vrot.slane %v322_v4, 4  ;;  %v330_v15 = vrot.slane %v328_v5, 5  ;;  %v334_v16 = vrot.slane %v332_v6, 4  ;;  %v263_v17 = vld [vmem:[%s4846_s30 + $0x14] sm:$0xf] }
  0x1d   : > { %v301_v18 = vrot.slane %v299_v8, 4  ;;  %v304_v19 = vrot.slane %v302_v9, 5  ;;  %v310_v20 = vrot.slane %v308_v10, 5  ;;  %v314_v21 = vrot.slane %v312_v11, 4  ;;  %v264_v22 = vld [vmem:[%s4846_s30 + $0x18] sm:$0xf] }
  0x1e   : > { %v325_v23 = vor.u32 %v324_v14, %v320_v13  ;;  %v335_v24 = vor.u32 %v334_v16, %v330_v15  ;;  %v338_v25 = vshll.u32 %v262_v12, 16  ;;  %v342_v26 = vshrl.u32 %v262_v12, 16  ;;  %v265_v36 = vld [vmem:[%s4846_s30 + $0x1c] sm:$0xf]  ;;  %v266_v41 = vld [vmem:[%s4846_s30 + $0x20] sm:$0xf] }
  0x1f   : > { %v305_v28 = vor.u32 %v304_v19, %v301_v18  ;;  %v315_v29 = vor.u32 %v314_v21, %v310_v20  ;;  %v348_v30 = vshll.u32 %v263_v17, 16  ;;  %v352_v31 = vshrl.u32 %v263_v17, 16  ;;  %v267_v46 = vld [vmem:[%s4846_s30 + $0x24] sm:$0xf]  ;;  %v268_v58 = vld [vmem:[%s4846_s30 + $0x28] sm:$0xf] }
  0x20   : > { %v326_v32 = vrot.slane %v325_v23, 4  ;;  %v336_v33 = vrot.slane %v335_v24, 4  ;;  %v340_v34 = vrot.slane %v338_v25, 5  ;;  %v358_v35 = vshll.u32 %v264_v22, 16  ;;  %v269_v0 = vld [vmem:[%s4846_s30 + $0x2c] sm:$0xf] }
  0x21   : > { %v306_v37 = vrot.slane %v305_v28, 4  ;;  %v316_v38 = vrot.slane %v315_v29, 4  ;;  %v350_v39 = vrot.slane %v348_v30, 5  ;;  %v354_v40 = vrot.slane %v352_v31, 4  ;;  %v270_v9 = vld [vmem:[%s4846_s30 + $0x30] sm:$0xf] }
  0x22   : > { %v331_v42 = vsel %vm4857_vm2, %v326_v32, %v330_v15  ;;  %v341_v43 = vsel %vm4857_vm2, %v336_v33, %v340_v34  ;;  %v360_v44 = vrot.slane %v358_v35, 5  ;;  %v362_v45 = vshrl.u32 %v264_v22, 16  ;;  %v271_v17 = vld [vmem:[%s4846_s30 + $0x34] sm:$0xf]  ;;  %v272_v22 = vld [vmem:[%s4846_s30 + $0x38] sm:$0xf] }
  0x23   : > { %666 = vrot.lane.b32.xlu1 %v331_v42, %s4756_s4  ;;  %v311_v47 = vsel %vm4857_vm2, %v306_v37, %v310_v20  ;;  %v321_v48 = vsel %vm4857_vm2, %v316_v38, %v320_v13  ;;  %v355_v49 = vor.u32 %v354_v40, %v350_v39  ;;  %v344_v50 = vrot.slane %v342_v26, 4  ;;  %v273_v32 = vld [vmem:[%s4846_s30 + $0x3c] sm:$0xf]  ;;  %v274_v37 = vld [vmem:[%s4846_s30 + $0x40] sm:$0xf] }
  0x24   : > { %662 = vrot.lane.b32.xlu0 %v311_v47, %s4756_s4  ;;  %v368_v51 = vshll.u32 %v265_v36, 16  ;;  %v372_v52 = vshrl.u32 %v265_v36, 16  ;;  %v378_v53 = vshll.u32 %v266_v41, 16  ;;  %v382_v54 = vshrl.u32 %v266_v41, 16  ;;  %v208_v27 = vld [vmem:[%s4846_s30 + $0x5c] sm:$0xf] }
  0x25   : > { %v356_v55 = vrot.slane %v355_v49, 4  ;;  %v345_v56 = vor.u32 %v344_v50, %v340_v34  ;;  %v364_v57 = vrot.slane %v362_v45, 4  ;;  %v388_v59 = vshll.u32 %v267_v46, 16  ;;  %v275_v50 = vld [vmem:[%s4846_s30 + $0x44] sm:$0xf] }
  0x26   : > { %v370_v60 = vrot.slane %v368_v51, 5  ;;  %v374_v61 = vrot.slane %v372_v52, 4  ;;  %v380_v62 = vrot.slane %v378_v53, 5  ;;  %v392_v63 = vshrl.u32 %v267_v46, 16  ;;  %245 = vst.msk [vmem:[#allocation2 + $0x5c] sm:$0xf] %vm221_vm3, %v208_v27 }
  0x27   : > { %668 = vrot.lane.b32.xlu1 %v341_v43, %s4756_s4  ;;  %v361_v1 = vsel %vm4857_vm2, %v356_v55, %v360_v44  ;;  %v346_v2 = vrot.slane %v345_v56, 4  ;;  %v365_v3 = vor.u32 %v364_v57, %v360_v44  ;;  %v390_v4 = vrot.slane %v388_v59, 5  ;;  %v276_v55 = vld [vmem:[%s4846_s30 + $0x48] sm:$0xf] }
  0x28   : > { %664 = vrot.lane.b32.xlu0 %v321_v48, %s4756_s4  ;;  %v375_v5 = vor.u32 %v374_v61, %v370_v60  ;;  %v394_v6 = vrot.slane %v392_v63, 4  ;;  %v398_v7 = vshll.u32 %v268_v58, 16  ;;  %v402_v8 = vshrl.u32 %v268_v58, 16 }
  0x29   : > { %v351_v10 = vsel %vm4857_vm2, %v346_v2, %v350_v39  ;;  %v366_v11 = vrot.slane %v365_v3, 4  ;;  %v384_v12 = vrot.slane %v382_v54, 4  ;;  %v408_v13 = vshll.u32 %v269_v0, 16 }
  0x2a   : > { %v376_v14 = vrot.slane %v375_v5, 4  ;;  %v395_v15 = vor.u32 %v394_v6, %v390_v4  ;;  %v412_v16 = vshrl.u32 %v269_v0, 16  ;;  %v400_v18 = vrot.slane %v398_v7, 5  ;;  %v277_v0 = vld [vmem:[%s4846_s30 + $0x4c] sm:$0xf] }
  0x2b   : > { %672 = vrot.lane.b32.xlu1 %v361_v1, %s4756_s4  ;;  %v385_v19 = vor.u32 %v384_v12, %v380_v62  ;;  %v410_v20 = vrot.slane %v408_v13, 5  ;;  %v418_v21 = vshll.u32 %v270_v9, 16  ;;  %v422_v26 = vshrl.u32 %v270_v9, 16  ;;  %v278_v5 = vld [vmem:[%s4846_s30 + $0x50] sm:$0xf] }
  0x2c   : > { %670 = vrot.lane.b32.xlu0 %v351_v10, %s4756_s4  ;;  %v381_v23 = vsel %vm4857_vm2, %v376_v14, %v380_v62  ;;  %v396_v24 = vrot.slane %v395_v15, 4  ;;  %v414_v25 = vrot.slane %v412_v16, 4  ;;  %v371_v28 = vsel %vm4857_vm2, %v366_v11, %v370_v60 }
  0x2d   : > { %v386_v29 = vrot.slane %v385_v19, 4  ;;  %v404_v30 = vrot.slane %v402_v8, 4  ;;  %v428_v31 = vshll.u32 %v271_v17, 16  ;;  %v420_v34 = vrot.slane %v418_v21, 5 }
  0x2e   : > { %v415_v33 = vor.u32 %v414_v25, %v410_v20  ;;  %v432_v35 = vshrl.u32 %v271_v17, 16  ;;  %v438_v36 = vshll.u32 %v272_v22, 16  ;;  %v401_v38 = vsel %vm4857_vm2, %v396_v24, %v400_v18  ;;  %v279_v17 = vld [vmem:[%s4846_s30 + $0x54] sm:$0xf] }
  0x2f   : > { %676 = vrot.lane.b32.xlu1 %v381_v23, %s4756_s4  ;;  %v391_v39 = vsel %vm4857_vm2, %v386_v29, %v390_v4  ;;  %v405_v40 = vor.u32 %v404_v30, %v400_v18  ;;  %v430_v41 = vrot.slane %v428_v31, 5  ;;  %v442_v44 = vshrl.u32 %v272_v22, 16  ;;  %v280_v22 = vld [vmem:[%s4846_s30 + $0x58] sm:$0xf] }
  0x30   : > { %674 = vrot.lane.b32.xlu0 %v371_v28, %s4756_s4  ;;  %v416_v42 = vrot.slane %v415_v33, 4  ;;  %v434_v43 = vrot.slane %v432_v35, 4  ;;  %v424_v45 = vrot.slane %v422_v26, 4  ;;  %v448_v47 = vshll.u32 %v273_v32, 16  ;;  %v281_v35 = vld [vmem:[%s4846_s30 + $0x5c] sm:$0xf] }
  0x31   : > { %v406_v46 = vrot.slane %v405_v40, 4  ;;  %v452_v48 = vshrl.u32 %v273_v32, 16  ;;  %v458_v49 = vshll.u32 %v274_v37, 16  ;;  %v440_v53 = vrot.slane %v438_v36, 5  ;;  %v282_v40 = vld [vmem:[%s4846_s30 + $0x60] sm:$0xf] }
  0x32   : > { %v421_v51 = vsel %vm4857_vm2, %v416_v42, %v420_v34  ;;  %v435_v52 = vor.u32 %v434_v43, %v430_v41  ;;  %v425_v54 = vor.u32 %v424_v45, %v420_v34  ;;  %v450_v57 = vrot.slane %v448_v47, 5 }
  0x33   : > { %680 = vrot.lane.b32.xlu1 %v401_v38, %s4756_s4  ;;  %v411_v56 = vsel %vm4857_vm2, %v406_v46, %v410_v20  ;;  %v454_v58 = vrot.slane %v452_v48, 4  ;;  %v462_v59 = vshrl.u32 %v274_v37, 16  ;;  %v444_v62 = vrot.slane %v442_v44, 4 }
  0x34   : > { %678 = vrot.lane.b32.xlu0 %v391_v39, %s4756_s4  ;;  %v436_v60 = vrot.slane %v435_v52, 4  ;;  %v426_v61 = vrot.slane %v425_v54, 4  ;;  %v468_v63 = vshll.u32 %v275_v50, 16  ;;  %v460_v2 = vrot.slane %v458_v49, 5  ;;  %v283_v49 = vld [vmem:[%s4846_s30 + $0x64] sm:$0xf] }
  0x35   : > { %v455_v1 = vor.u32 %v454_v58, %v450_v57  ;;  %v472_v3 = vshrl.u32 %v275_v50, 16  ;;  %v478_v4 = vshll.u32 %v276_v55, 16  ;;  %v445_v6 = vor.u32 %v444_v62, %v440_v53 }
  0x36   : > { %v4909_v7 = vrot.slane %v468_v63, 5  ;;  %v482_v8 = vshrl.u32 %v276_v55, 16  ;;  %v441_v9 = vsel %vm4857_vm2, %v436_v60, %v440_v53  ;;  %v464_v12 = vrot.slane %v462_v59, 4  ;;  %v284_v60 = vld [vmem:[%s4846_s30 + $0x68] sm:$0xf] }
  0x37   : > { %684 = vrot.lane.b32.xlu1 %v421_v51, %s4756_s4  ;;  %v456_v10 = vrot.slane %v455_v1, 4  ;;  %v474_v11 = vrot.slane %v472_v3, 4  ;;  %v431_v13 = vsel %vm4857_vm2, %v426_v61, %v430_v41  ;;  %v488_v14 = vshll.u32 %v277_v0, 16  ;;  %v286_v3 = vld [vmem:[%s4846_s30 + $0x70] sm:$0xf] }
  0x38   : > { %682 = vrot.lane.b32.xlu0 %v411_v56, %s4756_s4  ;;  %v492_v15 = vshrl.u32 %v277_v0, 16  ;;  %v498_v16 = vshll.u32 %v278_v5, 16  ;;  %v446_v18 = vrot.slane %v445_v6, 4  ;;  %v480_v20 = vrot.slane %v478_v4, 5 }
  0x39   : > { %v475_v19 = vor.u32 %v474_v11, %v4909_v7  ;;  %v465_v21 = vor.u32 %v464_v12, %v460_v2  ;;  %v4920_v23 = vrot.slane %v488_v14, 5  ;;  %v502_v25 = vshrl.u32 %v278_v5, 16 }
  0x3a   : > { %v494_v24 = vrot.slane %v492_v15, 4  ;;  %v461_v26 = vsel %vm4857_vm2, %v456_v10, %v460_v2  ;;  %v484_v29 = vrot.slane %v482_v8, 4  ;;  %v508_v30 = vshll.u32 %v279_v17, 16  ;;  %v285_v2 = vld [vmem:[%s4846_s30 + $0x6c] sm:$0xf] }
  0x3b   : > { %688 = vrot.lane.b32.xlu1 %v441_v9, %s4756_s4  ;;  %v476_v28 = vrot.slane %v475_v19, 4  ;;  %v500_v32 = vrot.slane %v498_v16, 5  ;;  %v512_v33 = vshrl.u32 %v279_v17, 16  ;;  %v518_v34 = vshll.u32 %v280_v22, 16  ;;  %v287_v8 = vld [vmem:[%s4846_s30 + $0x74] sm:$0xf] }
  0x3c   : > { %686 = vrot.lane.b32.xlu0 %v431_v13, %s4756_s4  ;;  %v495_v31 = vor.u32 %v494_v24, %v4920_v23  ;;  %v451_v36 = vsel %vm4857_vm2, %v446_v18, %v450_v57  ;;  %v466_v37 = vrot.slane %v465_v21, 4  ;;  %v485_v38 = vor.u32 %v484_v29, %v480_v20  ;;  %v187_v13 = vld [vmem:[%s4846_s30 + $0x8] sm:$0xf]  ;;  %v185_v17 = vld [vmem:[%s4846_s30] sm:$0xf] }
  0x3d   : > { %v4930_v39 = vrot.slane %v508_v30, 5  ;;  %v514_v42 = vrot.slane %v512_v33, 4  ;;  %v522_v43 = vshrl.u32 %v280_v22, 16  ;;  %v504_v44 = vrot.slane %v502_v25, 4  ;;  %224 = vst.msk [vmem:[#allocation2 + $0x8] sm:$0xf] %vm221_vm3, %v187_v13 }
  0x3e   : > { %v496_v41 = vrot.slane %v495_v31, 4  ;;  %v481_v45 = vsel %vm4857_vm2, %v476_v28, %v480_v20  ;;  %v486_v46 = vrot.slane %v485_v38, 4  ;;  %v528_v47 = vshll.u32 %v281_v35, 16  ;;  %v288_v22 = vld [vmem:[%s4846_s30 + $0x78] sm:$0xf] }
  0x3f   : > { %692 = vrot.lane.b32.xlu1 %v461_v26, %s4756_s4  ;;  %v532_v48 = vshrl.u32 %v281_v35, 16  ;;  %v515_v50 = vor.u32 %v514_v42, %v4930_v39  ;;  %v520_v51 = vrot.slane %v518_v34, 5  ;;  %v505_v52 = vor.u32 %v504_v44, %v500_v32  ;;  %222 = vst.msk [vmem:[#allocation2] sm:$0xf] %vm221_vm3, %v185_v17  ;;  %v188_v28 = vld [vmem:[%s4846_s30 + $0xc] sm:$0xf] }
  0x40   : > { %690 = vrot.lane.b32.xlu0 %v451_v36, %s4756_s4  ;;  %v538_v53 = vshll.u32 %v282_v40, 16  ;;  %v471_v54 = vsel %vm4857_vm2, %v466_v37, %v4909_v7  ;;  %v4942_v55 = vrot.slane %v528_v47, 5  ;;  %v542_v57 = vshrl.u32 %v282_v40, 16  ;;  %225 = vst.msk [vmem:[#allocation2 + $0xc] sm:$0xf] %vm221_vm3, %v188_v28 }
  0x41   : > { %v534_v56 = vrot.slane %v532_v48, 4  ;;  %v501_v58 = vsel %vm4857_vm2, %v496_v41, %v500_v32  ;;  %v524_v59 = vrot.slane %v522_v43, 4  ;;  %v548_v61 = vshll.u32 %v283_v49, 16  ;;  %v186_v33 = vld [vmem:[%s4846_s30 + $0x4] sm:$0xf] }
  0x42   : > { %v491_v62 = vsel %vm4857_vm2, %v486_v46, %v4920_v23  ;;  %v516_v63 = vrot.slane %v515_v50, 4  ;;  %v552_v1 = vshrl.u32 %v283_v49, 16  ;;  %v506_v4 = vrot.slane %v505_v52, 4  ;;  %v289_v37 = vld [vmem:[%s4846_s30 + $0x7c] sm:$0xf] }
  0x43   : > { %696 = vrot.lane.b32.xlu1 %v481_v45, %s4756_s4  ;;  %v535_v0 = vor.u32 %v534_v56, %v4942_v55  ;;  %v540_v5 = vrot.slane %v538_v53, 5  ;;  %v525_v6 = vor.u32 %v524_v59, %v520_v51  ;;  %v4955_v7 = vrot.slane %v548_v61, 5  ;;  %v290_v38 = vld [vmem:[%s4846_s30 + $0x80] sm:$0xf]  ;;  %223 = vst.msk [vmem:[#allocation2 + $0x4] sm:$0xf] %vm221_vm3, %v186_v33 }
  0x44   : > { %694 = vrot.lane.b32.xlu0 %v471_v54, %s4756_s4  ;;  %v554_v9 = vrot.slane %v552_v1, 4  ;;  %v558_v10 = vshll.u32 %v284_v60, 16  ;;  %v562_v11 = vshrl.u32 %v284_v60, 16  ;;  %v544_v12 = vrot.slane %v542_v57, 4  ;;  %v190_v43 = vld [vmem:[%s4846_s30 + $0x14] sm:$0xf] }
  0x45   : > { %v536_v14 = vrot.slane %v535_v0, 4  ;;  %v568_v15 = vshll.u32 %v285_v2, 16  ;;  %v572_v16 = vshrl.u32 %v285_v2, 16  ;;  %v521_v18 = vsel %vm4857_vm2, %v516_v63, %v520_v51  ;;  %227 = vst.msk [vmem:[#allocation2 + $0x14] sm:$0xf] %vm221_vm3, %v190_v43 }
  0x46   : > { %v526_v19 = vrot.slane %v525_v6, 4  ;;  %v555_v20 = vor.u32 %v554_v9, %v4955_v7  ;;  %v578_v21 = vshll.u32 %v286_v3, 16  ;;  %v545_v23 = vor.u32 %v544_v12, %v540_v5  ;;  %v189_v48 = vld [vmem:[%s4846_s30 + $0x10] sm:$0xf]  ;;  %v291_v53 = vld [vmem:[%s4846_s30 + $0x84] sm:$0xf] }
  0x47   : > { %700 = vrot.lane.b32.xlu1 %v501_v58, %s4756_s4  ;;  %v4968_v24 = vrot.slane %v568_v15, 5  ;;  %v574_v25 = vrot.slane %v572_v16, 4  ;;  %v582_v26 = vshrl.u32 %v286_v3, 16  ;;  %v511_v29 = vsel %vm4857_vm2, %v506_v4, %v4930_v39  ;;  %226 = vst.msk [vmem:[#allocation2 + $0x10] sm:$0xf] %vm221_vm3, %v189_v48 }
  0x48   : > { %698 = vrot.lane.b32.xlu0 %v491_v62, %s4756_s4  ;;  %v560_v30 = vrot.slane %v558_v10, 5  ;;  %v564_v31 = vrot.slane %v562_v11, 4  ;;  %v588_v32 = vshll.u32 %v287_v8, 16  ;;  %v541_v34 = vsel %vm4857_vm2, %v536_v14, %v540_v5  ;;  %v192_v56 = vld [vmem:[%s4846_s30 + $0x1c] sm:$0xf] }
  0x49   : > { %v575_v35 = vor.u32 %v574_v25, %v4968_v24  ;;  %v592_v36 = vshrl.u32 %v287_v8, 16  ;;  %v531_v39 = vsel %vm4857_vm2, %v526_v19, %v4942_v55  ;;  %v556_v40 = vrot.slane %v555_v20, 4  ;;  %229 = vst.msk [vmem:[#allocation2 + $0x1c] sm:$0xf] %vm221_vm3, %v192_v56  ;;  %v191_v61 = vld [vmem:[%s4846_s30 + $0x18] sm:$0xf] }
  0x4a   : > { %v580_v41 = vrot.slane %v578_v21, 5  ;;  %v4986_v42 = vrot.slane %v588_v32, 5  ;;  %v546_v44 = vrot.slane %v545_v23, 4  ;;  %v598_v46 = vshll.u32 %v288_v22, 16  ;;  %v292_v1 = vld [vmem:[%s4846_s30 + $0x88] sm:$0xf] }
  0x4b   : > { %704 = vrot.lane.b32.xlu1 %v521_v18, %s4756_s4  ;;  %v594_v45 = vrot.slane %v592_v36, 4  ;;  %v584_v47 = vrot.slane %v582_v26, 4  ;;  %v565_v49 = vor.u32 %v564_v31, %v560_v30  ;;  %v602_v50 = vshrl.u32 %v288_v22, 16  ;;  %228 = vst.msk [vmem:[#allocation2 + $0x18] sm:$0xf] %vm221_vm3, %v191_v61 }
  0x4c   : > { %702 = vrot.lane.b32.xlu0 %v511_v29, %s4756_s4  ;;  %v608_v51 = vshll.u32 %v289_v37, 16  ;;  %v612_v52 = vshrl.u32 %v289_v37, 16  ;;  %v576_v54 = vrot.slane %v575_v35, 4  ;;  %v618_v55 = vshll.u32 %v290_v38, 16  ;;  %v293_v8 = vld [vmem:[%s4846_s30 + $0x8c] sm:$0xf] }
  0x4d   : > { %v595_v57 = vor.u32 %v594_v45, %v4986_v42  ;;  %v585_v58 = vor.u32 %v584_v47, %v580_v41  ;;  %v561_v62 = vsel %vm4857_vm2, %v556_v40, %v560_v30  ;;  %v551_v63 = vsel %vm4857_vm2, %v546_v44, %v4955_v7  ;;  %v194_v11 = vld [vmem:[%s4846_s30 + $0x24] sm:$0xf]  ;;  %v193_v12 = vld [vmem:[%s4846_s30 + $0x20] sm:$0xf]  ;;  %v196_v25 = vld [vmem:[%s4846_s30 + $0x2c] sm:$0xf] }
  0x4e   : > { %v4997_v59 = vrot.slane %v608_v51, 5  ;;  %v614_v60 = vrot.slane %v612_v52, 4  ;;  %v600_v0 = vrot.slane %v598_v46, 5  ;;  %v628_v2 = vshll.u32 %v291_v53, 16  ;;  %231 = vst.msk [vmem:[#allocation2 + $0x24] sm:$0xf] %vm221_vm3, %v194_v11 }
  0x4f   : > { %708 = vrot.lane.b32.xlu1 %v541_v34, %s4756_s4  ;;  %v566_v3 = vrot.slane %v565_v49, 4  ;;  %v622_v4 = vshrl.u32 %v290_v38, 16  ;;  %v604_v5 = vrot.slane %v602_v50, 4  ;;  %v632_v6 = vshrl.u32 %v291_v53, 16  ;;  %230 = vst.msk [vmem:[#allocation2 + $0x20] sm:$0xf] %vm221_vm3, %v193_v12 }
  0x50   : > { %706 = vrot.lane.b32.xlu0 %v531_v39, %s4756_s4  ;;  %v581_v9 = vsel %vm4857_vm2, %v576_v54, %v580_v41  ;;  %v620_v10 = vrot.slane %v618_v55, 5  ;;  %v596_v7 = vrot.slane %v595_v57, 4  ;;  %v586_v13 = vrot.slane %v585_v58, 4  ;;  %v195_v26 = vld [vmem:[%s4846_s30 + $0x28] sm:$0xf] }
  0x51   : > { %v615_v14 = vor.u32 %v614_v60, %v4997_v59  ;;  %v638_v15 = vshll.u32 %v292_v1, 16  ;;  %v5019_v16 = vrot.slane %v628_v2, 5  ;;  %v634_v17 = vrot.slane %v632_v6, 4  ;;  %233 = vst.msk [vmem:[#allocation2 + $0x2c] sm:$0xf] %vm221_vm3, %v196_v25 }
  0x52   : > { %v648_v18 = vshll.u32 %v293_v8, 16  ;;  %v652_v19 = vshrl.u32 %v293_v8, 16  ;;  %v571_v20 = vsel %vm4857_vm2, %v566_v3, %v4968_v24  ;;  %v605_v21 = vor.u32 %v604_v5, %v600_v0  ;;  %232 = vst.msk [vmem:[#allocation2 + $0x28] sm:$0xf] %vm221_vm3, %v195_v26  ;;  %v294_v29 = vld [vmem:[%s4846_s30 + $0x90] sm:$0x1] }
  0x53   : > { %712 = vrot.lane.b32.xlu1 %v561_v62, %s4756_s4  ;;  %v642_v22 = vshrl.u32 %v292_v1, 16  ;;  %v624_v23 = vrot.slane %v622_v4, 4  ;;  %v601_v28 = vsel %vm4857_vm2, %v596_v7, %v600_v0  ;;  %v591_v24 = vsel %vm4857_vm2, %v586_v13, %v4986_v42  ;;  %v198_v34 = vld [vmem:[%s4846_s30 + $0x34] sm:$0xf]  ;;  %v197_v39 = vld [vmem:[%s4846_s30 + $0x30] sm:$0xf] }
  0x54   : > { %710 = vrot.lane.b32.xlu0 %v551_v63, %s4756_s4  ;;  %v616_v30 = vrot.slane %v615_v14, 4  ;;  %v635_v31 = vor.u32 %v634_v17, %v5019_v16  ;;  %v650_v32 = vrot.slane %v648_v18, 5  ;;  %v654_v33 = vrot.slane %v652_v19, 4  ;;  %235 = vst.msk [vmem:[#allocation2 + $0x34] sm:$0xf] %vm221_vm3, %v198_v34 }
  0x55   : > { %v606_v35 = vrot.slane %v605_v21, 4  ;;  %v640_v36 = vrot.slane %v638_v15, 5  ;;  %v625_v37 = vor.u32 %v624_v23, %v620_v10  ;;  %v644_v38 = vrot.slane %v642_v22, 4  ;;  %234 = vst.msk [vmem:[#allocation2 + $0x30] sm:$0xf] %vm221_vm3, %v197_v39 }
  0x56   : > { %v200_v40 = vld [vmem:[%s4846_s30 + $0x3c] sm:$0xf]  ;;  %v199_v41 = vld [vmem:[%s4846_s30 + $0x38] sm:$0xf]  ;;  %v621_v42 = vsel %vm4857_vm2, %v616_v30, %v620_v10  ;;  %v636_v43 = vrot.slane %v635_v31, 4  ;;  %v655_v44 = vor.u32 %v654_v33, %v650_v32  ;;  %v658_v45 = vshll.u32 %v294_v29, 16 }
  0x57   : > { %716 = vrot.lane.b32.xlu1 %v581_v9, %s4756_s4  ;;  %237 = vst.msk [vmem:[#allocation2 + $0x3c] sm:$0xf] %vm221_vm3, %v200_v40  ;;  %236 = vst.msk [vmem:[#allocation2 + $0x38] sm:$0xf] %vm221_vm3, %v199_v41  ;;  %v611_v46 = vsel %vm4857_vm2, %v606_v35, %v4997_v59  ;;  %v626_v47 = vrot.slane %v625_v37, 4  ;;  %v645_v48 = vor.u32 %v644_v38, %v640_v36  ;;  %vm3525_vm12 = vcmask 585216  }
  0x58   : > { %714 = vrot.lane.b32.xlu0 %v571_v20, %s4756_s4  ;;  %v808_v49 = vld [vmem:[%s4846_s30 + $0x4] sm:$0xf]  ;;  %v201_v51 = vld [vmem:[%s4846_s30 + $0x40] sm:$0xf]  ;;  %v641_v52 = vsel %vm4857_vm2, %v636_v43, %v640_v36  ;;  %v656_v53 = vrot.slane %v655_v44, 4  ;;  %v660_v54 = vrot.slane %v658_v45, 5 }
  0x59   : > { %v202_v50 = vld [vmem:[%s4846_s30 + $0x44] sm:$0xf]  ;;  %v809_v55 = vld [vmem:[%s4846_s30 + $0x8] sm:$0xf]  ;;  %v886_v56 = vrot.slane %v808_v49, 5  ;;  %v631_v57 = vsel %vm4857_vm2, %v626_v47, %v5019_v16  ;;  %v646_v58 = vrot.slane %v645_v48, 4 }
  0x5a   : > { %239 = vst.msk [vmem:[#allocation2 + $0x44] sm:$0xf] %vm221_vm3, %v202_v50  ;;  %238 = vst.msk [vmem:[#allocation2 + $0x40] sm:$0xf] %vm221_vm3, %v201_v51  ;;  %v810_v59 = vld [vmem:[%s4846_s30 + $0xc] sm:$0xf]  ;;  %v661_v0 = vsel %vm4857_vm2, %v656_v53, %v660_v54 }
  0x5b   : > { %720 = vrot.lane.b32.xlu1 %v601_v28, %s4756_s4  ;;  %v204_v60 = vld [vmem:[%s4846_s30 + $0x4c] sm:$0xf]  ;;  %v807_v61 = vld [vmem:[%s4846_s30] sm:$0xe]  ;;  %v203_v62 = vld [vmem:[%s4846_s30 + $0x48] sm:$0xf]  ;;  %v651_v5 = vsel %vm4857_vm2, %v646_v58, %v650_v32 }
  0x5c   : > { %718 = vrot.lane.b32.xlu0 %v591_v24, %s4756_s4  ;;  %241 = vst.msk [vmem:[#allocation2 + $0x4c] sm:$0xf] %vm221_vm3, %v204_v60  ;;  %v811_v63 = vld [vmem:[%s4846_s30 + $0x10] sm:$0xf]  ;;  %240 = vst.msk [vmem:[#allocation2 + $0x48] sm:$0xf] %vm221_vm3, %v203_v62 }
  0x5d   : > { %v888_v1 = vrot.slane %v886_v56, 4  ;;  %v889_v2 = vrot.slane %v809_v55, 5  ;;  %v892_v3 = vrot.slane %v810_v59, 5  ;;  %v206_v4 = vld [vmem:[%s4846_s30 + $0x54] sm:$0xf]  ;;  %v4278_v8 = vrot.slane %v807_v61, 9 }
  0x5e   : > { %v812_v9 = vld [vmem:[%s4846_s30 + $0x14] sm:$0xf]  ;;  %243 = vst.msk [vmem:[#allocation2 + $0x54] sm:$0xf] %vm221_vm3, %v206_v4  ;;  %v205_v10 = vld [vmem:[%s4846_s30 + $0x50] sm:$0xf] }
  0x5f   : > { %724 = vrot.lane.b32.xlu1 %v621_v42, %s4756_s4  ;;  %242 = vst.msk [vmem:[#allocation2 + $0x50] sm:$0xf] %vm221_vm3, %v205_v10  ;;  %v890_v11 = vsel %vm5080_vm6, %v888_v1, %v889_v2  ;;  %v894_v12 = vrot.slane %v892_v3, 4  ;;  %v895_v7 = vrot.slane %v811_v63, 5  ;;  %v898_v13 = vrot.slane %v812_v9, 5 }
  0x60   : > { %722 = vrot.lane.b32.xlu0 %v611_v46, %s4756_s4  ;;  %v207_v14 = vld [vmem:[%s4846_s30 + $0x58] sm:$0xf]  ;;  %v887_v15 = vsel %vm5080_vm6, %v4278_v8, %v886_v56  ;;  %v891_v16 = vrot.slane %v889_v2, 4  ;;  %v814_v18 = vld [vmem:[%s4846_s30 + $0x1c] sm:$0xf]  ;;  %vm3786_vm2 = vcmask 1043456  }
  0x61   : > { %v813_v17 = vld [vmem:[%s4846_s30 + $0x18] sm:$0xf]  ;;  %244 = vst.msk [vmem:[#allocation2 + $0x58] sm:$0xf] %vm221_vm3, %v207_v14  ;;  %v210_v19 = vld [vmem:[%s4846_s30 + $0x64] sm:$0xf]  ;;  %v896_v21 = vsel %vm5080_vm6, %v894_v12, %v895_v7 }
  0x62   : > { %247 = vst.msk [vmem:[#allocation2 + $0x64] sm:$0xf] %vm221_vm3, %v210_v19  ;;  %v209_v20 = vld [vmem:[%s4846_s30 + $0x60] sm:$0xf]  ;;  %v900_v22 = vrot.slane %v898_v13, 4  ;;  %v901_v23 = vrot.slane %v813_v17, 5  ;;  %v893_v28 = vsel %vm5080_vm6, %v891_v16, %v892_v3 }
  0x63   : > { %728 = vrot.lane.b32.xlu1 %v641_v52, %s4756_s4  ;;  %v815_v25 = vld [vmem:[%s4846_s30 + $0x20] sm:$0xf]  ;;  %v904_v26 = vrot.slane %v814_v18, 5  ;;  %246 = vst.msk [vmem:[#allocation2 + $0x60] sm:$0xf] %vm221_vm3, %v209_v20  ;;  %v897_v24 = vrot.slane %v895_v7, 4 }
  0x64   : > { %726 = vrot.lane.b32.xlu0 %v631_v57, %s4756_s4  ;;  %v816_v29 = vld [vmem:[%s4846_s30 + $0x24] sm:$0xf]  ;;  %v212_v30 = vld [vmem:[%s4846_s30 + $0x6c] sm:$0xf]  ;;  %v211_v31 = vld [vmem:[%s4846_s30 + $0x68] sm:$0xf]  ;;  %v902_v33 = vsel %vm5080_vm6, %v900_v22, %v901_v23 }
  0x65   : > { %249 = vst.msk [vmem:[#allocation2 + $0x6c] sm:$0xf] %vm221_vm3, %v212_v30  ;;  %v817_v32 = vld [vmem:[%s4846_s30 + $0x28] sm:$0xf]  ;;  %248 = vst.msk [vmem:[#allocation2 + $0x68] sm:$0xf] %vm221_vm3, %v211_v31  ;;  %v899_v38 = vsel %vm5080_vm6, %v897_v24, %v898_v13 }
  0x66   : > { %v906_v34 = vrot.slane %v904_v26, 4  ;;  %v907_v35 = vrot.slane %v815_v25, 5  ;;  %v910_v36 = vrot.slane %v816_v29, 5  ;;  %v214_v37 = vld [vmem:[%s4846_s30 + $0x74] sm:$0xf]  ;;  %v903_v39 = vrot.slane %v901_v23, 4 }
  0x67   : > { %732 = vrot.lane.b32.xlu1 %v661_v0, %s4756_s4  ;;  %v818_v40 = vld [vmem:[%s4846_s30 + $0x2c] sm:$0xf]  ;;  %251 = vst.msk [vmem:[#allocation2 + $0x74] sm:$0xf] %vm221_vm3, %v214_v37  ;;  %v213_v41 = vld [vmem:[%s4846_s30 + $0x70] sm:$0xf] }
  0x68   : > { %730 = vrot.lane.b32.xlu0 %v651_v5, %s4756_s4  ;;  %250 = vst.msk [vmem:[#allocation2 + $0x70] sm:$0xf] %vm221_vm3, %v213_v41  ;;  %v216_v42 = vld [vmem:[%s4846_s30 + $0x7c] sm:$0xf]  ;;  %v908_v43 = vsel %vm5080_vm6, %v906_v34, %v907_v35  ;;  %v912_v44 = vrot.slane %v910_v36, 4  ;;  %v913_v45 = vrot.slane %v817_v32, 5  ;;  %v905_v48 = vsel %vm5080_vm6, %v903_v39, %v904_v26 }
  0x69   : > { %v916_v46 = vrot.slane %v818_v40, 5  ;;  %253 = vst.msk [vmem:[#allocation2 + $0x7c] sm:$0xf] %vm221_vm3, %v216_v42  ;;  %v215_v47 = vld [vmem:[%s4846_s30 + $0x78] sm:$0xf]  ;;  %v909_v49 = vrot.slane %v907_v35, 4 }
  0x6a   : > { %v819_v50 = vld [vmem:[%s4846_s30 + $0x30] sm:$0xf]  ;;  %v820_v51 = vld [vmem:[%s4846_s30 + $0x34] sm:$0xf]  ;;  %252 = vst.msk [vmem:[#allocation2 + $0x78] sm:$0xf] %vm221_vm3, %v215_v47  ;;  %v914_v54 = vsel %vm5080_vm6, %v912_v44, %v913_v45 }
  0x6b   : > { %995 = vrot.lane.b32.xlu1 %v890_v11, %s4757_s5  ;;  %v218_v52 = vld [vmem:[%s4846_s30 + $0x84] sm:$0xf]  ;;  %v217_v53 = vld [vmem:[%s4846_s30 + $0x80] sm:$0xf]  ;;  %v918_v55 = vrot.slane %v916_v46, 4  ;;  %v919_v56 = vrot.slane %v819_v50, 5  ;;  %v911_v59 = vsel %vm5080_vm6, %v909_v49, %v910_v36 }
  0x6c   : > { %993 = vrot.lane.b32.xlu0 %v887_v15, %s4757_s5  ;;  %255 = vst.msk [vmem:[#allocation2 + $0x84] sm:$0xf] %vm221_vm3, %v218_v52  ;;  %v821_v57 = vld [vmem:[%s4846_s30 + $0x38] sm:$0xf]  ;;  %v922_v58 = vrot.slane %v820_v51, 5  ;;  %v915_v60 = vrot.slane %v913_v45, 4 }
  0x6d   : > { %254 = vst.msk [vmem:[#allocation2 + $0x80] sm:$0xf] %vm221_vm3, %v217_v53  ;;  %v822_v61 = vld [vmem:[%s4846_s30 + $0x3c] sm:$0xf]  ;;  %v220_v62 = vld [vmem:[%s4846_s30 + $0x8c] sm:$0xf]  ;;  %v920_v0 = vsel %vm5080_vm6, %v918_v55, %v919_v56 }
  0x6e   : > { %257 = vst.msk [vmem:[#allocation2 + $0x8c] sm:$0xf] %vm221_vm3, %v220_v62  ;;  %v219_v63 = vld [vmem:[%s4846_s30 + $0x88] sm:$0xf]  ;;  %v924_v1 = vrot.slane %v922_v58, 4  ;;  %v925_v2 = vrot.slane %v821_v57, 5  ;;  %v917_v4 = vsel %vm5080_vm6, %v915_v60, %v916_v46 }
  0x6f   : > { %999 = vrot.lane.b32.xlu1 %v896_v21, %s4757_s5  ;;  %256 = vst.msk [vmem:[#allocation2 + $0x88] sm:$0xf] %vm221_vm3, %v219_v63  ;;  %v928_v3 = vrot.slane %v822_v61, 5  ;;  %v921_v5 = vrot.slane %v919_v56, 4  ;;  %v823_v8 = vld [vmem:[%s4846_s30 + $0x40] sm:$0xf]  ;;  %vm5656_vm3 = vmor %vm2715_vm0, %vm2716_vm1 }
  0x70   : > { %997 = vrot.lane.b32.xlu0 %v893_v28, %s4757_s5  ;;  %v824_v9 = vld [vmem:[%s4846_s30 + $0x44] sm:$0xf]  ;;  %v926_v10 = vsel %vm5080_vm6, %v924_v1, %v925_v2  ;;  %v931_v11 = vrot.slane %v823_v8, 5  ;;  %v927_v13 = vrot.slane %v925_v2, 4  ;;  %v825_v14 = vld [vmem:[%s4846_s30 + $0x48] sm:$0xf] }
  0x71   : > { %v930_v27 = vrot.slane %v928_v3, 4  ;;  %v934_v12 = vrot.slane %v824_v9, 5  ;;  %v923_v7 = vsel %vm5080_vm6, %v921_v5, %v922_v58  ;;  %v826_v15 = vld [vmem:[%s4846_s30 + $0x4c] sm:$0xf]  ;;  %v937_v18 = vrot.slane %v825_v14, 5 }
  0x72   : > { %v940_v19 = vrot.slane %v826_v15, 5  ;;  %v929_v20 = vsel %vm5080_vm6, %v927_v13, %v928_v3  ;;  %v933_v21 = vrot.slane %v931_v11, 4  ;;  %v827_v22 = vld [vmem:[%s4846_s30 + $0x50] sm:$0xf]  ;;  %v828_v23 = vld [vmem:[%s4846_s30 + $0x54] sm:$0xf] }
  0x73   : > { %1003 = vrot.lane.b32.xlu1 %v902_v33, %s4757_s5  ;;  %v932_v16 = vsel %vm5080_vm6, %v930_v27, %v931_v11  ;;  %v936_v17 = vrot.slane %v934_v12, 4  ;;  %v943_v28 = vrot.slane %v827_v22, 5  ;;  %v946_v24 = vrot.slane %v828_v23, 5  ;;  %v829_v31 = vld [vmem:[%s4846_s30 + $0x58] sm:$0xf] }
  0x74   : > { %1001 = vrot.lane.b32.xlu0 %v899_v38, %s4757_s5  ;;  %v942_v26 = vrot.slane %v940_v19, 4  ;;  %v935_v29 = vsel %vm5080_vm6, %v933_v21, %v934_v12  ;;  %v939_v30 = vrot.slane %v937_v18, 4  ;;  %v830_v32 = vld [vmem:[%s4846_s30 + $0x5c] sm:$0xf]  ;;  %v949_v35 = vrot.slane %v829_v31, 5 }
  0x75   : > { %v938_v25 = vsel %vm5080_vm6, %v936_v17, %v937_v18  ;;  %v948_v34 = vrot.slane %v946_v24, 4  ;;  %v952_v36 = vrot.slane %v830_v32, 5  ;;  %v945_v38 = vrot.slane %v943_v28, 4  ;;  %v831_v39 = vld [vmem:[%s4846_s30 + $0x60] sm:$0xf] }
  0x76   : > { %v944_v33 = vsel %vm5080_vm6, %v942_v26, %v943_v28  ;;  %v941_v37 = vsel %vm5080_vm6, %v939_v30, %v940_v19  ;;  %v832_v40 = vld [vmem:[%s4846_s30 + $0x64] sm:$0xf]  ;;  %v951_v46 = vrot.slane %v949_v35, 4  ;;  %v833_v47 = vld [vmem:[%s4846_s30 + $0x68] sm:$0xf]  ;;  %vm3731_vm13 = vcmask 588800  }
  0x77   : > { %1007 = vrot.lane.b32.xlu1 %v908_v43, %s4757_s5  ;;  %v950_v41 = vsel %vm5080_vm6, %v948_v34, %v949_v35  ;;  %v954_v42 = vrot.slane %v952_v36, 4  ;;  %v955_v43 = vrot.slane %v831_v39, 5  ;;  %v958_v44 = vrot.slane %v832_v40, 5  ;;  %v835_v56 = vld [vmem:[%s4846_s30 + $0x70] sm:$0xf] }
  0x78   : > { %1005 = vrot.lane.b32.xlu0 %v905_v48, %s4757_s5  ;;  %v947_v45 = vsel %vm5080_vm6, %v945_v38, %v946_v24  ;;  %v834_v48 = vld [vmem:[%s4846_s30 + $0x6c] sm:$0xf]  ;;  %v961_v51 = vrot.slane %v833_v47, 5  ;;  %v836_v57 = vld [vmem:[%s4846_s30 + $0x74] sm:$0xf]  ;;  %v967_v61 = vrot.slane %v835_v56, 5 }
  0x79   : > { %v956_v49 = vsel %vm5080_vm6, %v954_v42, %v955_v43  ;;  %v960_v50 = vrot.slane %v958_v44, 4  ;;  %v964_v52 = vrot.slane %v834_v48, 5  ;;  %v957_v55 = vrot.slane %v955_v43, 4  ;;  %v837_v2 = vld [vmem:[%s4846_s30 + $0x78] sm:$0xf] }
  0x7a   : > { %v970_v62 = vrot.slane %v836_v57, 5  ;;  %v963_v1 = vrot.slane %v961_v51, 4  ;;  %v838_v3 = vld [vmem:[%s4846_s30 + $0x7c] sm:$0xf]  ;;  %v973_v9 = vrot.slane %v837_v2, 5  ;;  %v969_v12 = vrot.slane %v967_v61, 4 }
  0x7b   : > { %1011 = vrot.lane.b32.xlu1 %v914_v54, %s4757_s5  ;;  %v953_v54 = vsel %vm5080_vm6, %v951_v46, %v952_v36  ;;  %v966_v60 = vrot.slane %v964_v52, 4  ;;  %v840_v13 = vld [vmem:[%s4846_s30 + $0x84] sm:$0xf]  ;;  %v841_v22 = vld [vmem:[%s4846_s30 + $0x88] sm:$0xf] }
  0x7c   : > { %1009 = vrot.lane.b32.xlu0 %v911_v59, %s4757_s5  ;;  %v962_v59 = vsel %vm5080_vm6, %v960_v50, %v961_v51  ;;  %v972_v8 = vrot.slane %v970_v62, 4  ;;  %v965_v11 = vsel %vm5080_vm6, %v963_v1, %v964_v52  ;;  %v982_v18 = vrot.slane %v840_v13, 5  ;;  %v842_v23 = vld [vmem:[%s4846_s30 + $0x8c] sm:$0xf]  ;;  %v1140_v43 = vld [vmem:[%s4846_s30 + $0x10] sm:$0xf] }
  0x7d   : > { %v968_v5 = vsel %vm5080_vm6, %v966_v60, %v967_v61  ;;  %v975_v21 = vrot.slane %v973_v9, 4  ;;  %v985_v24 = vrot.slane %v841_v22, 5  ;;  %v1139_v34 = vld [vmem:[%s4846_s30 + $0xc] sm:$0xf]  ;;  %v1138_v46 = vld [vmem:[%s4846_s30 + $0x8] sm:$0xe] }
  0x7e   : > { %v974_v15 = vsel %vm5080_vm6, %v972_v8, %v973_v9  ;;  %v984_v28 = vrot.slane %v982_v18, 4  ;;  %v1214_v39 = vrot.slane %v1139_v34, 5  ;;  %v1145_v1 = vld [vmem:[%s4846_s30 + $0x24] sm:$0xf] }
  0x7f   : > { %1015 = vrot.lane.b32.xlu1 %v920_v0, %s4757_s5  ;;  %v959_v0 = vsel %vm5080_vm6, %v957_v55, %v958_v44  ;;  %v987_v42 = vrot.slane %v985_v24, 4  ;;  %v1141_v44 = vld [vmem:[%s4846_s30 + $0x14] sm:$0xf]  ;;  %v1143_v55 = vld [vmem:[%s4846_s30 + $0x1c] sm:$0xf]  ;;  %v1232_v8 = vrot.slane %v1145_v1, 5 }
  0x80   : > { %1013 = vrot.lane.b32.xlu0 %v917_v4, %s4757_s5  ;;  %v986_v36 = vsel %vm5080_vm6, %v984_v28, %v985_v24  ;;  %v1216_v48 = vrot.slane %v1214_v39, 4  ;;  %v1220_v50 = vrot.slane %v1141_v44, 5  ;;  %v1226_v60 = vrot.slane %v1143_v55, 5 }
  0x83   : > { %1019 = vrot.lane.b32.xlu1 %v926_v10, %s4757_s5  ;;  %v976_v10 = vrot.slane %v838_v3, 5 }
  0x84   : > { %1017 = vrot.lane.b32.xlu0 %v923_v7, %s4757_s5  ;;  %v839_v7 = vld [vmem:[%s4846_s30 + $0x80] sm:$0xf] }
  0x85   : > { %v979_v17 = vrot.slane %v839_v7, 5  ;;  %v977_v31 = vsel %vm5080_vm6, %v975_v21, %v976_v10  ;;  %v1149_v21 = vld [vmem:[%s4846_s30 + $0x34] sm:$0xf] }
  0x86   : > { %v1244_v28 = vrot.slane %v1149_v21, 5 }
  0x87   : > { %1023 = vrot.lane.b32.xlu1 %v932_v16, %s4757_s5  ;;  %v978_v16 = vrot.slane %v976_v10, 4  ;;  %v981_v32 = vrot.slane %v979_v17, 4 }
  0x88   : > { %1021 = vrot.lane.b32.xlu0 %v929_v20, %s4757_s5  ;;  %v971_v20 = vsel %vm5080_vm6, %v969_v12, %v970_v62  ;;  %v1147_v12 = vld [vmem:[%s4846_s30 + $0x2c] sm:$0xf] }
  0x89   : > { %v980_v26 = vsel %vm5080_vm6, %v978_v16, %v979_v17  ;;  %v1238_v16 = vrot.slane %v1147_v12, 5 }
  0x8b   : > { %1027 = vrot.lane.b32.xlu1 %v938_v25, %s4757_s5 }
  0x8c   : > { %1025 = vrot.lane.b32.xlu0 %v935_v29, %s4757_s5  ;;  %v988_v29 = vrot.slane %v842_v23, 5 }
  0x8e   : > { %v989_v52 = vsel %vm5080_vm6, %v987_v42, %v988_v29  ;;  %v1153_v42 = vld [vmem:[%s4846_s30 + $0x44] sm:$0xf] }
  0x8f   : > { %1031 = vrot.lane.b32.xlu1 %v944_v33, %s4757_s5  ;;  %v843_v33 = vld [vmem:[%s4846_s30 + $0x90] sm:$0x1] }
  0x90   : > { %1029 = vrot.lane.b32.xlu0 %v941_v37, %s4757_s5  ;;  %v990_v37 = vrot.slane %v988_v29, 4  ;;  %v991_v38 = vrot.slane %v843_v33, 5 }
  0x92   : > { %v992_v47 = vsel %vm5080_vm6, %v990_v37, %v991_v38 }
  0x93   : > { %1035 = vrot.lane.b32.xlu1 %v950_v41, %s4757_s5  ;;  %v983_v41 = vsel %vm5080_vm6, %v981_v32, %v982_v18  ;;  %v1151_v32 = vld [vmem:[%s4846_s30 + $0x3c] sm:$0xf] }
  0x94   : > { %1033 = vrot.lane.b32.xlu0 %v947_v45, %s4757_s5  ;;  %v1250_v37 = vrot.slane %v1151_v32, 5 }
  0x95   : > { %v667_v53 = vpop.permute.xlu1 %666 }
  0x96   : > { %773 = vst.msk [vmem:[#allocation2 + $0x8] sm:$0xf] %vm770_vm7, %v667_v53  ;;  %v663_v58 = vpop.permute.xlu0 %662  ;;  %v4279_v53 = vrot.slane %v1138_v46, 9 }
  0x97   : > { %771 = vst.msk [vmem:[#allocation2] sm:$0xf] %vm770_vm7, %v663_v58  ;;  %1039 = vrot.lane.b32.xlu1 %v956_v49, %s4757_s5  ;;  %v1217_v49 = vrot.slane %v1140_v43, 5  ;;  %v1222_v58 = vrot.slane %v1220_v50, 4 }
  0x98   : > { %1037 = vrot.lane.b32.xlu0 %v953_v54, %s4757_s5  ;;  %v1142_v54 = vld [vmem:[%s4846_s30 + $0x18] sm:$0xf]  ;;  %v1215_v62 = vsel %vm5080_vm6, %v4279_v53, %v1214_v39 }
  0x99   : > { %v669_v63 = vpop.permute.xlu1 %668  ;;  %v1218_v57 = vsel %vm5080_vm6, %v1216_v48, %v1217_v49 }
  0x9a   : > { %774 = vst.msk [vmem:[#allocation2 + $0xc] sm:$0xf] %vm770_vm7, %v669_v63  ;;  %v665_v4 = vpop.permute.xlu0 %664  ;;  %v1219_v63 = vrot.slane %v1217_v49, 4 }
  0x9b   : > { %772 = vst.msk [vmem:[#allocation2 + $0x4] sm:$0xf] %vm770_vm7, %v665_v4  ;;  %1043 = vrot.lane.b32.xlu1 %v962_v59, %s4757_s5  ;;  %v1223_v59 = vrot.slane %v1142_v54, 5  ;;  %v1228_v4 = vrot.slane %v1226_v60, 4 }
  0x9c   : > { %1041 = vrot.lane.b32.xlu0 %v959_v0, %s4757_s5  ;;  %v1144_v0 = vld [vmem:[%s4846_s30 + $0x20] sm:$0xf]  ;;  %v1221_v10 = vsel %vm5080_vm6, %v1219_v63, %v1220_v50 }
  0x9d   : > { %v673_v27 = vpop.permute.xlu1 %672  ;;  %v1224_v3 = vsel %vm5080_vm6, %v1222_v58, %v1223_v59 }
  0x9e   : > { %776 = vst.msk [vmem:[#allocation2 + $0x14] sm:$0xf] %vm770_vm7, %v673_v27  ;;  %v671_v14 = vpop.permute.xlu0 %670  ;;  %v1225_v27 = vrot.slane %v1223_v59, 4 }
  0x9f   : > { %775 = vst.msk [vmem:[#allocation2 + $0x10] sm:$0xf] %vm770_vm7, %v671_v14  ;;  %1047 = vrot.lane.b32.xlu1 %v968_v5, %s4757_s5  ;;  %v1229_v5 = vrot.slane %v1144_v0, 5  ;;  %v1234_v14 = vrot.slane %v1232_v8, 4 }
  0xa0   : > { %1045 = vrot.lane.b32.xlu0 %v965_v11, %s4757_s5  ;;  %v1146_v11 = vld [vmem:[%s4846_s30 + $0x28] sm:$0xf]  ;;  %v1227_v18 = vsel %vm5080_vm6, %v1225_v27, %v1226_v60 }
  0xa1   : > { %v677_v19 = vpop.permute.xlu1 %676  ;;  %v1230_v13 = vsel %vm5080_vm6, %v1228_v4, %v1229_v5 }
  0xa2   : > { %778 = vst.msk [vmem:[#allocation2 + $0x1c] sm:$0xf] %vm770_vm7, %v677_v19  ;;  %v675_v25 = vpop.permute.xlu0 %674  ;;  %v1231_v19 = vrot.slane %v1229_v5, 4 }
  0xa3   : > { %777 = vst.msk [vmem:[#allocation2 + $0x18] sm:$0xf] %vm770_vm7, %v675_v25  ;;  %1051 = vrot.lane.b32.xlu1 %v974_v15, %s4757_s5  ;;  %v1235_v15 = vrot.slane %v1146_v11, 5  ;;  %v1240_v25 = vrot.slane %v1238_v16, 4 }
  0xa4   : > { %1049 = vrot.lane.b32.xlu0 %v971_v20, %s4757_s5  ;;  %v1148_v20 = vld [vmem:[%s4846_s30 + $0x30] sm:$0xf]  ;;  %v1233_v29 = vsel %vm5080_vm6, %v1231_v19, %v1232_v8 }
  0xa5   : > { %v681_v30 = vpop.permute.xlu1 %680  ;;  %v1236_v23 = vsel %vm5080_vm6, %v1234_v14, %v1235_v15 }
  0xa6   : > { %780 = vst.msk [vmem:[#allocation2 + $0x24] sm:$0xf] %vm770_vm7, %v681_v30  ;;  %v679_v35 = vpop.permute.xlu0 %678  ;;  %v1237_v30 = vrot.slane %v1235_v15, 4 }
  0xa7   : > { %779 = vst.msk [vmem:[#allocation2 + $0x20] sm:$0xf] %vm770_vm7, %v679_v35  ;;  %1055 = vrot.lane.b32.xlu1 %v980_v26, %s4757_s5  ;;  %v1241_v26 = vrot.slane %v1148_v20, 5  ;;  %v1246_v35 = vrot.slane %v1244_v28, 4 }
  0xa8   : > { %1053 = vrot.lane.b32.xlu0 %v977_v31, %s4757_s5  ;;  %v1150_v31 = vld [vmem:[%s4846_s30 + $0x38] sm:$0xf]  ;;  %v1239_v39 = vsel %vm5080_vm6, %v1237_v30, %v1238_v16 }
  0xa9   : > { %v685_v40 = vpop.permute.xlu1 %684  ;;  %v1242_v34 = vsel %vm5080_vm6, %v1240_v25, %v1241_v26 }
  0xaa   : > { %782 = vst.msk [vmem:[#allocation2 + $0x2c] sm:$0xf] %vm770_vm7, %v685_v40  ;;  %v683_v45 = vpop.permute.xlu0 %682  ;;  %v1243_v40 = vrot.slane %v1241_v26, 4 }
  0xab   : > { %781 = vst.msk [vmem:[#allocation2 + $0x28] sm:$0xf] %vm770_vm7, %v683_v45  ;;  %1059 = vrot.lane.b32.xlu1 %v986_v36, %s4757_s5  ;;  %v1247_v36 = vrot.slane %v1150_v31, 5  ;;  %v1252_v45 = vrot.slane %v1250_v37, 4 }
  0xac   : > { %1057 = vrot.lane.b32.xlu0 %v983_v41, %s4757_s5  ;;  %v1152_v41 = vld [vmem:[%s4846_s30 + $0x40] sm:$0xf]  ;;  %v1245_v49 = vsel %vm5080_vm6, %v1243_v40, %v1244_v28 }
  0xad   : > { %v689_v51 = vpop.permute.xlu1 %688  ;;  %v1248_v44 = vsel %vm5080_vm6, %v1246_v35, %v1247_v36  ;;  %v1253_v46 = vrot.slane %v1152_v41, 5  ;;  %v1249_v50 = vrot.slane %v1247_v36, 4 }
  0xae   : > { %784 = vst.msk [vmem:[#allocation2 + $0x34] sm:$0xf] %vm770_vm7, %v689_v51  ;;  %v687_v56 = vpop.permute.xlu0 %686  ;;  %v1154_v51 = vld [vmem:[%s4846_s30 + $0x48] sm:$0xf] }
  0xaf   : > { %783 = vst.msk [vmem:[#allocation2 + $0x30] sm:$0xf] %vm770_vm7, %v687_v56  ;;  %1063 = vrot.lane.b32.xlu1 %v992_v47, %s4757_s5  ;;  %v1256_v47 = vrot.slane %v1153_v42, 5  ;;  %v1254_v54 = vsel %vm5080_vm6, %v1252_v45, %v1253_v46  ;;  %v1259_v56 = vrot.slane %v1154_v51, 5  ;;  %v1251_v59 = vsel %vm5080_vm6, %v1249_v50, %v1250_v37 }
  0xb0   : > { %1061 = vrot.lane.b32.xlu0 %v989_v52, %s4757_s5  ;;  %v1155_v52 = vld [vmem:[%s4846_s30 + $0x4c] sm:$0xf]  ;;  %v1255_v60 = vrot.slane %v1253_v46, 4  ;;  %s4763_s5 = smov 64  }
  0xb1   : > { %v693_v61 = vpop.permute.xlu1 %692  ;;  %v1258_v55 = vrot.slane %v1256_v47, 4  ;;  %v1261_v8 = vrot.slane %v1259_v56, 4 }
  0xb2   : > { %786 = vst.msk [vmem:[#allocation2 + $0x3c] sm:$0xf] %vm770_vm7, %v693_v61  ;;  %v691_v2 = vpop.permute.xlu0 %690  ;;  %v1156_v61 = vld [vmem:[%s4846_s30 + $0x50] sm:$0xf]  ;;  %v1257_v5 = vsel %vm5080_vm6, %v1255_v60, %v1256_v47 }
  0xb3   : > { %785 = vst.msk [vmem:[#allocation2 + $0x38] sm:$0xf] %vm770_vm7, %v691_v2  ;;  %1323 = vrot.lane.b32.xlu1 %v1218_v57, %s4758_s6  ;;  %v1262_v57 = vrot.slane %v1155_v52, 5  ;;  %v1260_v0 = vsel %vm5080_vm6, %v1258_v55, %v1259_v56  ;;  %v1265_v2 = vrot.slane %v1156_v61, 5  ;;  %v1170_v61 = vld [vmem:[%s4846_s30 + $0x88] sm:$0xf] }
  0xb4   : > { %1321 = vrot.lane.b32.xlu0 %v1215_v62, %s4758_s6  ;;  %v1157_v62 = vld [vmem:[%s4846_s30 + $0x54] sm:$0xf] }
  0xb5   : > { %v697_v9 = vpop.permute.xlu1 %696  ;;  %v1264_v1 = vrot.slane %v1262_v57, 4  ;;  %v1263_v15 = vsel %vm5080_vm6, %v1261_v8, %v1262_v57  ;;  %v1267_v16 = vrot.slane %v1265_v2, 4 }
  0xb6   : > { %788 = vst.msk [vmem:[#allocation2 + $0x44] sm:$0xf] %vm770_vm7, %v697_v9  ;;  %v695_v7 = vpop.permute.xlu0 %694  ;;  %v1158_v9 = vld [vmem:[%s4846_s30 + $0x58] sm:$0xf] }
  0xb7   : > { %787 = vst.msk [vmem:[#allocation2 + $0x40] sm:$0xf] %vm770_vm7, %v695_v7  ;;  %1327 = vrot.lane.b32.xlu1 %v1224_v3, %s4758_s6  ;;  %v1268_v3 = vrot.slane %v1157_v62, 5  ;;  %v1266_v11 = vsel %vm5080_vm6, %v1264_v1, %v1265_v2  ;;  %v1271_v7 = vrot.slane %v1158_v9, 5  ;;  %v1467_v62 = vld [vmem:[%s4846_s30 + $0xc] sm:$0xf] }
  0xb8   : > { %1325 = vrot.lane.b32.xlu0 %v1221_v10, %s4758_s6  ;;  %v1159_v10 = vld [vmem:[%s4846_s30 + $0x5c] sm:$0xf]  ;;  %v5415_v9 = vld [vmem:[%s4846_s30 + $0x8c] sm:$0xf] }
  0xb9   : > { %v701_v17 = vpop.permute.xlu1 %700  ;;  %v1270_v12 = vrot.slane %v1268_v3, 4  ;;  %v1269_v26 = vsel %vm5080_vm6, %v1267_v16, %v1268_v3  ;;  %v1273_v28 = vrot.slane %v1271_v7, 4  ;;  %v1466_v3 = vld [vmem:[%s4846_s30 + $0x8] sm:$0xe]  ;;  %v1469_v16 = vld [vmem:[%s4846_s30 + $0x14] sm:$0xf] }
  0xba   : > { %790 = vst.msk [vmem:[#allocation2 + $0x4c] sm:$0xf] %vm770_vm7, %v701_v17  ;;  %v699_v22 = vpop.permute.xlu0 %698  ;;  %v1160_v17 = vld [vmem:[%s4846_s30 + $0x60] sm:$0xf] }
  0xbb   : > { %789 = vst.msk [vmem:[#allocation2 + $0x48] sm:$0xf] %vm770_vm7, %v699_v22  ;;  %1331 = vrot.lane.b32.xlu1 %v1230_v13, %s4758_s6  ;;  %v1274_v13 = vrot.slane %v1159_v10, 5  ;;  %v1272_v20 = vsel %vm5080_vm6, %v1270_v12, %v1271_v7  ;;  %v1277_v22 = vrot.slane %v1160_v17, 5  ;;  %v1516_v12 = vshrl.u32 %v1467_v62, 16 }
  0xbc   : > { %1329 = vrot.lane.b32.xlu0 %v1227_v18, %s4758_s6  ;;  %v1161_v18 = vld [vmem:[%s4846_s30 + $0x64] sm:$0xf]  ;;  %v1519_v7 = vshll.u32 %v1467_v62, 16 }
  0xbd   : > { %v705_v24 = vpop.permute.xlu1 %704  ;;  %v1276_v21 = vrot.slane %v1274_v13, 4  ;;  %v1275_v36 = vsel %vm5080_vm6, %v1273_v28, %v1274_v13  ;;  %v1279_v37 = vrot.slane %v1277_v22, 4  ;;  %v1307_v13 = vrot.slane %v1170_v61, 5 }
  0xbe   : > { %792 = vst.msk [vmem:[#allocation2 + $0x54] sm:$0xf] %vm770_vm7, %v705_v24  ;;  %v703_v33 = vpop.permute.xlu0 %702  ;;  %v1162_v24 = vld [vmem:[%s4846_s30 + $0x68] sm:$0xf] }
  0xbf   : > { %791 = vst.msk [vmem:[#allocation2 + $0x50] sm:$0xf] %vm770_vm7, %v703_v33  ;;  %1335 = vrot.lane.b32.xlu1 %v1236_v23, %s4758_s6  ;;  %v1280_v23 = vrot.slane %v1161_v18, 5  ;;  %v1278_v31 = vsel %vm5080_vm6, %v1276_v21, %v1277_v22  ;;  %v1283_v33 = vrot.slane %v1162_v24, 5  ;;  %v1310_v21 = vrot.slane %v5415_v9, 5 }
  0xc0   : > { %1333 = vrot.lane.b32.xlu0 %v1233_v29, %s4758_s6  ;;  %v1163_v29 = vld [vmem:[%s4846_s30 + $0x6c] sm:$0xf]  ;;  %v1174_v24 = vld [vmem:[%s4846_s30 + $0x98] sm:$0x1] }
  0xc1   : > { %v709_v38 = vpop.permute.xlu1 %708  ;;  %v1282_v32 = vrot.slane %v1280_v23, 4  ;;  %v1281_v46 = vsel %vm5080_vm6, %v1279_v37, %v1280_v23  ;;  %v1285_v47 = vrot.slane %v1283_v33, 4  ;;  %v1539_v37 = vshll.u32 %v1469_v16, 16 }
  0xc2   : > { %794 = vst.msk [vmem:[#allocation2 + $0x5c] sm:$0xf] %vm770_vm7, %v709_v38  ;;  %v707_v43 = vpop.permute.xlu0 %706  ;;  %v1164_v38 = vld [vmem:[%s4846_s30 + $0x70] sm:$0xf] }
  0xc3   : > { %793 = vst.msk [vmem:[#allocation2 + $0x58] sm:$0xf] %vm770_vm7, %v707_v43  ;;  %1339 = vrot.lane.b32.xlu1 %v1242_v34, %s4758_s6  ;;  %v1286_v34 = vrot.slane %v1163_v29, 5  ;;  %v1284_v41 = vsel %vm5080_vm6, %v1282_v32, %v1283_v33  ;;  %v1289_v43 = vrot.slane %v1164_v38, 5  ;;  %v1518_v29 = vrot.slane %v1516_v12, 5 }
  0xc4   : > { %1337 = vrot.lane.b32.xlu0 %v1239_v39, %s4758_s6  ;;  %v1165_v39 = vld [vmem:[%s4846_s30 + $0x74] sm:$0xf]  ;;  %v1536_v32 = vshrl.u32 %v1469_v16, 16 }
  0xc5   : > { %v713_v48 = vpop.permute.xlu1 %712  ;;  %v1288_v42 = vrot.slane %v1286_v34, 4  ;;  %v1287_v56 = vsel %vm5080_vm6, %v1285_v47, %v1286_v34  ;;  %v1291_v57 = vrot.slane %v1289_v43, 4 }
  0xc6   : > { %796 = vst.msk [vmem:[#allocation2 + $0x64] sm:$0xf] %vm770_vm7, %v713_v48  ;;  %v711_v53 = vpop.permute.xlu0 %710  ;;  %v1166_v48 = vld [vmem:[%s4846_s30 + $0x78] sm:$0xf] }
  0xc7   : > { %795 = vst.msk [vmem:[#allocation2 + $0x60] sm:$0xf] %vm770_vm7, %v711_v53  ;;  %1343 = vrot.lane.b32.xlu1 %v1248_v44, %s4758_s6  ;;  %v1292_v44 = vrot.slane %v1165_v39, 5  ;;  %v1290_v51 = vsel %vm5080_vm6, %v1288_v42, %v1289_v43  ;;  %v1295_v53 = vrot.slane %v1166_v48, 5  ;;  %v1471_v42 = vld [vmem:[%s4846_s30 + $0x1c] sm:$0xf] }
  0xc8   : > { %1341 = vrot.lane.b32.xlu0 %v1245_v49, %s4758_s6  ;;  %v1167_v49 = vld [vmem:[%s4846_s30 + $0x7c] sm:$0xf]  ;;  %v1559_v61 = vshll.u32 %v1471_v42, 16 }
  0xc9   : > { %v717_v58 = vpop.permute.xlu1 %716  ;;  %v1294_v52 = vrot.slane %v1292_v44, 4  ;;  %v1297_v8 = vrot.slane %v1295_v53, 4 }
  0xca   : > { %798 = vst.msk [vmem:[#allocation2 + $0x6c] sm:$0xf] %vm770_vm7, %v717_v58  ;;  %v715_v63 = vpop.permute.xlu0 %714  ;;  %v1168_v58 = vld [vmem:[%s4846_s30 + $0x80] sm:$0xf] }
  0xcb   : > { %797 = vst.msk [vmem:[#allocation2 + $0x68] sm:$0xf] %vm770_vm7, %v715_v63  ;;  %1347 = vrot.lane.b32.xlu1 %v1254_v54, %s4758_s6  ;;  %v1298_v54 = vrot.slane %v1167_v49, 5  ;;  %v1296_v63 = vsel %vm5080_vm6, %v1294_v52, %v1295_v53  ;;  %v1301_v1 = vrot.slane %v1168_v58, 5  ;;  %v1473_v53 = vld [vmem:[%s4846_s30 + $0x24] sm:$0xf] }
  0xcc   : > { %1345 = vrot.lane.b32.xlu0 %v1251_v59, %s4758_s6  ;;  %v1169_v59 = vld [vmem:[%s4846_s30 + $0x84] sm:$0xf] }
  0xcd   : > { %v721_v4 = vpop.permute.xlu1 %720  ;;  %v1304_v2 = vrot.slane %v1169_v59, 5  ;;  %v1299_v23 = vsel %vm5080_vm6, %v1297_v8, %v1298_v54 }
  0xce   : > { %800 = vst.msk [vmem:[#allocation2 + $0x74] sm:$0xf] %vm770_vm7, %v721_v4  ;;  %v719_v27 = vpop.permute.xlu0 %718 }
  0xcf   : > { %799 = vst.msk [vmem:[#allocation2 + $0x70] sm:$0xf] %vm770_vm7, %v719_v27  ;;  %1351 = vrot.lane.b32.xlu1 %v1260_v0, %s4758_s6  ;;  %v1300_v0 = vrot.slane %v1298_v54, 4  ;;  %v5419_v27 = vld [vmem:[%s4846_s30 + $0x94] sm:$0xf]  ;;  %v1306_v18 = vrot.slane %v1304_v2, 4 }
  0xd0   : > { %1349 = vrot.lane.b32.xlu0 %v1257_v5, %s4758_s6  ;;  %v1293_v5 = vsel %vm5080_vm6, %v1291_v57, %v1292_v44  ;;  %v1556_v57 = vshrl.u32 %v1471_v42, 16 }
  0xd1   : > { %v725_v14 = vpop.permute.xlu1 %724  ;;  %v1302_v17 = vsel %vm5080_vm6, %v1300_v0, %v1301_v1  ;;  %v1308_v38 = vsel %vm5080_vm6, %v1306_v18, %v1307_v13  ;;  %v1474_v0 = vld [vmem:[%s4846_s30 + $0x28] sm:$0xf] }
  0xd2   : > { %802 = vst.msk [vmem:[#allocation2 + $0x7c] sm:$0xf] %vm770_vm7, %v725_v14  ;;  %v723_v19 = vpop.permute.xlu0 %722  ;;  %v1507_v14 = vshrl.u32 %v1466_v3, 16  ;;  %v1586_v16 = vshrl.u32 %v1474_v0, 16 }
  0xd3   : > { %801 = vst.msk [vmem:[#allocation2 + $0x78] sm:$0xf] %vm770_vm7, %v723_v19  ;;  %1355 = vrot.lane.b32.xlu1 %v1266_v11, %s4758_s6  ;;  %v1468_v11 = vld [vmem:[%s4846_s30 + $0x10] sm:$0xf]  ;;  %v1303_v19 = vrot.slane %v1301_v1, 4  ;;  %v1576_v1 = vshrl.u32 %v1473_v53, 16 }
  0xd4   : > { %1353 = vrot.lane.b32.xlu0 %v1263_v15, %s4758_s6  ;;  %v1510_v15 = vshll.u32 %v1466_v3, 16  ;;  %v1509_v34 = vrot.slane %v1507_v14, 5 }
  0xd5   : > { %v729_v25 = vpop.permute.xlu1 %728  ;;  %v1305_v39 = vsel %vm5080_vm6, %v1303_v19, %v1304_v2  ;;  %v1579_v2 = vshll.u32 %v1473_v53, 16  ;;  %v1578_v18 = vrot.slane %v1576_v1, 5  ;;  %v1480_v1 = vld [vmem:[%s4846_s30 + $0x40] sm:$0xf] }
  0xd6   : > { %804 = vst.msk [vmem:[#allocation2 + $0x84] sm:$0xf] %vm770_vm7, %v729_v25  ;;  %v727_v30 = vpop.permute.xlu0 %726  ;;  %v1316_v25 = vrot.slane %v5419_v27, 5 }
  0xd7   : > { %803 = vst.msk [vmem:[#allocation2 + $0x80] sm:$0xf] %vm770_vm7, %v727_v30  ;;  %1359 = vrot.lane.b32.xlu1 %v1272_v20, %s4758_s6  ;;  %v1172_v20 = vld [vmem:[%s4846_s30 + $0x90] sm:$0xf]  ;;  %v1521_v30 = vrot.slane %v1519_v7, 6  ;;  %v1558_v7 = vrot.slane %v1556_v57, 5 }
  0xd8   : > { %1357 = vrot.lane.b32.xlu0 %v1269_v26, %s4758_s6  ;;  %v1526_v26 = vshrl.u32 %v1468_v11, 16  ;;  %v1313_v33 = vrot.slane %v1172_v20, 5  ;;  %v1318_v44 = vrot.slane %v1316_v25, 4  ;;  %v1581_v19 = vrot.slane %v1579_v2, 6 }
  0xd9   : > { %v733_v35 = vpop.permute.xlu1 %732  ;;  %v5445_v49 = vor.u32 %v1521_v30, %v1518_v29  ;;  %v1589_v20 = vshll.u32 %v1474_v0, 16 }
  0xda   : > { %806 = vst.msk [vmem:[#allocation2 + $0x8c] sm:$0xf] %vm770_vm7, %v733_v35  ;;  %v731_v40 = vpop.permute.xlu0 %730  ;;  %v1512_v35 = vrot.slane %v1510_v15, 6  ;;  %v1528_v47 = vrot.slane %v1526_v26, 5 }
  0xdb   : > { %805 = vst.msk [vmem:[#allocation2 + $0x88] sm:$0xf] %vm770_vm7, %v731_v40  ;;  %1363 = vrot.lane.b32.xlu1 %v1278_v31, %s4758_s6  ;;  %v1529_v31 = vshll.u32 %v1468_v11, 16  ;;  %v1312_v40 = vrot.slane %v1310_v21, 4  ;;  %vm1982_vm7 = vcmask 322816  }
  0xdc   : > { %1361 = vrot.lane.b32.xlu0 %v1275_v36, %s4758_s6  ;;  %v1470_v36 = vld [vmem:[%s4846_s30 + $0x18] sm:$0xf]  ;;  %v1513_v54 = vor.u32 %v1512_v35, %v1509_v34  ;;  %v1588_v35 = vrot.slane %v1586_v16, 5 }
  0xdd   : > { %v996_v45 = vpop.permute.xlu1 %995  ;;  %v1546_v52 = vshrl.u32 %v1470_v36, 16  ;;  %v1314_v58 = vsel %vm5080_vm6, %v1312_v40, %v1313_v33 }
  0xde   : > { %1103 = vst.msk [vmem:[#allocation2 + $0x4] sm:$0xf] %vm1101_vm8, %v996_v45  ;;  %v994_v50 = vpop.permute.xlu0 %993  ;;  %v1319_v45 = vrot.slane %v1174_v24, 5  ;;  %v1514_v27 = vrot.slane %v1513_v54, 4 }
  0xdf   : > { %1102 = vst.msk [vmem:[#allocation2] sm:$0xf] %vm1101_vm8, %v994_v50  ;;  %1367 = vrot.lane.b32.xlu1 %v1284_v41, %s4758_s6  ;;  %v1309_v41 = vrot.slane %v1307_v13, 4  ;;  %v1531_v50 = vrot.slane %v1529_v31, 6  ;;  %v1548_v9 = vrot.slane %v1546_v52, 5  ;;  %v1561_v13 = vrot.slane %v1559_v61, 6 }
  0xe0   : > { %1365 = vrot.lane.b32.xlu0 %v1281_v46, %s4758_s6  ;;  %v1315_v46 = vrot.slane %v1313_v33, 4  ;;  %v1523_v24 = vsel %vm5469_vm11, %v1514_v27, %v5445_v49  ;;  %v1477_v31 = vld [vmem:[%s4846_s30 + $0x34] sm:$0xf] }
  0xe1   : > { %v1000_v55 = vpop.permute.xlu1 %999  ;;  %v1311_v59 = vsel %vm5080_vm6, %v1309_v41, %v1310_v21  ;;  %v1532_v8 = vor.u32 %v1531_v50, %v1528_v47  ;;  %v1478_v50 = vld [vmem:[%s4846_s30 + $0x38] sm:$0xf] }
  0xe2   : > { %1105 = vst.msk [vmem:[#allocation2 + $0xc] sm:$0xf] %vm1101_vm8, %v1000_v55  ;;  %v998_v60 = vpop.permute.xlu0 %997  ;;  %v1541_v55 = vrot.slane %v1539_v37, 6  ;;  %v5484_v37 = vor.u32 %v1581_v19, %v1578_v18  ;;  %v1649_v18 = vshll.u32 %v1480_v1, 16 }
  0xe3   : > { %1104 = vst.msk [vmem:[#allocation2 + $0x8] sm:$0xf] %vm1101_vm8, %v998_v60  ;;  %1371 = vrot.lane.b32.xlu1 %v1290_v51, %s4758_s6  ;;  %v1538_v51 = vrot.slane %v1536_v32, 5  ;;  %v1472_v60 = vld [vmem:[%s4846_s30 + $0x20] sm:$0xf]  ;;  %v1562_v32 = vor.u32 %v1561_v13, %v1558_v7 }
  0xe4   : > { %1369 = vrot.lane.b32.xlu0 %v1287_v56, %s4758_s6  ;;  %v1549_v56 = vshll.u32 %v1470_v36, 16  ;;  %v1566_v14 = vshrl.u32 %v1472_v60, 16  ;;  %v1569_v15 = vshll.u32 %v1472_v60, 16  ;;  %v1584_v53 = vrot.slane %v5484_v37, 4 }
  0xe5   : > { %v1004_v4 = vpop.permute.xlu1 %1003  ;;  %v1542_v11 = vor.u32 %v1541_v55, %v1538_v51 }
  0xe6   : > { %1107 = vst.msk [vmem:[#allocation2 + $0x14] sm:$0xf] %vm1101_vm8, %v1004_v4  ;;  %v1002_v10 = vpop.permute.xlu0 %1001  ;;  %v1320_v4 = vsel %vm5080_vm6, %v1318_v44, %v1319_v45  ;;  %v1551_v12 = vrot.slane %v1549_v56, 6  ;;  %v1568_v33 = vrot.slane %v1566_v14, 5  ;;  %v1571_v34 = vrot.slane %v1569_v15, 6 }
  0xe7   : > { %1106 = vst.msk [vmem:[#allocation2 + $0x10] sm:$0xf] %vm1101_vm8, %v1002_v10  ;;  %1375 = vrot.lane.b32.xlu1 %v1296_v63, %s4758_s6  ;;  %v1317_v63 = vsel %vm5080_vm6, %v1315_v46, %v1316_v25  ;;  %v1475_v10 = vld [vmem:[%s4846_s30 + $0x2c] sm:$0xf]  ;;  %v1476_v25 = vld [vmem:[%s4846_s30 + $0x30] sm:$0xf]  ;;  %vm5689_vm6 = vmor %vm3305_vm4, %vm3306_vm5 }
  0xe8   : > { %1373 = vrot.lane.b32.xlu0 %v1293_v5, %s4758_s6  ;;  %v1524_v5 = vrot.slane %v5445_v49, 4  ;;  %v1596_v21 = vshrl.u32 %v1475_v10, 16  ;;  %v1599_v26 = vshll.u32 %v1475_v10, 16  ;;  %v1544_v29 = vrot.slane %v1542_v11, 4  ;;  %v1479_v56 = vld [vmem:[%s4846_s30 + $0x3c] sm:$0xf] }
  0xe9   : > { %v1008_v22 = vpop.permute.xlu1 %1007  ;;  %v1552_v30 = vor.u32 %v1551_v12, %v1548_v9  ;;  %v1606_v40 = vshrl.u32 %v1476_v25, 16  ;;  %v1616_v44 = vshrl.u32 %v1477_v31, 16  ;;  %v1619_v45 = vshll.u32 %v1477_v31, 16  ;;  %v1481_v10 = vld [vmem:[%s4846_s30 + $0x44] sm:$0xf] }
  0xea   : > { %1109 = vst.msk [vmem:[#allocation2 + $0x1c] sm:$0xf] %vm1101_vm8, %v1008_v22  ;;  %v1006_v28 = vpop.permute.xlu0 %1005  ;;  %v1601_v42 = vrot.slane %v1599_v26, 6  ;;  %v1572_v49 = vor.u32 %v1571_v34, %v1568_v33  ;;  %v1636_v2 = vshrl.u32 %v1479_v56, 16  ;;  %v1483_v14 = vld [vmem:[%s4846_s30 + $0x4c] sm:$0xf] }
  0xeb   : > { %1108 = vst.msk [vmem:[#allocation2 + $0x18] sm:$0xf] %vm1101_vm8, %v1006_v28  ;;  %1379 = vrot.lane.b32.xlu1 %v1302_v17, %s4758_s6  ;;  %v1533_v28 = vsel %vm5469_vm11, %v1524_v5, %v1532_v8  ;;  %v1553_v46 = vsel %vm5469_vm11, %v1544_v29, %v1552_v30  ;;  %v1554_v52 = vrot.slane %v1552_v30, 4  ;;  %v1608_v55 = vrot.slane %v1606_v40, 5  ;;  %v1484_v34 = vld [vmem:[%s4846_s30 + $0x50] sm:$0xf] }
  0xec   : > { %1377 = vrot.lane.b32.xlu0 %v1299_v23, %s4758_s6  ;;  %v1534_v23 = vrot.slane %v1532_v8, 4  ;;  %v1618_v60 = vrot.slane %v1616_v44, 5  ;;  %v1621_v61 = vrot.slane %v1619_v45, 6  ;;  %v1574_v8 = vrot.slane %v1572_v49, 4 }
  0xed   : > { %v1012_v43 = vpop.permute.xlu1 %1011  ;;  %v1563_v5 = vsel %vm5469_vm11, %v1554_v52, %v1562_v32  ;;  %v1638_v19 = vrot.slane %v1636_v2, 5 }
  0xee   : > { %1111 = vst.msk [vmem:[#allocation2 + $0x24] sm:$0xf] %vm1101_vm8, %v1012_v43  ;;  %v1010_v48 = vpop.permute.xlu0 %1009  ;;  %v1609_v43 = vshll.u32 %v1476_v25, 16  ;;  %v1543_v47 = vsel %vm5469_vm11, %v1534_v23, %v1542_v11  ;;  %v1622_v13 = vor.u32 %v1621_v61, %v1618_v60  ;;  %v1659_v23 = vshll.u32 %v1481_v10, 16  ;;  %v1487_v60 = vld [vmem:[%s4846_s30 + $0x5c] sm:$0xf] }
  0xef   : > { %1110 = vst.msk [vmem:[#allocation2 + $0x20] sm:$0xf] %vm1101_vm8, %v1010_v48  ;;  %1383 = vrot.lane.b32.xlu1 %v1308_v38, %s4758_s6  ;;  %v1591_v38 = vrot.slane %v1589_v20, 6  ;;  %v1564_v48 = vrot.slane %v1562_v32, 4  ;;  %v1583_v26 = vsel %vm5469_vm11, %v1574_v8, %v5484_v37  ;;  %v1651_v37 = vrot.slane %v1649_v18, 6 }
  0xf0   : > { %1381 = vrot.lane.b32.xlu0 %v1305_v39, %s4758_s6  ;;  %v1598_v39 = vrot.slane %v1596_v21, 5  ;;  %v1482_v21 = vld [vmem:[%s4846_s30 + $0x48] sm:$0xf]  ;;  %v1624_v32 = vrot.slane %v1622_v13, 4 }
  0xf1   : > { %v1016_v62 = vpop.permute.xlu1 %1015  ;;  %v1592_v54 = vor.u32 %v1591_v38, %v1588_v35  ;;  %v1573_v0 = vsel %vm5469_vm11, %v1564_v48, %v1572_v49  ;;  %v1666_v38 = vshrl.u32 %v1482_v21, 16  ;;  %v1689_v48 = vshll.u32 %v1484_v34, 16 }
  0xf2   : > { %1113 = vst.msk [vmem:[#allocation2 + $0x2c] sm:$0xf] %vm1101_vm8, %v1016_v62  ;;  %v1014_v3 = vpop.permute.xlu0 %1013  ;;  %v1626_v62 = vshrl.u32 %v1478_v50, 16 }
  0xf3   : > { %1112 = vst.msk [vmem:[#allocation2 + $0x28] sm:$0xf] %vm1101_vm8, %v1014_v3  ;;  %1387 = vrot.lane.b32.xlu1 %v1314_v58, %s4758_s6  ;;  %v1602_v58 = vor.u32 %v1601_v42, %v1598_v39  ;;  %v1639_v3 = vshll.u32 %v1479_v56, 16  ;;  %v1594_v9 = vrot.slane %v1592_v54, 4  ;;  %v1593_v11 = vsel %vm5469_vm11, %v1584_v53, %v1592_v54  ;;  %v1485_v39 = vld [vmem:[%s4846_s30 + $0x54] sm:$0xf] }
  0xf4   : > { %1385 = vrot.lane.b32.xlu0 %v1311_v59, %s4758_s6  ;;  %v1611_v59 = vrot.slane %v1609_v43, 6  ;;  %v1628_v15 = vrot.slane %v1626_v62, 5  ;;  %v1661_v42 = vrot.slane %v1659_v23, 6  ;;  %v1669_v43 = vshll.u32 %v1482_v21, 16 }
  0xf5   : > { %v1020_v17 = vpop.permute.xlu1 %1019  ;;  %v1604_v12 = vrot.slane %v1602_v58, 4  ;;  %v1641_v20 = vrot.slane %v1639_v3, 6  ;;  %v1603_v31 = vsel %vm5469_vm11, %v1594_v9, %v1602_v58  ;;  %v1668_v58 = vrot.slane %v1666_v38, 5 }
  0xf6   : > { %1115 = vst.msk [vmem:[#allocation2 + $0x34] sm:$0xf] %vm1101_vm8, %v1020_v17  ;;  %v1018_v22 = vpop.permute.xlu0 %1017  ;;  %v1612_v7 = vor.u32 %v1611_v59, %v1608_v55  ;;  %v1646_v17 = vshrl.u32 %v1480_v1, 16  ;;  %v1486_v55 = vld [vmem:[%s4846_s30 + $0x58] sm:$0xf]  ;;  %v1671_v59 = vrot.slane %v1669_v43, 6 }
  0xf7   : > { %1114 = vst.msk [vmem:[#allocation2 + $0x30] sm:$0xf] %vm1101_vm8, %v1018_v22  ;;  %1391 = vrot.lane.b32.xlu1 %v1320_v4, %s4758_s6  ;;  %v1656_v22 = vshrl.u32 %v1481_v10, 16  ;;  %v1642_v40 = vor.u32 %v1641_v20, %v1638_v19  ;;  %v1691_v1 = vrot.slane %v1689_v48, 6  ;;  %v1709_v8 = vshll.u32 %v1486_v55, 16 }
  0xf8   : > { %1389 = vrot.lane.b32.xlu0 %v1317_v63, %s4758_s6  ;;  %v1629_v63 = vshll.u32 %v1478_v50, 16  ;;  %v1613_v30 = vsel %vm5469_vm11, %v1604_v12, %v1612_v7  ;;  %v1614_v33 = vrot.slane %v1612_v7, 4  ;;  %v1696_v50 = vshrl.u32 %v1485_v39, 16  ;;  %v1488_v7 = vld [vmem:[%s4846_s30 + $0x60] sm:$0xf] }
  0xf9   : > { %v1024_v36 = vpop.permute.xlu1 %1023  ;;  %v1644_v56 = vrot.slane %v1642_v40, 4  ;;  %v1716_v9 = vshrl.u32 %v1487_v60, 16  ;;  %v1719_v10 = vshll.u32 %v1487_v60, 16  ;;  %v1672_v12 = vor.u32 %v1671_v59, %v1668_v58 }
  0xfa   : > { %1117 = vst.msk [vmem:[#allocation2 + $0x3c] sm:$0xf] %vm1101_vm8, %v1024_v36  ;;  %v1022_v41 = vpop.permute.xlu0 %1021  ;;  %v1631_v16 = vrot.slane %v1629_v63, 6  ;;  %v1648_v36 = vrot.slane %v1646_v17, 5  ;;  %v1623_v53 = vsel %vm5469_vm11, %v1614_v33, %v1622_v13  ;;  %v1698_v3 = vrot.slane %v1696_v50, 5 }
  0xfb   : > { %1116 = vst.msk [vmem:[#allocation2 + $0x38] sm:$0xf] %vm1101_vm8, %v1022_v41  ;;  %1876 = vrot.lane.b32.xlu1 %v1533_v28, %s4759_s7  ;;  %v1676_v28 = vshrl.u32 %v1483_v14, 16  ;;  %v1658_v41 = vrot.slane %v1656_v22, 5  ;;  %v1489_v17 = vld [vmem:[%s4846_s30 + $0x64] sm:$0xf] }
  0xfc   : > { %1874 = vrot.lane.b32.xlu0 %v1523_v24, %s4759_s7  ;;  %v1679_v24 = vshll.u32 %v1483_v14, 16  ;;  %v1632_v35 = vor.u32 %v1631_v16, %v1628_v15  ;;  %v1652_v54 = vor.u32 %v1651_v37, %v1648_v36  ;;  %v1711_v22 = vrot.slane %v1709_v8, 6  ;;  %v1491_v50 = vld [vmem:[%s4846_s30 + $0x6c] sm:$0xf] }
  0xfd   : > { %v1028_v51 = vpop.permute.xlu1 %1027  ;;  %v1678_v45 = vrot.slane %v1676_v28, 5  ;;  %v1718_v23 = vrot.slane %v1716_v9, 5  ;;  %v1729_v28 = vshll.u32 %v1488_v7, 16  ;;  %v1674_v33 = vrot.slane %v1672_v12, 4 }
  0xfe   : > { %1119 = vst.msk [vmem:[#allocation2 + $0x44] sm:$0xf] %vm1101_vm8, %v1028_v51  ;;  %v1026_v57 = vpop.permute.xlu0 %1025  ;;  %v1699_v51 = vshll.u32 %v1485_v39, 16  ;;  %v1633_v52 = vsel %vm5469_vm11, %v1624_v32, %v1632_v35  ;;  %v1634_v62 = vrot.slane %v1632_v35, 4  ;;  %v1654_v15 = vrot.slane %v1652_v54, 4 }
  0xff   : > { %1118 = vst.msk [vmem:[#allocation2 + $0x40] sm:$0xf] %vm1101_vm8, %v1026_v57  ;;  %1880 = vrot.lane.b32.xlu1 %v1553_v46, %s4759_s7  ;;  %v1681_v46 = vrot.slane %v1679_v24, 6  ;;  %v1662_v57 = vor.u32 %v1661_v42, %v1658_v41  ;;  %v1731_v41 = vrot.slane %v1729_v28, 6  ;;  %v1756_v60 = vshrl.u32 %v1491_v50, 16 }
 0x100   : > { %1878 = vrot.lane.b32.xlu0 %v1543_v47, %s4759_s7  ;;  %v1686_v47 = vshrl.u32 %v1484_v34, 16  ;;  %v1643_v14 = vsel %vm5469_vm11, %v1634_v62, %v1642_v40  ;;  %v1490_v34 = vld [vmem:[%s4846_s30 + $0x68] sm:$0xf] }
 0x101   : > { %v1032_v4 = vpop.permute.xlu1 %1031  ;;  %v1682_v63 = vor.u32 %v1681_v46, %v1678_v45  ;;  %v1663_v32 = vsel %vm5469_vm11, %v1654_v15, %v1662_v57  ;;  %v1749_v45 = vshll.u32 %v1490_v34, 16  ;;  %v1758_v9 = vrot.slane %v1756_v60, 5  ;;  %v2678_v15 = vld [vmem:[%s4846_s30 + $0x10] sm:$0xc] }
 0x102   : > { %1121 = vst.msk [vmem:[#allocation2 + $0x4c] sm:$0xf] %vm1101_vm8, %v1032_v4  ;;  %v1030_v27 = vpop.permute.xlu0 %1029  ;;  %v1701_v4 = vrot.slane %v1699_v51, 6  ;;  %v2719_v28 = vshrl.u32 %v2678_v15, 16 }
 0x103   : > { %1120 = vst.msk [vmem:[#allocation2 + $0x48] sm:$0xf] %vm1101_vm8, %v1030_v27  ;;  %1884 = vrot.lane.b32.xlu1 %v1573_v0, %s4759_s7  ;;  %v1688_v0 = vrot.slane %v1686_v47, 5  ;;  %v1653_v27 = vsel %vm5469_vm11, %v1644_v56, %v1652_v54  ;;  %v1684_v16 = vrot.slane %v1682_v63, 4  ;;  %v1683_v47 = vsel %vm5469_vm11, %v1674_v33, %v1682_v63 }
 0x104   : > { %1882 = vrot.lane.b32.xlu0 %v1563_v5, %s4759_s7  ;;  %v1706_v5 = vshrl.u32 %v1486_v55, 16  ;;  %v1702_v20 = vor.u32 %v1701_v4, %v1698_v3  ;;  %v1751_v56 = vrot.slane %v1749_v45, 6  ;;  %v2020_v3 = vld [vmem:[%s4846_s30 + $0xc] sm:$0xf] }
 0x105   : > { %v1036_v25 = vpop.permute.xlu1 %1035  ;;  %v1692_v19 = vor.u32 %v1691_v1, %v1688_v0 }
 0x106   : > { %1123 = vst.msk [vmem:[#allocation2 + $0x54] sm:$0xf] %vm1101_vm8, %v1036_v25  ;;  %v1034_v29 = vpop.permute.xlu0 %1033  ;;  %v1708_v21 = vrot.slane %v1706_v5, 5  ;;  %v1721_v25 = vrot.slane %v1719_v10, 6  ;;  %v1704_v38 = vrot.slane %v1702_v20, 4 }
 0x107   : > { %1122 = vst.msk [vmem:[#allocation2 + $0x50] sm:$0xf] %vm1101_vm8, %v1034_v29  ;;  %1888 = vrot.lane.b32.xlu1 %v1593_v11, %s4759_s7  ;;  %v1664_v11 = vrot.slane %v1662_v57, 4  ;;  %v1736_v29 = vshrl.u32 %v1489_v17, 16  ;;  %v1693_v36 = vsel %vm5469_vm11, %v1684_v16, %v1692_v19  ;;  %v1694_v48 = vrot.slane %v1692_v19, 4 }
 0x108   : > { %1886 = vrot.lane.b32.xlu0 %v1583_v26, %s4759_s7  ;;  %v1726_v26 = vshrl.u32 %v1488_v7, 16  ;;  %v1712_v37 = vor.u32 %v1711_v22, %v1708_v21  ;;  %v1722_v39 = vor.u32 %v1721_v25, %v1718_v23  ;;  %v2022_v21 = vld [vmem:[%s4846_s30 + $0x14] sm:$0xf]  ;;  %v2350_v23 = vld [vmem:[%s4846_s30 + $0x10] sm:$0xc] }
 0x109   : > { %v1040_v44 = vpop.permute.xlu1 %1039  ;;  %v1673_v24 = vsel %vm5469_vm11, %v1664_v11, %v1672_v12  ;;  %v1738_v42 = vrot.slane %v1736_v29, 5  ;;  %v1703_v58 = vsel %vm5469_vm11, %v1694_v48, %v1702_v20  ;;  %v2351_v25 = vld [vmem:[%s4846_s30 + $0x14] sm:$0xf] }
 0x10a   : > { %1125 = vst.msk [vmem:[#allocation2 + $0x5c] sm:$0xf] %vm1101_vm8, %v1040_v44  ;;  %v1038_v49 = vpop.permute.xlu0 %1037  ;;  %v1728_v40 = vrot.slane %v1726_v26, 5  ;;  %v1746_v44 = vshrl.u32 %v1490_v34, 16  ;;  %v1713_v51 = vsel %vm5469_vm11, %v1704_v38, %v1712_v37  ;;  %v1714_v59 = vrot.slane %v1712_v37, 4 }
 0x10b   : > { %1124 = vst.msk [vmem:[#allocation2 + $0x58] sm:$0xf] %vm1101_vm8, %v1038_v49  ;;  %1892 = vrot.lane.b32.xlu1 %v1613_v30, %s4759_s7  ;;  %v1739_v30 = vshll.u32 %v1489_v17, 16  ;;  %v2352_v26 = vld [vmem:[%s4846_s30 + $0x18] sm:$0xf]  ;;  %v4281_v38 = vrot.slane %v2350_v23, 10 }
 0x10c   : > { %1890 = vrot.lane.b32.xlu0 %v1603_v31, %s4759_s7  ;;  %v1748_v55 = vrot.slane %v1746_v44, 5  ;;  %v1723_v5 = vsel %vm5469_vm11, %v1714_v59, %v1722_v39 }
 0x10d   : > { %v1044_v61 = vpop.permute.xlu1 %1043  ;;  %v1741_v43 = vrot.slane %v1739_v30, 6 }
 0x10e   : > { %1127 = vst.msk [vmem:[#allocation2 + $0x64] sm:$0xf] %vm1101_vm8, %v1044_v61  ;;  %v1042_v2 = vpop.permute.xlu0 %1041  ;;  %v1759_v61 = vshll.u32 %v1491_v50, 16  ;;  %v1752_v1 = vor.u32 %v1751_v56, %v1748_v55 }
 0x10f   : > { %1126 = vst.msk [vmem:[#allocation2 + $0x60] sm:$0xf] %vm1101_vm8, %v1042_v2  ;;  %1896 = vrot.lane.b32.xlu1 %v1633_v52, %s4759_s7  ;;  %v1732_v52 = vor.u32 %v1731_v41, %v1728_v40  ;;  %v1742_v54 = vor.u32 %v1741_v43, %v1738_v42  ;;  %v2019_v2 = vld [vmem:[%s4846_s30 + $0x8] sm:$0xc]  ;;  %v5617_v40 = vld [vmem:[%s4846_s30 + $0x18] sm:$0xf] }
 0x110   : > { %1894 = vrot.lane.b32.xlu0 %v1623_v53, %s4759_s7  ;;  %v1724_v53 = vrot.slane %v1722_v39, 4  ;;  %v1761_v10 = vrot.slane %v1759_v61, 6  ;;  %v4280_v7 = vrot.slane %v2019_v2, 10  ;;  %v1754_v19 = vrot.slane %v1752_v1, 4  ;;  %v2353_v42 = vld [vmem:[%s4846_s30 + $0x1c] sm:$0xf] }
 0x111   : > { %v1048_v13 = vpop.permute.xlu1 %1047  ;;  %v1744_v0 = vrot.slane %v1742_v54, 4  ;;  %v1734_v8 = vrot.slane %v1732_v52, 4  ;;  %v2426_v39 = vrot.slane %v2351_v25, 6  ;;  %v2429_v41 = vrot.slane %v2352_v26, 6 }
 0x112   : > { %1129 = vst.msk [vmem:[#allocation2 + $0x6c] sm:$0xf] %vm1101_vm8, %v1048_v13  ;;  %v1046_v18 = vpop.permute.xlu0 %1045  ;;  %v1733_v63 = vsel %vm5469_vm11, %v1724_v53, %v1732_v52  ;;  %v2098_v13 = vrot.slane %v2020_v3, 6  ;;  %v5598_v20 = vor.u32 %v1761_v10, %v1758_v9  ;;  %v2721_v43 = vrot.slane %v2719_v28, 6  ;;  %v4656_v28 = vld [vmem:[%s6854_s1 + $0x18] sm:$0xff]  }
 0x113   : > { %1128 = vst.msk [vmem:[#allocation2 + $0x68] sm:$0xf] %vm1101_vm8, %v1046_v18  ;;  %1900 = vrot.lane.b32.xlu1 %v1653_v27, %s4759_s7  ;;  %v2021_v27 = vld [vmem:[%s4846_s30 + $0x10] sm:$0xf]  ;;  %v1753_v12 = vsel %vm5469_vm11, %v1744_v0, %v1752_v1  ;;  %v1743_v17 = vsel %vm5469_vm11, %v1734_v8, %v1742_v54  ;;  %v2107_v53 = vrot.slane %v5617_v40, 6  ;;  %v2427_v56 = vsel %vm5594_vm15, %v4281_v38, %v2426_v39 }
 0x114   : > { %1898 = vrot.lane.b32.xlu0 %v1643_v14, %s4759_s7  ;;  %v2101_v14 = vrot.slane %v2021_v27, 6  ;;  %v2099_v29 = vsel %vm5594_vm15, %v4280_v7, %v2098_v13  ;;  %v1763_v34 = vsel %vm5469_vm11, %v1754_v19, %v5598_v20  ;;  %v2681_v54 = vld [vmem:[%s4846_s30 + $0x1c] sm:$0xf]  ;;  %v2431_v59 = vrot.slane %v2429_v41, 4  ;;  %v2682_v8 = vld [vmem:[%s4846_s30 + $0x20] sm:$0xf] }
 0x115   : > { %v1052_v31 = vpop.permute.xlu1 %1051  ;;  %v2748_v1 = vshrl.u32 %v2681_v54, 16  ;;  %v2751_v2 = vshll.u32 %v2681_v54, 16  ;;  %v4655_v27 = vld [vmem:[%s6854_s1 + $0x20] ss:$0 sps:$4 sm:$0xff]   ;;  %v2758_v23 = vshrl.u32 %v2682_v8, 16  ;;  %v2761_v25 = vshll.u32 %v2682_v8, 16 }
 0x116   : > { %1131 = vst.msk [vmem:[#allocation2 + $0x74] sm:$0xf] %vm1101_vm8, %v1052_v31  ;;  %v1050_v35 = vpop.permute.xlu0 %1049  ;;  %v2103_v30 = vrot.slane %v2101_v14, 4  ;;  %v2104_v31 = vrot.slane %v2022_v21, 6  ;;  %4586 = vmatprep.subr.msk.bf16.mxu0 %vm3786_vm2, %v4655_v27  ;;  %4587 = vmatprep.subr.msk.bf16.mxu1 %vm3786_vm2, %v4655_v27  ;;  %v3233_v38 = vld [vmem:[%s4846_s30 + $0x18] sm:$0xf] }
 0x117   : > { %1130 = vst.msk [vmem:[#allocation2 + $0x70] sm:$0xf] %vm1101_vm8, %v1050_v35  ;;  %1904 = vrot.lane.b32.xlu1 %v1673_v24, %s4759_s7  ;;  %v2722_v24 = vshll.u32 %v2678_v15, 16  ;;  %v2100_v35 = vrot.slane %v2098_v13, 4  ;;  %v2753_v15 = vrot.slane %v2751_v2, 7  ;;  %v4658_v54 = vld [vmem:[%s6854_s1 + $0x8] sm:$0xff]  }
 0x118   : > { %1902 = vrot.lane.b32.xlu0 %v1663_v32, %s4759_s7  ;;  %v2679_v32 = vld [vmem:[%s4846_s30 + $0x14] sm:$0xf]  ;;  %v2106_v52 = vrot.slane %v2104_v31, 4  ;;  %v2025_v40 = vld [vmem:[%s4846_s30 + $0x20] sm:$0xf] }
 0x119   : > { %v1056_v46 = vpop.permute.xlu1 %1055  ;;  %v2724_v44 = vrot.slane %v2722_v24, 7  ;;  %v2728_v45 = vshrl.u32 %v2679_v32, 16 }
 0x11a   : > { %1133 = vst.msk [vmem:[#allocation2 + $0x7c] sm:$0xf] %vm1101_vm8, %v1056_v46  ;;  %v1054_v49 = vpop.permute.xlu0 %1053  ;;  %v2731_v46 = vshll.u32 %v2679_v32, 16  ;;  %v3232_v32 = vld [vmem:[%s4846_s30 + $0x14] sm:$0xf] }
 0x11b   : > { %1132 = vst.msk [vmem:[#allocation2 + $0x78] sm:$0xf] %vm1101_vm8, %v1054_v49  ;;  %1908 = vrot.lane.b32.xlu1 %v1693_v36, %s4759_s7  ;;  %v2680_v36 = vld [vmem:[%s4846_s30 + $0x18] sm:$0xf]  ;;  %v2725_v60 = vor.u32 %v2724_v44, %v2721_v43  ;;  %v2730_v61 = vrot.slane %v2728_v45, 6  ;;  %v3310_v44 = vrot.slane %v3232_v32, 7 }
 0x11c   : > { %1906 = vrot.lane.b32.xlu0 %v1683_v47, %s4759_s7  ;;  %v2105_v47 = vsel %vm5594_vm15, %v2103_v30, %v2104_v31  ;;  %v2738_v48 = vshrl.u32 %v2680_v36, 16  ;;  %v2741_v49 = vshll.u32 %v2680_v36, 16  ;;  %v3231_v31 = vld [vmem:[%s4846_s30 + $0x10] sm:$0x8]  ;;  %v2760_v36 = vrot.slane %v2758_v23, 6 }
 0x11d   : > { %v1060_v57 = vpop.permute.xlu1 %1059  ;;  %v4282_v43 = vrot.slane %v3231_v31, 11  ;;  %v3313_v45 = vrot.slane %v3233_v38, 7  ;;  %v2026_v23 = vld [vmem:[%s4846_s30 + $0x24] sm:$0xf] }
 0x11e   : > { %1135 = vst.msk [vmem:[#allocation2 + $0x84] sm:$0xf] %vm1101_vm8, %v1060_v57  ;;  %v1058_v62 = vpop.permute.xlu0 %1057  ;;  %v2432_v57 = vrot.slane %v2353_v42, 6  ;;  %v2743_v0 = vrot.slane %v2741_v49, 7 }
 0x11f   : > { %1134 = vst.msk [vmem:[#allocation2 + $0x80] sm:$0xf] %vm1101_vm8, %v1058_v62  ;;  %1912 = vrot.lane.b32.xlu1 %v1713_v51, %s4759_s7  ;;  %v2102_v51 = vsel %vm5594_vm15, %v2100_v35, %v2101_v14  ;;  %v2733_v62 = vrot.slane %v2731_v46, 7  ;;  %v2750_v14 = vrot.slane %v2748_v1, 6  ;;  %v4659_v1 = vld [vmem:[%s6854_s1] sm:$0xff]  }
 0x120   : > { %1910 = vrot.lane.b32.xlu0 %v1703_v58, %s4759_s7  ;;  %v2428_v58 = vrot.slane %v2426_v39, 4  ;;  %v2434_v21 = vrot.slane %v2432_v57, 4 }
 0x121   : > { %v1064_v4 = vpop.permute.xlu1 %1063  ;;  %v2734_v7 = vor.u32 %v2733_v62, %v2730_v61  ;;  %v2754_v30 = vor.u32 %v2753_v15, %v2750_v14  ;;  %v2024_v61 = vld [vmem:[%s4846_s30 + $0x1c] sm:$0xf]  ;;  %v5710_v62 = vld [vmem:[%s4846_s30 + $0x58] sm:$0xf] }
 0x122   : > { %1137 = vst.msk [vmem:[#allocation2 + $0x8c] sm:$0xf] %vm1101_vm8, %v1064_v4  ;;  %v1062_v11 = vpop.permute.xlu0 %1061  ;;  %v2108_v4 = vsel %vm5594_vm15, %v2106_v52, %v2107_v53  ;;  %v2430_v10 = vsel %vm5594_vm15, %v2428_v58, %v2429_v41  ;;  %v4657_v41 = vld [vmem:[%s6854_s1 + $0x10] sm:$0xff]   ;;  %v2155_v8 = vrot.slane %v5710_v62, 6 }
 0x123   : > { %1136 = vst.msk [vmem:[#allocation2 + $0x88] sm:$0xf] %vm1101_vm8, %v1062_v11  ;;  %1916 = vrot.lane.b32.xlu1 %v1733_v63, %s4759_s7  ;;  %v2740_v63 = vrot.slane %v2738_v48, 6  ;;  %v2433_v11 = vsel %vm5594_vm15, %v2431_v59, %v2432_v57  ;;  %v2736_v35 = vrot.slane %v2734_v7, 4  ;;  %v2756_v49 = vrot.slane %v2754_v30, 4 }
 0x124   : > { %1914 = vrot.lane.b32.xlu0 %v1723_v5, %s4759_s7  ;;  %v5640_v5 = vld [vmem:[%s4846_s30 + $0x20] sm:$0xf]  ;;  %vm2313_vm8 = vcmask 388416  }
 0x125   : > { %v1324_v16 = vpop.permute.xlu1 %1323  ;;  %v2744_v13 = vor.u32 %v2743_v0, %v2740_v63  ;;  %v5714_v0 = vld [vmem:[%s4846_s30 + $0x20] sm:$0xf] }
 0x126   : > { %1431 = vst.msk [vmem:[#allocation2 + $0x4] sm:$0xf] %vm1429_vm14, %v1324_v16  ;;  %v1322_v22 = vpop.permute.xlu0 %1321  ;;  %v3788_v16 = vsel %vm3786_vm2, %v4655_v27, 0 }
 0x127   : > { %1430 = vst.msk [vmem:[#allocation2] sm:$0xf] %vm1429_vm14, %v1322_v22  ;;  %1920 = vrot.lane.b32.xlu1 %v1753_v12, %s4759_s7  ;;  %v2726_v12 = vrot.slane %v2725_v60, 4  ;;  %v2435_v22 = vrot.slane %v5640_v5, 6  ;;  %4531 = vmatpush3.bf16.msra.mxu0 %v3788_v16  ;;  %v3312_v60 = vrot.slane %v3310_v44, 4 }
 0x128   : > { %1918 = vrot.lane.b32.xlu0 %v1743_v17, %s4759_s7  ;;  %4581 = vmatpush3.bf16.msra.mxu1 %v3788_v16  ;;  %v2371_v5 = vld [vmem:[%s4846_s30 + $0x64] sm:$0xf] }
 0x129   : > { %v1328_v33 = vpop.permute.xlu1 %1327  ;;  %v2735_v24 = vsel %vm5656_vm3, %v2726_v12, %v2734_v7  ;;  %4532 = vmatprep.subr.bf16.mxu0 %v4656_v28  ;;  %4577 = vmatprep.subr.bf16.mxu1 %v4656_v28  ;;  %v2040_v12 = vld [vmem:[%s4846_s30 + $0x5c] sm:$0xf] }
 0x12a   : > { %1433 = vst.msk [vmem:[#allocation2 + $0xc] sm:$0xf] %vm1429_vm14, %v1328_v33  ;;  %v1326_v37 = vpop.permute.xlu0 %1325  ;;  %v2158_v14 = vrot.slane %v2040_v12, 6  ;;  %v2357_v12 = vld [vmem:[%s4846_s30 + $0x2c] sm:$0xf] }
 0x12b   : > { %1432 = vst.msk [vmem:[#allocation2 + $0x8] sm:$0xf] %vm1429_vm14, %v1326_v37  ;;  %2205 = vrot.lane.b32.xlu1 %v2099_v29, %s4760_s8  ;;  %v2746_v29 = vrot.slane %v2744_v13, 4  ;;  %v2763_v37 = vrot.slane %v2761_v25, 7  ;;  %4533 = vmatpush3.bf16.msra.mxu0 %v4656_v28 }
 0x12c   : > { %1922 = vrot.lane.b32.xlu0 %v1763_v34, %s4759_s7  ;;  %v2436_v34 = vsel %vm5594_vm15, %v2434_v21, %v2435_v22  ;;  %4582 = vmatpush3.bf16.msra.mxu1 %v4656_v28  ;;  %v2113_v21 = vrot.slane %v2025_v40, 6  ;;  %v2160_v32 = vrot.slane %v2158_v14, 4 }
 0x12d   : > { %v1332_v50 = vpop.permute.xlu1 %1331  ;;  %v2755_v42 = vsel %vm5656_vm3, %v2746_v29, %v2754_v30  ;;  %4534 = vmatprep.subr.bf16.mxu0 %v4657_v41  ;;  %4578 = vmatprep.subr.bf16.mxu1 %v4657_v41  ;;  %v2116_v29 = vrot.slane %v2026_v23, 6 }
 0x12e   : > { %1435 = vst.msk [vmem:[#allocation2 + $0x14] sm:$0xf] %vm1429_vm14, %v1332_v50  ;;  %v1330_v55 = vpop.permute.xlu0 %1329  ;;  %v5693_v50 = vor.u32 %v2763_v37, %v2760_v36  ;;  %v5757_v36 = vld [vmem:[%s4846_s30 + $0x28] sm:$0xf] }
 0x12f   : > { %1434 = vst.msk [vmem:[#allocation2 + $0x10] sm:$0xf] %vm1429_vm14, %v1330_v55  ;;  %2209 = vrot.lane.b32.xlu1 %v2105_v47, %s4760_s8  ;;  %v2745_v47 = vsel %vm5656_vm3, %v2736_v35, %v2744_v13  ;;  %4535 = vmatpush3.bf16.msra.mxu0 %v4657_v41  ;;  %v3311_v55 = vsel %vm5689_vm6, %v4282_v43, %v3310_v44  ;;  %v2157_v13 = vrot.slane %v2155_v8, 4  ;;  %v2118_v44 = vrot.slane %v2116_v29, 4 }
 0x130   : > { %2207 = vrot.lane.b32.xlu0 %v2102_v51, %s4760_s8  ;;  %v3234_v51 = vld [vmem:[%s4846_s30 + $0x1c] sm:$0xf]  ;;  %4583 = vmatpush3.bf16.msra.mxu1 %v4657_v41  ;;  %v2765_v59 = vsel %vm5656_vm3, %v2756_v49, %v5693_v50  ;;  %v2355_v41 = vld [vmem:[%s4846_s30 + $0x24] sm:$0xf]  ;;  %v5773_v49 = vld [vmem:[%s4846_s30 + $0x68] sm:$0xf] }
 0x131   : > { %v1336_v3 = vpop.permute.xlu1 %1335  ;;  %v3316_v57 = vrot.slane %v3234_v51, 7  ;;  %4536 = vmatprep.subr.bf16.mxu0 %v4658_v54  ;;  %4579 = vmatprep.subr.bf16.mxu1 %v4658_v54  ;;  %v2159_v28 = vsel %vm5594_vm15, %v2157_v13, %v2158_v14  ;;  %v2437_v51 = vrot.slane %v2435_v22, 4  ;;  %v2356_v22 = vld [vmem:[%s4846_s30 + $0x28] sm:$0xf] }
 0x132   : > { %1437 = vst.msk [vmem:[#allocation2 + $0x1c] sm:$0xf] %vm1429_vm14, %v1336_v3  ;;  %v1334_v9 = vpop.permute.xlu0 %1333  ;;  %v2109_v3 = vrot.slane %v2107_v53, 4  ;;  %v2372_v13 = vld [vmem:[%s4846_s30 + $0x68] sm:$0xf] }
 0x133   : > { %1436 = vst.msk [vmem:[#allocation2 + $0x18] sm:$0xf] %vm1429_vm14, %v1334_v9  ;;  %2533 = vrot.lane.b32.xlu1 %v2427_v56, %s4761_s11  ;;  %v3315_v56 = vrot.slane %v3313_v45, 4  ;;  %4537 = vmatpush3.bf16.msra.mxu0 %v4658_v54  ;;  %v3318_v27 = vrot.slane %v3316_v57, 4 }
 0x134   : > { %2211 = vrot.lane.b32.xlu0 %v2108_v4, %s4760_s8  ;;  %4584 = vmatpush3.bf16.msra.mxu1 %v4658_v54  ;;  %v2110_v4 = vrot.slane %v2024_v61, 6  ;;  %v2683_v61 = vld [vmem:[%s4846_s30 + $0x24] sm:$0xf] }
 0x135   : > { %v1340_v17 = vpop.permute.xlu1 %1339  ;;  %v3317_v2 = vsel %vm5689_vm6, %v3315_v56, %v3316_v57  ;;  %4538 = vmatprep.subr.bf16.mxu0 %v4659_v1  ;;  %4580 = vmatprep.subr.bf16.mxu1 %v4659_v1  ;;  %v2771_v40 = vshll.u32 %v2683_v61, 16 }
 0x136   : > { %1439 = vst.msk [vmem:[#allocation2 + $0x24] sm:$0xf] %vm1429_vm14, %v1340_v17  ;;  %v1338_v26 = vpop.permute.xlu0 %1337  ;;  %v2111_v53 = vsel %vm5594_vm15, %v2109_v3, %v2110_v4  ;;  %v2112_v17 = vrot.slane %v2110_v4, 4  ;;  %v2486_v3 = vrot.slane %v2371_v5, 6  ;;  %v2700_v5 = vld [vmem:[%s4846_s30 + $0x68] sm:$0xf] }
 0x137   : > { %1438 = vst.msk [vmem:[#allocation2 + $0x20] sm:$0xf] %vm1429_vm14, %v1338_v26  ;;  %2537 = vrot.lane.b32.xlu1 %v2433_v11, %s4761_s11  ;;  %v3319_v11 = vrot.slane %v5714_v0, 7  ;;  %4539 = vmatpush3.bf16.msra.mxu0 %v4659_v1  ;;  %v2041_v26 = vld [vmem:[%s4846_s30 + $0x60] sm:$0xf] }
 0x138   : > { %2535 = vrot.lane.b32.xlu0 %v2430_v10, %s4761_s11  ;;  %v3314_v10 = vsel %vm5689_vm6, %v3312_v60, %v3313_v45  ;;  %4585 = vmatpush3.bf16.msra.mxu1 %v4659_v1  ;;  %v2114_v31 = vsel %vm5594_vm15, %v2112_v17, %v2113_v21  ;;  %v2119_v45 = vrot.slane %v5757_v36, 6  ;;  %v2698_v1 = vld [vmem:[%s4846_s30 + $0x60] sm:$0xf]  ;;  %v3238_v0 = vld [vmem:[%s4846_s30 + $0x2c] sm:$0xf] }
 0x139   : > { %v1344_v33 = vpop.permute.xlu1 %1343  ;;  %v3320_v16 = vsel %vm5689_vm6, %v3318_v27, %v3319_v11  ;;  %v2918_v14 = vshrl.u32 %v2698_v1, 16 }
 0x13a   : > { %1441 = vst.msk [vmem:[#allocation2 + $0x2c] sm:$0xf] %vm1429_vm14, %v1344_v33  ;;  %v1342_v39 = vpop.permute.xlu0 %1341  ;;  %v2161_v33 = vrot.slane %v2041_v26, 6  ;;  %v2120_v57 = vsel %vm5594_vm15, %v2118_v44, %v2119_v45  ;;  %v2684_v26 = vld [vmem:[%s4846_s30 + $0x28] sm:$0xf] }
 0x13b   : > { %1440 = vst.msk [vmem:[#allocation2 + $0x28] sm:$0xf] %vm1429_vm14, %v1342_v39  ;;  %3086 = vrot.lane.b32.xlu1 %v2735_v24, %s4762_s26  ;;  %v2115_v24 = vrot.slane %v2113_v21, 4 }
 0x13c   : > { %2539 = vrot.lane.b32.xlu0 %v2436_v34, %s4761_s11  ;;  %v2042_v34 = vld [vmem:[%s4846_s30 + $0x64] sm:$0xf]  ;;  %v2163_v38 = vrot.slane %v2161_v33, 4  ;;  %v2162_v43 = vsel %vm5594_vm15, %v2160_v32, %v2161_v33  ;;  %v2773_v32 = vrot.slane %v2771_v40, 7 }
 0x13d   : > { %v1348_v46 = vpop.permute.xlu1 %1347  ;;  %v2117_v37 = vsel %vm5594_vm15, %v2115_v24, %v2116_v29  ;;  %v2164_v39 = vrot.slane %v2042_v34, 6  ;;  %v2488_v24 = vrot.slane %v2486_v3, 4  ;;  %v2489_v29 = vrot.slane %v2372_v13, 6  ;;  %v5819_v34 = vld [vmem:[%s4846_s30 + $0x30] sm:$0xf] }
 0x13e   : > { %1443 = vst.msk [vmem:[#allocation2 + $0x34] sm:$0xf] %vm1429_vm14, %v1348_v46  ;;  %v1346_v52 = vpop.permute.xlu0 %1345  ;;  %v5769_v46 = vld [vmem:[%s4846_s30 + $0x60] sm:$0xf] }
 0x13f   : > { %1442 = vst.msk [vmem:[#allocation2 + $0x30] sm:$0xf] %vm1429_vm14, %v1346_v52  ;;  %3090 = vrot.lane.b32.xlu1 %v2755_v42, %s4762_s26  ;;  %v2438_v52 = vrot.slane %v2355_v41, 6  ;;  %v2165_v54 = vsel %vm5594_vm15, %v2163_v38, %v2164_v39  ;;  %v2778_v41 = vshrl.u32 %v2684_v26, 16  ;;  %v2491_v44 = vrot.slane %v2489_v29, 4 }
 0x140   : > { %3088 = vrot.lane.b32.xlu0 %v2745_v47, %s4762_s26 }
 0x141   : > { %v1352_v58 = vpop.permute.xlu1 %1351  ;;  %v2440_v4 = vrot.slane %v2438_v52, 4 }
 0x142   : > { %1445 = vst.msk [vmem:[#allocation2 + $0x3c] sm:$0xf] %vm1429_vm14, %v1352_v58  ;;  %v1350_v63 = vpop.permute.xlu0 %1349  ;;  %v2166_v58 = vrot.slane %v2164_v39, 4 }
 0x143   : > { %1444 = vst.msk [vmem:[#allocation2 + $0x38] sm:$0xf] %vm1429_vm14, %v1350_v63  ;;  %3417 = vrot.lane.b32.xlu1 %v3311_v55, %s4763_s5  ;;  %v2483_v55 = vrot.slane %v5769_v46, 6  ;;  %v2439_v63 = vsel %vm5594_vm15, %v2437_v51, %v2438_v52  ;;  %v2685_v51 = vld [vmem:[%s4846_s30 + $0x2c] sm:$0xf] }
 0x144   : > { %3092 = vrot.lane.b32.xlu0 %v2765_v59, %s4762_s26  ;;  %v2167_v59 = vrot.slane %v5773_v49, 6 }
 0x145   : > { %v1356_v9 = vpop.permute.xlu1 %1355 }
 0x146   : > { %1447 = vst.msk [vmem:[#allocation2 + $0x44] sm:$0xf] %vm1429_vm14, %v1356_v9  ;;  %v1354_v7 = vpop.permute.xlu0 %1353  ;;  %v2441_v9 = vrot.slane %v2356_v22, 6  ;;  %v2168_v27 = vsel %vm5594_vm15, %v2166_v58, %v2167_v59  ;;  %v2766_v58 = vrot.slane %v5693_v50, 4  ;;  %v2791_v50 = vshll.u32 %v2685_v51, 16 }
 0x147   : > { %1446 = vst.msk [vmem:[#allocation2 + $0x40] sm:$0xf] %vm1429_vm14, %v1354_v7  ;;  %3421 = vrot.lane.b32.xlu1 %v3317_v2, %s4763_s5  ;;  %v2485_v2 = vrot.slane %v2483_v55, 4  ;;  %v2768_v7 = vshrl.u32 %v2683_v61, 16  ;;  %v5834_v61 = vld [vmem:[%s4846_s30 + $0x70] sm:$0xf] }
 0x148   : > { %3419 = vrot.lane.b32.xlu0 %v3314_v10, %s4763_s5  ;;  %v2442_v21 = vsel %vm5594_vm15, %v2440_v4, %v2441_v9  ;;  %v2443_v23 = vrot.slane %v2441_v9, 4  ;;  %v2788_v9 = vshrl.u32 %v2685_v51, 16  ;;  %v2495_v13 = vrot.slane %v5834_v61, 6 }
 0x149   : > { %v1360_v15 = vpop.permute.xlu1 %1359  ;;  %v2487_v17 = vsel %vm5594_vm15, %v2485_v2, %v2486_v3  ;;  %v2780_v3 = vrot.slane %v2778_v41, 6  ;;  %v2702_v41 = vld [vmem:[%s4846_s30 + $0x70] sm:$0xf] }
 0x14a   : > { %1449 = vst.msk [vmem:[#allocation2 + $0x4c] sm:$0xf] %vm1429_vm14, %v1360_v15  ;;  %v1358_v25 = vpop.permute.xlu0 %1357  ;;  %v2921_v15 = vshll.u32 %v2698_v1, 16 }
 0x14b   : > { %1448 = vst.msk [vmem:[#allocation2 + $0x48] sm:$0xf] %vm1429_vm14, %v1358_v25  ;;  %2213 = vrot.lane.b32.xlu1 %v2111_v53, %s4760_s8  ;;  %v2444_v25 = vrot.slane %v2357_v12, 6  ;;  %v2941_v12 = vshll.u32 %v2700_v5, 16 }
 0x14c   : > { %3423 = vrot.lane.b32.xlu0 %v3320_v16, %s4763_s5  ;;  %v2699_v16 = vld [vmem:[%s4846_s30 + $0x64] sm:$0xf] }
 0x14d   : > { %v1364_v30 = vpop.permute.xlu1 %1363  ;;  %v2928_v38 = vshrl.u32 %v2699_v16, 16  ;;  %v2931_v39 = vshll.u32 %v2699_v16, 16 }
 0x14e   : > { %1451 = vst.msk [vmem:[#allocation2 + $0x54] sm:$0xf] %vm1429_vm14, %v1364_v30  ;;  %v1362_v35 = vpop.permute.xlu0 %1361  ;;  %v2373_v30 = vld [vmem:[%s4846_s30 + $0x6c] sm:$0xf] }
 0x14f   : > { %1450 = vst.msk [vmem:[#allocation2 + $0x50] sm:$0xf] %vm1429_vm14, %v1362_v35  ;;  %2245 = vrot.lane.b32.xlu1 %v2159_v28, %s4760_s8  ;;  %v2920_v35 = vrot.slane %v2918_v14, 6  ;;  %v2930_v1 = vrot.slane %v2928_v38, 6  ;;  %v2933_v2 = vrot.slane %v2931_v39, 7 }
 0x150   : > { %2215 = vrot.lane.b32.xlu0 %v2114_v31, %s4760_s8  ;;  %v2770_v31 = vrot.slane %v2768_v7, 6  ;;  %v2701_v14 = vld [vmem:[%s4846_s30 + $0x6c] sm:$0xf] }
 0x151   : > { %v1368_v42 = vpop.permute.xlu1 %1367 }
 0x152   : > { %1453 = vst.msk [vmem:[#allocation2 + $0x5c] sm:$0xf] %vm1429_vm14, %v1368_v42  ;;  %v1366_v47 = vpop.permute.xlu0 %1365  ;;  %v2781_v42 = vshll.u32 %v2684_v26, 16 }
 0x153   : > { %1452 = vst.msk [vmem:[#allocation2 + $0x58] sm:$0xf] %vm1429_vm14, %v1366_v47  ;;  %2217 = vrot.lane.b32.xlu1 %v2117_v37, %s4760_s8  ;;  %v2923_v37 = vrot.slane %v2921_v15, 7  ;;  %v2492_v47 = vrot.slane %v2373_v30, 6  ;;  %v2943_v30 = vrot.slane %v2941_v12, 7 }
 0x154   : > { %2247 = vrot.lane.b32.xlu0 %v2162_v43, %s4760_s8  ;;  %v2445_v43 = vsel %vm5594_vm15, %v2443_v23, %v2444_v25  ;;  %v2783_v4 = vrot.slane %v2781_v42, 7  ;;  %v2686_v23 = vld [vmem:[%s4846_s30 + $0x30] sm:$0xf] }
 0x155   : > { %v1372_v56 = vpop.permute.xlu1 %1371  ;;  %v2801_v38 = vshll.u32 %v2686_v23, 16 }
 0x156   : > { %1455 = vst.msk [vmem:[#allocation2 + $0x64] sm:$0xf] %vm1429_vm14, %v1372_v56  ;;  %v1370_v60 = vpop.permute.xlu0 %1369  ;;  %v2446_v56 = vrot.slane %v2444_v25, 4  ;;  %v2934_v25 = vor.u32 %v2933_v2, %v2930_v1  ;;  %v2784_v26 = vor.u32 %v2783_v4, %v2780_v3  ;;  %v2961_v1 = vshll.u32 %v2702_v41, 16 }
 0x157   : > { %1454 = vst.msk [vmem:[#allocation2 + $0x60] sm:$0xf] %vm1429_vm14, %v1370_v60  ;;  %2249 = vrot.lane.b32.xlu1 %v2165_v54, %s4760_s8  ;;  %v2490_v54 = vsel %vm5594_vm15, %v2488_v24, %v2489_v29  ;;  %v2774_v60 = vor.u32 %v2773_v32, %v2770_v31  ;;  %v2793_v24 = vrot.slane %v2791_v50, 7  ;;  %v2948_v31 = vshrl.u32 %v2701_v14, 16 }
 0x158   : > { %2219 = vrot.lane.b32.xlu0 %v2120_v57, %s4760_s8  ;;  %v2447_v57 = vrot.slane %v5819_v34, 6  ;;  %v2951_v32 = vshll.u32 %v2701_v14, 16  ;;  %v5882_v14 = vld [vmem:[%s4846_s30 + $0x60] sm:$0xf] }
 0x159   : > { %v1376_v10 = vpop.permute.xlu1 %1375  ;;  %v2775_v16 = vsel %vm5656_vm3, %v2766_v58, %v2774_v60 }
 0x15a   : > { %1457 = vst.msk [vmem:[#allocation2 + $0x6c] sm:$0xf] %vm1429_vm14, %v1376_v10  ;;  %v1374_v53 = vpop.permute.xlu0 %1373  ;;  %v2493_v10 = vsel %vm5594_vm15, %v2491_v44, %v2492_v47  ;;  %v2448_v40 = vsel %vm5594_vm15, %v2446_v56, %v2447_v57  ;;  %v2786_v44 = vrot.slane %v2784_v26, 4  ;;  %v2953_v56 = vrot.slane %v2951_v32, 7 }
 0x15b   : > { %1456 = vst.msk [vmem:[#allocation2 + $0x68] sm:$0xf] %vm1429_vm14, %v1374_v53  ;;  %2541 = vrot.lane.b32.xlu1 %v2439_v63, %s4761_s11  ;;  %v5836_v63 = vor.u32 %v2923_v37, %v2920_v35  ;;  %v2494_v53 = vrot.slane %v2492_v47, 4  ;;  %v2798_v37 = vshrl.u32 %v2686_v23, 16  ;;  %v2936_v47 = vrot.slane %v2934_v25, 4 }
 0x15c   : > { %2251 = vrot.lane.b32.xlu0 %v2168_v27, %s4760_s8  ;;  %v2938_v27 = vshrl.u32 %v2700_v5, 16  ;;  %v3367_v23 = vrot.slane %v5882_v14, 7 }
 0x15d   : > { %v1380_v28 = vpop.permute.xlu1 %1379  ;;  %v2496_v35 = vsel %vm5594_vm15, %v2494_v53, %v2495_v13  ;;  %v2800_v5 = vrot.slane %v2798_v37, 6  ;;  %v2963_v53 = vrot.slane %v2961_v1, 7  ;;  %v1492_v37 = vld [vmem:[%s4846_s30 + $0x70] sm:$0xf] }
 0x15e   : > { %1459 = vst.msk [vmem:[#allocation2 + $0x74] sm:$0xf] %vm1429_vm14, %v1380_v28  ;;  %v1378_v33 = vpop.permute.xlu0 %1377  ;;  %v2790_v28 = vrot.slane %v2788_v9, 6  ;;  %v2940_v29 = vrot.slane %v2938_v27, 6  ;;  %v3369_v32 = vrot.slane %v3367_v23, 4 }
 0x15f   : > { %1458 = vst.msk [vmem:[#allocation2 + $0x70] sm:$0xf] %vm1429_vm14, %v1378_v33  ;;  %2573 = vrot.lane.b32.xlu1 %v2487_v17, %s4761_s11  ;;  %v2926_v17 = vrot.slane %v5836_v63, 4 }
 0x160   : > { %2543 = vrot.lane.b32.xlu0 %v2442_v21, %s4761_s11  ;;  %v2776_v21 = vrot.slane %v2774_v60, 4  ;;  %v2794_v51 = vor.u32 %v2793_v24, %v2790_v28  ;;  %v2958_v60 = vshrl.u32 %v2702_v41, 16 }
 0x161   : > { %v1384_v52 = vpop.permute.xlu1 %1383  ;;  %v2935_v42 = vsel %vm5656_vm3, %v2926_v17, %v2934_v25  ;;  %v3321_v17 = vrot.slane %v3319_v11, 4 }
 0x162   : > { %1461 = vst.msk [vmem:[#allocation2 + $0x7c] sm:$0xf] %vm1429_vm14, %v1384_v52  ;;  %v1382_v22 = vpop.permute.xlu0 %1381  ;;  %v2944_v52 = vor.u32 %v2943_v30, %v2940_v29  ;;  %v2795_v3 = vsel %vm5656_vm3, %v2786_v44, %v2794_v51  ;;  %v2796_v50 = vrot.slane %v2794_v51, 4  ;;  %v3252_v29 = vld [vmem:[%s4846_s30 + $0x64] sm:$0xf] }
 0x163   : > { %1460 = vst.msk [vmem:[#allocation2 + $0x78] sm:$0xf] %vm1429_vm14, %v1382_v22  ;;  %2545 = vrot.lane.b32.xlu1 %v2445_v43, %s4761_s11  ;;  %v2785_v43 = vsel %vm5656_vm3, %v2776_v21, %v2784_v26  ;;  %v2803_v22 = vrot.slane %v2801_v38, 7  ;;  %v3237_v30 = vld [vmem:[%s4846_s30 + $0x28] sm:$0xf] }
 0x164   : > { %2575 = vrot.lane.b32.xlu0 %v2490_v54, %s4761_s11  ;;  %v2950_v54 = vrot.slane %v2948_v31, 6  ;;  %v2946_v4 = vrot.slane %v2944_v52, 4  ;;  %v2945_v27 = vsel %vm5656_vm3, %v2936_v47, %v2944_v52  ;;  %v3328_v47 = vrot.slane %v3238_v0, 7  ;;  %v3253_v51 = vld [vmem:[%s4846_s30 + $0x68] sm:$0xf] }
 0x165   : > { %v1388_v7 = vpop.permute.xlu1 %1387  ;;  %v5878_v12 = vor.u32 %v2803_v22, %v2800_v5  ;;  %v1766_v52 = vshrl.u32 %v1492_v37, 16 }
 0x166   : > { %1463 = vst.msk [vmem:[#allocation2 + $0x84] sm:$0xf] %vm1429_vm14, %v1388_v7  ;;  %v1386_v15 = vpop.permute.xlu0 %1385  ;;  %v2954_v9 = vor.u32 %v2953_v56, %v2950_v54  ;;  %v3236_v7 = vld [vmem:[%s4846_s30 + $0x24] sm:$0xf]  ;;  %v1769_v54 = vshll.u32 %v1492_v37, 16 }
 0x167   : > { %1462 = vst.msk [vmem:[#allocation2 + $0x80] sm:$0xf] %vm1429_vm14, %v1386_v15  ;;  %2577 = vrot.lane.b32.xlu1 %v2493_v10, %s4761_s11  ;;  %v3322_v21 = vrot.slane %v3236_v7, 7  ;;  %v2805_v26 = vsel %vm5656_vm3, %v2796_v50, %v5878_v12 }
 0x168   : > { %2547 = vrot.lane.b32.xlu0 %v2448_v40, %s4761_s11  ;;  %v2960_v40 = vrot.slane %v2958_v60, 6  ;;  %v2956_v28 = vrot.slane %v2954_v9, 4 }
 0x169   : > { %v1392_v33 = vpop.permute.xlu1 %1391  ;;  %v3323_v11 = vsel %vm5689_vm6, %v3321_v17, %v3322_v21  ;;  %v3324_v41 = vrot.slane %v3322_v21, 4 }
 0x16a   : > { %1465 = vst.msk [vmem:[#allocation2 + $0x8c] sm:$0xf] %vm1429_vm14, %v1392_v33  ;;  %v1390_v39 = vpop.permute.xlu0 %1389  ;;  %v5896_v24 = vor.u32 %v2963_v53, %v2960_v40  ;;  %v3370_v33 = vrot.slane %v3252_v29, 7  ;;  %v1768_v40 = vrot.slane %v1766_v52, 5  ;;  %v1771_v53 = vrot.slane %v1769_v54, 6 }
 0x16b   : > { %1464 = vst.msk [vmem:[#allocation2 + $0x88] sm:$0xf] %vm1429_vm14, %v1390_v39  ;;  %3094 = vrot.lane.b32.xlu1 %v2775_v16, %s4762_s26  ;;  %v2955_v16 = vsel %vm5656_vm3, %v2946_v4, %v2954_v9  ;;  %v1494_v4 = vld [vmem:[%s4846_s30 + $0x78] sm:$0xf] }
 0x16c   : > { %2579 = vrot.lane.b32.xlu0 %v2496_v35, %s4761_s11  ;;  %v3325_v35 = vrot.slane %v3237_v30, 7  ;;  %v2965_v39 = vsel %vm5656_vm3, %v2956_v28, %v5896_v24  ;;  %v3371_v56 = vsel %vm5689_vm6, %v3369_v32, %v3370_v33  ;;  %v1786_v17 = vshrl.u32 %v1494_v4, 16 }
 0x16d   : > { %v1877_v58 = vpop.permute.xlu1 %1876  ;;  %v1789_v21 = vshll.u32 %v1494_v4, 16  ;;  %v3330_v28 = vrot.slane %v3328_v47, 4  ;;  %v1772_v32 = vor.u32 %v1771_v53, %v1768_v40  ;;  %v2030_v40 = vld [vmem:[%s4846_s30 + $0x34] sm:$0xf] }
 0x16e   : > { %1984 = vst.msk [vmem:[#allocation2 + $0x4] sm:$0xf] %vm1982_vm7, %v1877_v58  ;;  %v1875_v2 = vpop.permute.xlu0 %1874  ;;  %v3327_v44 = vrot.slane %v3325_v35, 4  ;;  %v3254_v58 = vld [vmem:[%s4846_s30 + $0x6c] sm:$0xf]  ;;  %v3326_v1 = vsel %vm5689_vm6, %v3324_v41, %v3325_v35  ;;  %v1788_v35 = vrot.slane %v1786_v17, 5 }
 0x16f   : > { %1983 = vst.msk [vmem:[#allocation2] sm:$0xf] %vm1982_vm7, %v1875_v2  ;;  %3126 = vrot.lane.b32.xlu1 %v2935_v42, %s4762_s26  ;;  %v1493_v42 = vld [vmem:[%s4846_s30 + $0x74] sm:$0xf]  ;;  %v3372_v2 = vrot.slane %v3370_v33, 4  ;;  %v3376_v7 = vrot.slane %v3254_v58, 7 }
 0x170   : > { %3096 = vrot.lane.b32.xlu0 %v2785_v43, %s4762_s26  ;;  %v1776_v5 = vshrl.u32 %v1493_v42, 16  ;;  %v1779_v22 = vshll.u32 %v1493_v42, 16  ;;  %v3329_v50 = vsel %vm5689_vm6, %v3327_v44, %v3328_v47  ;;  %v1791_v37 = vrot.slane %v1789_v21, 6 }
 0x171   : > { %v1881_v10 = vpop.permute.xlu1 %1880  ;;  %v3378_v41 = vrot.slane %v3376_v7, 4  ;;  %v1774_v58 = vrot.slane %v1772_v32, 4  ;;  %v2128_v36 = vrot.slane %v2030_v40, 6 }
 0x172   : > { %1986 = vst.msk [vmem:[#allocation2 + $0xc] sm:$0xf] %vm1982_vm7, %v1881_v10  ;;  %v1879_v15 = vpop.permute.xlu0 %1878  ;;  %v5929_v10 = vld [vmem:[%s4846_s30 + $0x30] sm:$0xf] }
 0x173   : > { %1985 = vst.msk [vmem:[#allocation2 + $0x8] sm:$0xf] %vm1982_vm7, %v1879_v15  ;;  %3098 = vrot.lane.b32.xlu1 %v2795_v3, %s4762_s26  ;;  %v3373_v3 = vrot.slane %v3253_v51, 7  ;;  %v1778_v15 = vrot.slane %v1776_v5, 5  ;;  %v3331_v29 = vrot.slane %v5929_v10, 7  ;;  %v5959_v51 = vor.u32 %v1791_v37, %v1788_v35 }
 0x174   : > { %3128 = vrot.lane.b32.xlu0 %v2945_v27, %s4762_s26  ;;  %v2029_v5 = vld [vmem:[%s4846_s30 + $0x30] sm:$0xf]  ;;  %v6004_v37 = vld [vmem:[%s4846_s30 + $0x78] sm:$0xf] }
 0x175   : > { %v1885_v25 = vpop.permute.xlu1 %1884  ;;  %v3375_v27 = vrot.slane %v3373_v3, 4 }
 0x176   : > { %1988 = vst.msk [vmem:[#allocation2 + $0x14] sm:$0xf] %vm1982_vm7, %v1885_v25  ;;  %v1883_v31 = vpop.permute.xlu0 %1882 }
 0x177   : > { %1987 = vst.msk [vmem:[#allocation2 + $0x10] sm:$0xf] %vm1982_vm7, %v1883_v31  ;;  %3130 = vrot.lane.b32.xlu1 %v2955_v16, %s4762_s26  ;;  %v1781_v16 = vrot.slane %v1779_v22, 6  ;;  %v5939_v31 = vld [vmem:[%s4846_s30 + $0x70] sm:$0xf]  ;;  %v3377_v0 = vsel %vm5689_vm6, %v3375_v27, %v3376_v7  ;;  %v2121_v27 = vrot.slane %v2119_v45, 4 }
 0x178   : > { %3100 = vrot.lane.b32.xlu0 %v2805_v26, %s4762_s26  ;;  %v3374_v26 = vsel %vm5689_vm6, %v3372_v2, %v3373_v3  ;;  %v3379_v42 = vrot.slane %v5939_v31, 7  ;;  %v2044_v22 = vld [vmem:[%s4846_s30 + $0x6c] sm:$0xf]  ;;  %v2125_v3 = vrot.slane %v2029_v5, 6  ;;  %v2045_v7 = vld [vmem:[%s4846_s30 + $0x70] sm:$0xf] }
 0x179   : > { %v1889_v38 = vpop.permute.xlu1 %1888  ;;  %v1782_v33 = vor.u32 %v1781_v16, %v1778_v15  ;;  %v2170_v4 = vrot.slane %v2044_v22, 6  ;;  %v2173_v17 = vrot.slane %v2045_v7, 6  ;;  %v2687_v22 = vld [vmem:[%s4846_s30 + $0x34] sm:$0xf]  ;;  %v2361_v7 = vld [vmem:[%s4846_s30 + $0x3c] sm:$0xf] }
 0x17a   : > { %1990 = vst.msk [vmem:[#allocation2 + $0x1c] sm:$0xf] %vm1982_vm7, %v1889_v38  ;;  %v1887_v43 = vpop.permute.xlu0 %1886  ;;  %v2127_v35 = vrot.slane %v2125_v3, 4  ;;  %v2808_v40 = vshrl.u32 %v2687_v22, 16 }
 0x17b   : > { %1989 = vst.msk [vmem:[#allocation2 + $0x18] sm:$0xf] %vm1982_vm7, %v1887_v43  ;;  %3425 = vrot.lane.b32.xlu1 %v3323_v11, %s4763_s5  ;;  %v1764_v11 = vrot.slane %v5598_v20, 4  ;;  %v2028_v43 = vld [vmem:[%s4846_s30 + $0x2c] sm:$0xf]  ;;  %v1784_v47 = vrot.slane %v1782_v33, 4 }
 0x17c   : > { %3132 = vrot.lane.b32.xlu0 %v2965_v39, %s4762_s26  ;;  %v3332_v39 = vsel %vm5689_vm6, %v3330_v28, %v3331_v29  ;;  %v2122_v52 = vrot.slane %v2028_v43, 6  ;;  %v2172_v16 = vrot.slane %v2170_v4, 4  ;;  %v2046_v28 = vld [vmem:[%s4846_s30 + $0x74] sm:$0xf] }
 0x17d   : > { %v1893_v60 = vpop.permute.xlu1 %1892  ;;  %v1773_v44 = vsel %vm5469_vm11, %v1764_v11, %v1772_v32  ;;  %v2130_v11 = vrot.slane %v2128_v36, 4 }
 0x17e   : > { %1992 = vst.msk [vmem:[#allocation2 + $0x24] sm:$0xf] %vm1982_vm7, %v1893_v60  ;;  %v1891_v9 = vpop.permute.xlu0 %1890  ;;  %v2124_v2 = vrot.slane %v2122_v52, 4  ;;  %v2123_v45 = vsel %vm5594_vm15, %v2121_v27, %v2122_v52 }
 0x17f   : > { %1991 = vst.msk [vmem:[#allocation2 + $0x20] sm:$0xf] %vm1982_vm7, %v1891_v9  ;;  %3457 = vrot.lane.b32.xlu1 %v3371_v56, %s4763_s5  ;;  %v3380_v56 = vsel %vm5689_vm6, %v3378_v41, %v3379_v42 }
 0x180   : > { %3427 = vrot.lane.b32.xlu0 %v3326_v1, %s4763_s5  ;;  %v1793_v1 = vsel %vm5469_vm11, %v1784_v47, %v5959_v51  ;;  %v2126_v15 = vsel %vm5594_vm15, %v2124_v2, %v2125_v3  ;;  %v2375_v47 = vld [vmem:[%s4846_s30 + $0x74] sm:$0xf] }
 0x181   : > { %v1897_v25 = vpop.permute.xlu1 %1896 }
 0x182   : > { %1994 = vst.msk [vmem:[#allocation2 + $0x2c] sm:$0xf] %vm1982_vm7, %v1897_v25  ;;  %v1895_v30 = vpop.permute.xlu0 %1894  ;;  %v2169_v25 = vrot.slane %v2167_v59, 4  ;;  %v2176_v59 = vrot.slane %v2046_v28, 6  ;;  %v2456_v28 = vrot.slane %v2361_v7, 6 }
 0x183   : > { %1993 = vst.msk [vmem:[#allocation2 + $0x28] sm:$0xf] %vm1982_vm7, %v1895_v30  ;;  %3429 = vrot.lane.b32.xlu1 %v3329_v50, %s4763_s5  ;;  %v1783_v50 = vsel %vm5469_vm11, %v1774_v58, %v1782_v33  ;;  %v2360_v58 = vld [vmem:[%s4846_s30 + $0x38] sm:$0xf] }
 0x184   : > { %3459 = vrot.lane.b32.xlu0 %v3374_v26, %s4763_s5  ;;  %v5991_v26 = vld [vmem:[%s4846_s30 + $0x38] sm:$0xf]  ;;  %v2171_v33 = vsel %vm5594_vm15, %v2169_v25, %v2170_v4  ;;  %v2178_v43 = vrot.slane %v2176_v59, 4  ;;  %v2453_v3 = vrot.slane %v2360_v58, 6  ;;  %v2449_v4 = vrot.slane %v2447_v57, 4 }
 0x185   : > { %v1901_v38 = vpop.permute.xlu1 %1900  ;;  %v2131_v49 = vrot.slane %v5991_v26, 6  ;;  %v6051_v25 = vld [vmem:[%s4846_s30 + $0x40] sm:$0xf] }
 0x186   : > { %1996 = vst.msk [vmem:[#allocation2 + $0x34] sm:$0xf] %vm1982_vm7, %v1901_v38  ;;  %v1899_v20 = vpop.permute.xlu0 %1898  ;;  %v2359_v38 = vld [vmem:[%s4846_s30 + $0x34] sm:$0xf]  ;;  %v6069_v58 = vld [vmem:[%s4846_s30 + $0x80] sm:$0xf] }
 0x187   : > { %1995 = vst.msk [vmem:[#allocation2 + $0x30] sm:$0xf] %vm1982_vm7, %v1899_v20  ;;  %3461 = vrot.lane.b32.xlu1 %v3377_v0, %s4763_s5  ;;  %v2174_v0 = vsel %vm5594_vm15, %v2172_v16, %v2173_v17  ;;  %v2132_v41 = vsel %vm5594_vm15, %v2130_v11, %v2131_v49  ;;  %v2179_v20 = vrot.slane %v6004_v37, 6  ;;  %v2688_v16 = vld [vmem:[%s4846_s30 + $0x38] sm:$0xf]  ;;  %v2810_v11 = vrot.slane %v2808_v40, 6 }
 0x188   : > { %3431 = vrot.lane.b32.xlu0 %v3332_v39, %s4763_s5 }
 0x189   : > { %v1905_v54 = vpop.permute.xlu1 %1904 }
 0x18a   : > { %1998 = vst.msk [vmem:[#allocation2 + $0x3c] sm:$0xf] %vm1982_vm7, %v1905_v54  ;;  %v1903_v60 = vpop.permute.xlu0 %1902  ;;  %v2129_v54 = vsel %vm5594_vm15, %v2127_v35, %v2128_v36 }
 0x18b   : > { %1997 = vst.msk [vmem:[#allocation2 + $0x38] sm:$0xf] %vm1982_vm7, %v1903_v60  ;;  %1924 = vrot.lane.b32.xlu1 %v1773_v44, %s4759_s7  ;;  %v2450_v44 = vrot.slane %v2359_v38, 6  ;;  %v2498_v60 = vrot.slane %v2375_v47, 6 }
 0x18c   : > { %3463 = vrot.lane.b32.xlu0 %v3380_v56, %s4763_s5  ;;  %v2175_v56 = vrot.slane %v2173_v17, 4  ;;  %v2703_v17 = vld [vmem:[%s4846_s30 + $0x74] sm:$0xf] }
 0x18d   : > { %v1909_v9 = vpop.permute.xlu1 %1908  ;;  %v2452_v2 = vrot.slane %v2450_v44, 4  ;;  %v2500_v34 = vrot.slane %v2498_v60, 4  ;;  %v2968_v38 = vshrl.u32 %v2703_v17, 16 }
 0x18e   : > { %2000 = vst.msk [vmem:[#allocation2 + $0x44] sm:$0xf] %vm1982_vm7, %v1909_v9  ;;  %v1907_v53 = vpop.permute.xlu0 %1906  ;;  %v6032_v9 = vld [vmem:[%s4846_s30 + $0x78] sm:$0xf]  ;;  %v2177_v27 = vsel %vm5594_vm15, %v2175_v56, %v2176_v59  ;;  %v2455_v56 = vrot.slane %v2453_v3, 4 }
 0x18f   : > { %1999 = vst.msk [vmem:[#allocation2 + $0x40] sm:$0xf] %vm1982_vm7, %v1907_v53  ;;  %1928 = vrot.lane.b32.xlu1 %v1793_v1, %s4759_s7  ;;  %v2180_v1 = vsel %vm5594_vm15, %v2178_v43, %v2179_v20  ;;  %v2811_v53 = vshll.u32 %v2687_v22, 16  ;;  %v2501_v57 = vrot.slane %v6032_v9, 6  ;;  %v2454_v36 = vsel %vm5594_vm15, %v2452_v2, %v2453_v3 }
 0x190   : > { %1926 = vrot.lane.b32.xlu0 %v1783_v50, %s4759_s7  ;;  %v2458_v43 = vrot.slane %v2456_v28, 4 }
 0x191   : > { %v1913_v21 = vpop.permute.xlu1 %1912  ;;  %v2813_v59 = vrot.slane %v2811_v53, 7  ;;  %v2502_v61 = vsel %vm5594_vm15, %v2500_v34, %v2501_v57  ;;  %v2507_v53 = vrot.slane %v6069_v58, 6  ;;  %v2457_v34 = vsel %vm5594_vm15, %v2455_v56, %v2456_v28 }
 0x192   : > { %2002 = vst.msk [vmem:[#allocation2 + $0x4c] sm:$0xf] %vm1982_vm7, %v1913_v21  ;;  %v1911_v30 = vpop.permute.xlu0 %1910  ;;  %v2451_v21 = vsel %vm5594_vm15, %v2449_v4, %v2450_v44  ;;  %v2459_v44 = vrot.slane %v6051_v25, 6  ;;  %v2970_v4 = vrot.slane %v2968_v38, 6 }
 0x193   : > { %2001 = vst.msk [vmem:[#allocation2 + $0x48] sm:$0xf] %vm1982_vm7, %v1911_v30  ;;  %2223 = vrot.lane.b32.xlu1 %v2126_v15, %s4760_s8 }
 0x194   : > { %2221 = vrot.lane.b32.xlu0 %v2123_v45, %s4760_s8  ;;  %v2497_v45 = vrot.slane %v2495_v13, 4  ;;  %v2704_v13 = vld [vmem:[%s4846_s30 + $0x78] sm:$0xf]  ;;  %v2460_v7 = vsel %vm5594_vm15, %v2458_v43, %v2459_v44  ;;  %v2706_v43 = vld [vmem:[%s4846_s30 + $0x80] sm:$0xf] }
 0x195   : > { %v1917_v32 = vpop.permute.xlu1 %1916 }
 0x196   : > { %2004 = vst.msk [vmem:[#allocation2 + $0x54] sm:$0xf] %vm1982_vm7, %v1917_v32  ;;  %v1915_v39 = vpop.permute.xlu0 %1914  ;;  %v2818_v32 = vshrl.u32 %v2688_v16, 16 }
 0x197   : > { %2003 = vst.msk [vmem:[#allocation2 + $0x50] sm:$0xf] %vm1982_vm7, %v1915_v39  ;;  %2255 = vrot.lane.b32.xlu1 %v2174_v0, %s4760_s8  ;;  %v6054_v0 = vld [vmem:[%s4846_s30 + $0x7c] sm:$0xf]  ;;  %v2971_v39 = vshll.u32 %v2703_v17, 16  ;;  %v2503_v17 = vrot.slane %v2501_v57, 4 }
 0x198   : > { %2253 = vrot.lane.b32.xlu0 %v2171_v33, %s4760_s8  ;;  %v2821_v33 = vshll.u32 %v2688_v16, 16  ;;  %v2504_v47 = vrot.slane %v6054_v0, 6  ;;  %v2820_v22 = vrot.slane %v2818_v32, 6 }
 0x199   : > { %v1921_v52 = vpop.permute.xlu1 %1920  ;;  %v2973_v9 = vrot.slane %v2971_v39, 7 }
 0x19a   : > { %2006 = vst.msk [vmem:[#allocation2 + $0x5c] sm:$0xf] %vm1982_vm7, %v1921_v52  ;;  %v1919_v5 = vpop.permute.xlu0 %1918  ;;  %v2689_v52 = vld [vmem:[%s4846_s30 + $0x3c] sm:$0xf]  ;;  %v2506_v40 = vrot.slane %v2504_v47, 4 }
 0x19b   : > { %2005 = vst.msk [vmem:[#allocation2 + $0x58] sm:$0xf] %vm1982_vm7, %v1919_v5  ;;  %2227 = vrot.lane.b32.xlu1 %v2132_v41, %s4760_s8  ;;  %v2499_v41 = vsel %vm5594_vm15, %v2497_v45, %v2498_v60  ;;  %v2814_v5 = vor.u32 %v2813_v59, %v2810_v11  ;;  %v2978_v60 = vshrl.u32 %v2704_v13, 16  ;;  %v2831_v3 = vshll.u32 %v2689_v52, 16 }
 0x19c   : > { %2225 = vrot.lane.b32.xlu0 %v2129_v54, %s4760_s8  ;;  %v2974_v0 = vor.u32 %v2973_v9, %v2970_v4  ;;  %v2508_v57 = vsel %vm5594_vm15, %v2506_v40, %v2507_v53  ;;  %v2998_v9 = vshrl.u32 %v2706_v43, 16 }
 0x19d   : > { %v2206_v50 = vpop.permute.xlu1 %2205  ;;  %v2980_v11 = vrot.slane %v2978_v60, 6  ;;  %v3001_v60 = vshll.u32 %v2706_v43, 16 }
 0x19e   : > { %2314 = vst.msk [vmem:[#allocation2] sm:$0xf] %vm2313_vm8, %v2206_v50  ;;  %v1923_v15 = vpop.permute.xlu0 %1922  ;;  %v2981_v50 = vshll.u32 %v2704_v13, 16  ;;  %v2505_v13 = vsel %vm5594_vm15, %v2503_v17, %v2504_v47  ;;  %v2976_v56 = vrot.slane %v2974_v0, 4 }
 0x19f   : > { %2007 = vst.msk [vmem:[#allocation2 + $0x60] sm:$0xf] %vm1982_vm7, %v1923_v15  ;;  %2259 = vrot.lane.b32.xlu1 %v2180_v1, %s4760_s8  ;;  %v2823_v1 = vrot.slane %v2821_v33, 7  ;;  %v2690_v15 = vld [vmem:[%s4846_s30 + $0x40] sm:$0xf]  ;;  %v2833_v33 = vrot.slane %v2831_v3, 7 }
 0x1a0   : > { %2257 = vrot.lane.b32.xlu0 %v2177_v27, %s4760_s8  ;;  %v2828_v27 = vshrl.u32 %v2689_v52, 16  ;;  %v2983_v59 = vrot.slane %v2981_v50, 7  ;;  %v2838_v28 = vshrl.u32 %v2690_v15, 16  ;;  %v2966_v3 = vrot.slane %v5896_v24, 4 }
 0x1a1   : > { %v2210_v30 = vpop.permute.xlu1 %2209  ;;  %v3003_v24 = vrot.slane %v3001_v60, 7 }
 0x1a2   : > { %2316 = vst.msk [vmem:[#allocation2 + $0x8] sm:$0xf] %vm2313_vm8, %v2210_v30  ;;  %v2208_v35 = vpop.permute.xlu0 %2207  ;;  %v6085_v30 = vor.u32 %v2823_v1, %v2820_v22  ;;  %v2830_v32 = vrot.slane %v2828_v27, 6  ;;  %v2984_v22 = vor.u32 %v2983_v59, %v2980_v11 }
 0x1a3   : > { %2315 = vst.msk [vmem:[#allocation2 + $0x4] sm:$0xf] %vm2313_vm8, %v2208_v35  ;;  %2551 = vrot.lane.b32.xlu1 %v2454_v36, %s4761_s11  ;;  %v2816_v36 = vrot.slane %v2814_v5, 4  ;;  %v2841_v35 = vshll.u32 %v2690_v15, 16 }
 0x1a4   : > { %2549 = vrot.lane.b32.xlu0 %v2451_v21, %s4761_s11  ;;  %v2705_v21 = vld [vmem:[%s4846_s30 + $0x7c] sm:$0xf]  ;;  %v2834_v1 = vor.u32 %v2833_v33, %v2830_v32  ;;  %v2985_v40 = vsel %vm5656_vm3, %v2976_v56, %v2984_v22 }
 0x1a5   : > { %v2534_v54 = vpop.permute.xlu1 %2533  ;;  %v2988_v38 = vshrl.u32 %v2705_v21, 16  ;;  %v2991_v39 = vshll.u32 %v2705_v21, 16  ;;  %v2843_v4 = vrot.slane %v2841_v35, 7  ;;  %v2826_v21 = vrot.slane %v6085_v30, 4 }
 0x1a6   : > { %2642 = vst.msk [vmem:[#allocation2] sm:$0xf] %vm2641_vm9, %v2534_v54  ;;  %v2212_v2 = vpop.permute.xlu0 %2211  ;;  %v2825_v54 = vsel %vm5656_vm3, %v2816_v36, %v6085_v30  ;;  %v2975_v36 = vsel %vm5656_vm3, %v2966_v3, %v2974_v0  ;;  %v2986_v35 = vrot.slane %v2984_v22, 4  ;;  %v1496_v3 = vld [vmem:[%s4846_s30 + $0x80] sm:$0xf] }
 0x1a7   : > { %2317 = vst.msk [vmem:[#allocation2 + $0xc] sm:$0xf] %vm2313_vm8, %v2212_v2  ;;  %2583 = vrot.lane.b32.xlu1 %v2502_v61, %s4761_s11  ;;  %v2840_v2 = vrot.slane %v2838_v28, 6  ;;  %v2993_v47 = vrot.slane %v2991_v39, 7  ;;  %v2835_v28 = vsel %vm5656_vm3, %v2826_v21, %v2834_v1  ;;  %v1806_v31 = vshrl.u32 %v1496_v3, 16 }
 0x1a8   : > { %2581 = vrot.lane.b32.xlu0 %v2499_v41, %s4761_s11  ;;  %v2806_v41 = vrot.slane %v5878_v12, 4  ;;  %v2990_v12 = vrot.slane %v2988_v38, 6  ;;  %v3256_v38 = vld [vmem:[%s4846_s30 + $0x74] sm:$0xf] }
 0x1a9   : > { %v2538_v16 = vpop.permute.xlu1 %2537  ;;  %v6113_v15 = vor.u32 %v2843_v4, %v2840_v2  ;;  %v3257_v2 = vld [vmem:[%s4846_s30 + $0x78] sm:$0xf] }
 0x1aa   : > { %2644 = vst.msk [vmem:[#allocation2 + $0x8] sm:$0xf] %vm2641_vm9, %v2538_v16  ;;  %v2536_v45 = vpop.permute.xlu0 %2535  ;;  %v2815_v27 = vsel %vm5656_vm3, %v2806_v41, %v2814_v5  ;;  %v2836_v16 = vrot.slane %v2834_v1, 4  ;;  %v2994_v5 = vor.u32 %v2993_v47, %v2990_v12  ;;  %v3333_v1 = vrot.slane %v3331_v29, 4  ;;  %v6154_v47 = vld [vmem:[%s4846_s30 + $0x40] sm:$0xf] }
 0x1ab   : > { %2643 = vst.msk [vmem:[#allocation2 + $0x4] sm:$0xf] %vm2641_vm9, %v2536_v45  ;;  %2555 = vrot.lane.b32.xlu1 %v2460_v7, %s4761_s11  ;;  %v3240_v45 = vld [vmem:[%s4846_s30 + $0x34] sm:$0xf] }
 0x1ac   : > { %2553 = vrot.lane.b32.xlu0 %v2457_v34, %s4761_s11  ;;  %v3000_v34 = vrot.slane %v2998_v9, 6  ;;  %v2845_v59 = vsel %vm5656_vm3, %v2836_v16, %v6113_v15  ;;  %v2996_v32 = vrot.slane %v2994_v5, 4  ;;  %v3334_v33 = vrot.slane %v3240_v45, 7  ;;  %v6157_v9 = vld [vmem:[%s4846_s30 + $0x7c] sm:$0xf] }
 0x1ad   : > { %v3087_v61 = vpop.permute.xlu1 %3086  ;;  %v2995_v22 = vsel %vm5656_vm3, %v2986_v35, %v2994_v5  ;;  %v3381_v16 = vrot.slane %v3379_v42, 4  ;;  %v1497_v5 = vld [vmem:[%s4846_s30 + $0x84] sm:$0xf]  ;;  %v3388_v21 = vrot.slane %v6157_v9, 7  ;;  %v1809_v42 = vshll.u32 %v1496_v3, 16 }
 0x1ae   : > { %3195 = vst.msk [vmem:[#allocation2] sm:$0xf] %vm3194_vm10, %v3087_v61  ;;  %v2540_v52 = vpop.permute.xlu0 %2539  ;;  %v6127_v0 = vor.u32 %v3003_v24, %v3000_v34  ;;  %v6137_v61 = vld [vmem:[%s4846_s30 + $0x3c] sm:$0xf]  ;;  %v3336_v41 = vrot.slane %v3334_v33, 4 }
 0x1af   : > { %2645 = vst.msk [vmem:[#allocation2 + $0xc] sm:$0xf] %vm2641_vm9, %v2540_v52  ;;  %2587 = vrot.lane.b32.xlu1 %v2508_v57, %s4761_s11  ;;  %v3241_v57 = vld [vmem:[%s4846_s30 + $0x38] sm:$0xf]  ;;  %v3382_v52 = vrot.slane %v3256_v38, 7  ;;  %v3340_v12 = vrot.slane %v6137_v61, 7 }
 0x1b0   : > { %2585 = vrot.lane.b32.xlu0 %v2505_v13, %s4761_s11  ;;  %v3005_v13 = vsel %vm5656_vm3, %v2996_v32, %v6127_v0  ;;  %v3337_v43 = vrot.slane %v3241_v57, 7  ;;  %v6178_v32 = vld [vmem:[%s4846_s30 + $0x80] sm:$0xf]  ;;  %v1498_v38 = vld [vmem:[%s4846_s30 + $0x88] sm:$0xf] }
 0x1b1   : > { %v3091_v50 = vpop.permute.xlu1 %3090  ;;  %v3384_v29 = vrot.slane %v3382_v52, 4  ;;  %v3383_v35 = vsel %vm5689_vm6, %v3381_v16, %v3382_v52  ;;  %v1808_v52 = vrot.slane %v1806_v31, 5 }
 0x1b2   : > { %3197 = vst.msk [vmem:[#allocation2 + $0x8] sm:$0xf] %vm3194_vm10, %v3091_v50  ;;  %v3089_v7 = vpop.permute.xlu0 %3088  ;;  %v3338_v10 = vsel %vm5689_vm6, %v3336_v41, %v3337_v43  ;;  %v3339_v57 = vrot.slane %v3337_v43, 4  ;;  %v3390_v41 = vrot.slane %v3388_v21, 4  ;;  %v1811_v43 = vrot.slane %v1809_v42, 6 }
 0x1b3   : > { %3196 = vst.msk [vmem:[#allocation2 + $0x4] sm:$0xf] %vm3194_vm10, %v3089_v7  ;;  %3104 = vrot.lane.b32.xlu1 %v2825_v54, %s4762_s26  ;;  %v1495_v54 = vld [vmem:[%s4846_s30 + $0x7c] sm:$0xf] }
 0x1b4   : > { %3102 = vrot.lane.b32.xlu0 %v2815_v27, %s4762_s26  ;;  %v1796_v60 = vshrl.u32 %v1495_v54, 16  ;;  %v1799_v50 = vshll.u32 %v1495_v54, 16  ;;  %v3385_v27 = vrot.slane %v3257_v2, 7  ;;  %v3391_v54 = vrot.slane %v6178_v32, 7 }
 0x1b5   : > { %v3418_v17 = vpop.permute.xlu1 %3417  ;;  %v1826_v2 = vshrl.u32 %v1498_v38, 16 }
 0x1b6   : > { %3526 = vst.msk [vmem:[#allocation2] sm:$0xf] %vm3525_vm12, %v3418_v17  ;;  %v3093_v11 = vpop.permute.xlu0 %3092  ;;  %v3342_v17 = vrot.slane %v3340_v12, 4  ;;  %v1798_v45 = vrot.slane %v1796_v60, 5  ;;  %v3341_v60 = vsel %vm5689_vm6, %v3339_v57, %v3340_v12 }
 0x1b7   : > { %3198 = vst.msk [vmem:[#allocation2 + $0xc] sm:$0xf] %vm3194_vm10, %v3093_v11  ;;  %3136 = vrot.lane.b32.xlu1 %v2985_v40, %s4762_s26  ;;  %v3335_v40 = vsel %vm5689_vm6, %v3333_v1, %v3334_v33  ;;  %v1801_v11 = vrot.slane %v1799_v50, 6  ;;  %v1816_v33 = vshrl.u32 %v1497_v5, 16  ;;  %v3387_v50 = vrot.slane %v3385_v27, 4 }
 0x1b8   : > { %3134 = vrot.lane.b32.xlu0 %v2975_v36, %s4762_s26  ;;  %v3343_v36 = vrot.slane %v6154_v47, 7  ;;  %v1828_v12 = vrot.slane %v1826_v2, 5 }
 0x1b9   : > { %v3422_v30 = vpop.permute.xlu1 %3421 }
 0x1ba   : > { %3528 = vst.msk [vmem:[#allocation2 + $0x8] sm:$0xf] %vm3525_vm12, %v3422_v30  ;;  %v3420_v39 = vpop.permute.xlu0 %3419  ;;  %v1819_v30 = vshll.u32 %v1497_v5, 16  ;;  %v3389_v5 = vsel %vm5689_vm6, %v3387_v50, %v3388_v21  ;;  %v2050_v50 = vld [vmem:[%s4846_s30 + $0x84] sm:$0xf] }
 0x1bb   : > { %3527 = vst.msk [vmem:[#allocation2 + $0x4] sm:$0xf] %vm3525_vm12, %v3420_v39  ;;  %3108 = vrot.lane.b32.xlu1 %v2845_v59, %s4762_s26  ;;  %v3386_v59 = vsel %vm5689_vm6, %v3384_v29, %v3385_v27  ;;  %v3392_v29 = vsel %vm5689_vm6, %v3390_v41, %v3391_v54  ;;  %v2133_v41 = vrot.slane %v2131_v49, 4 }
 0x1bc   : > { %3106 = vrot.lane.b32.xlu0 %v2835_v28, %s4762_s26  ;;  %v1821_v1 = vrot.slane %v1819_v30, 6  ;;  %v2048_v30 = vld [vmem:[%s4846_s30 + $0x7c] sm:$0xf] }
 0x1bd   : > { %v2214_v56 = vpop.permute.xlu1 %2213 }
 0x1be   : > { %2318 = vst.msk [vmem:[#allocation2 + $0x10] sm:$0xf] %vm2313_vm8, %v2214_v56  ;;  %v3424_v4 = vpop.permute.xlu0 %3423  ;;  %v1802_v56 = vor.u32 %v1801_v11, %v1798_v45 }
 0x1bf   : > { %3529 = vst.msk [vmem:[#allocation2 + $0xc] sm:$0xf] %vm3525_vm12, %v3424_v4  ;;  %3140 = vrot.lane.b32.xlu1 %v3005_v13, %s4762_s26  ;;  %v3344_v13 = vsel %vm5689_vm6, %v3342_v17, %v3343_v36  ;;  %v1829_v4 = vshll.u32 %v1498_v38, 16 }
 0x1c0   : > { %3138 = vrot.lane.b32.xlu0 %v2995_v22, %s4762_s26  ;;  %v1818_v22 = vrot.slane %v1816_v33, 5  ;;  %v1804_v3 = vrot.slane %v1802_v56, 4  ;;  %v2033_v33 = vld [vmem:[%s4846_s30 + $0x40] sm:$0xf] }
 0x1c1   : > { %v2246_v7 = vpop.permute.xlu1 %2245  ;;  %v1831_v16 = vrot.slane %v1829_v4, 6  ;;  %v2137_v38 = vrot.slane %v2033_v33, 6 }
 0x1c2   : > { %2334 = vst.msk [vmem:[#allocation2 + $0x50] sm:$0xf] %vm2313_vm8, %v2246_v7  ;;  %v2216_v34 = vpop.permute.xlu0 %2215  ;;  %v4660_v24 = vld [vmem:[#allocation2] sm:$0xff]   ;;  %v1812_v7 = vor.u32 %v1811_v43, %v1808_v52 }
 0x1c3   : > { %2319 = vst.msk [vmem:[#allocation2 + $0x14] sm:$0xf] %vm2313_vm8, %v2216_v34  ;;  %3435 = vrot.lane.b32.xlu1 %v3338_v10, %s4763_s5  ;;  %4540 = vmatprep.mubr.msk.bf16.mxu0 %vm3731_vm13, %v4660_v24  ;;  %v1794_v34 = vrot.slane %v5959_v51, 4  ;;  %v2032_v24 = vld [vmem:[%s4846_s30 + $0x3c] sm:$0xf]  ;;  %v6213_v31 = vor.u32 %v1831_v16, %v1828_v12  ;;  %v2139_v12 = vrot.slane %v2137_v38, 4 }
 0x1c4   : > { %3433 = vrot.lane.b32.xlu0 %v3335_v40, %s4763_s5  ;;  %v1822_v40 = vor.u32 %v1821_v1, %v1818_v22  ;;  %v1813_v45 = vsel %vm5469_vm11, %v1804_v3, %v1812_v7  ;;  %v2134_v21 = vrot.slane %v2032_v24, 6  ;;  %v2034_v52 = vld [vmem:[%s4846_s30 + $0x44] sm:$0xf]  ;;  %v6256_v16 = vld [vmem:[%s4846_s30 + $0x88] sm:$0xf] }
 0x1c5   : > { %v2218_v28 = vpop.permute.xlu1 %2217  ;;  %v1803_v51 = vsel %vm5469_vm11, %v1794_v34, %v1802_v56  ;;  %v2049_v56 = vld [vmem:[%s4846_s30 + $0x80] sm:$0xf]  ;;  %v2140_v26 = vrot.slane %v2034_v52, 6 }
 0x1c6   : > { %2320 = vst.msk [vmem:[#allocation2 + $0x18] sm:$0xf] %vm2313_vm8, %v2218_v28  ;;  %v2248_v39 = vpop.permute.xlu0 %2247  ;;  %v4661_v61 = vld [vmem:[#allocation2 + $0x8] sm:$0xff]   ;;  %v1824_v11 = vrot.slane %v1822_v40, 4  ;;  %v2136_v57 = vrot.slane %v2134_v21, 4  ;;  %v2185_v2 = vrot.slane %v2049_v56, 6  ;;  %v2135_v49 = vsel %vm5594_vm15, %v2133_v41, %v2134_v21 }
 0x1c7   : > { %2335 = vst.msk [vmem:[#allocation2 + $0x54] sm:$0xf] %vm2313_vm8, %v2248_v39  ;;  %3467 = vrot.lane.b32.xlu1 %v3386_v59, %s4763_s5  ;;  %4541 = vmatmul.mubr.msk.bf16.vlgmr.msra.gmra.mxu0 %vm3731_vm13, %v4661_v61  ;;  %v1814_v59 = vrot.slane %v1812_v7, 4  ;;  %v2182_v39 = vrot.slane %v2048_v30, 6  ;;  %v2142_v3 = vrot.slane %v2140_v26, 4 }
 0x1c8   : > { %3465 = vrot.lane.b32.xlu0 %v3383_v35, %s4763_s5  ;;  %v1833_v35 = vsel %vm5469_vm11, %v1824_v11, %v6213_v31  ;;  %v2138_v22 = vsel %vm5594_vm15, %v2136_v57, %v2137_v38  ;;  %v2379_v11 = vld [vmem:[%s4846_s30 + $0x84] sm:$0xf]  ;;  %v2365_v56 = vld [vmem:[%s4846_s30 + $0x4c] sm:$0xf] }
 0x1c9   : > { %v2250_v9 = vpop.permute.xlu1 %2249  ;;  %v2184_v1 = vrot.slane %v2182_v39, 4  ;;  %v2691_v30 = vld [vmem:[%s4846_s30 + $0x44] sm:$0xf] }
 0x1ca   : > { %2336 = vst.msk [vmem:[#allocation2 + $0x58] sm:$0xf] %vm2313_vm8, %v2250_v9  ;;  %v2220_v10 = vpop.permute.xlu0 %2219  ;;  %v2181_v9 = vrot.slane %v2179_v20, 4  ;;  %v2188_v20 = vrot.slane %v2050_v50, 6  ;;  %v2848_v52 = vshrl.u32 %v2691_v30, 16  ;;  %v2468_v50 = vrot.slane %v2365_v56, 6 }
 0x1cb   : > { %2321 = vst.msk [vmem:[#allocation2 + $0x1c] sm:$0xf] %vm2313_vm8, %v2220_v10  ;;  %3439 = vrot.lane.b32.xlu1 %v3344_v13, %s4763_s5  ;;  %v1823_v13 = vsel %vm5469_vm11, %v1814_v59, %v1822_v40  ;;  %v2364_v59 = vld [vmem:[%s4846_s30 + $0x48] sm:$0xf] }
 0x1cc   : > { %3437 = vrot.lane.b32.xlu0 %v3341_v60, %s4763_s5  ;;  %v6243_v60 = vld [vmem:[%s4846_s30 + $0x48] sm:$0xf]  ;;  %v2183_v40 = vsel %vm5594_vm15, %v2181_v9, %v2182_v39  ;;  %v2190_v24 = vrot.slane %v2188_v20, 4  ;;  %v2465_v38 = vrot.slane %v2364_v59, 6  ;;  %v2461_v39 = vrot.slane %v2459_v44, 4 }
 0x1cd   : > { %v2542_v27 = vpop.permute.xlu1 %2541  ;;  %v2143_v37 = vrot.slane %v6243_v60, 6  ;;  %v6303_v9 = vld [vmem:[%s4846_s30 + $0x50] sm:$0xf]  ;;  %v2054_v60 = vld [vmem:[%s4846_s30 + $0x94] sm:$0xf] }
 0x1ce   : > { %2646 = vst.msk [vmem:[#allocation2 + $0x10] sm:$0xf] %vm2641_vm9, %v2542_v27  ;;  %v2252_v17 = vpop.permute.xlu0 %2251  ;;  %v2363_v27 = vld [vmem:[%s4846_s30 + $0x44] sm:$0xf]  ;;  %v6321_v59 = vld [vmem:[%s4846_s30 + $0x90] sm:$0xf] }
 0x1cf   : > { %2337 = vst.msk [vmem:[#allocation2 + $0x5c] sm:$0xf] %vm2313_vm8, %v2252_v17  ;;  %3471 = vrot.lane.b32.xlu1 %v3392_v29, %s4763_s5  ;;  %v2186_v29 = vsel %vm5594_vm15, %v2184_v1, %v2185_v2  ;;  %v2144_v34 = vsel %vm5594_vm15, %v2142_v3, %v2143_v37  ;;  %v2191_v17 = vrot.slane %v6256_v16, 6  ;;  %v2692_v1 = vld [vmem:[%s4846_s30 + $0x48] sm:$0xf]  ;;  %v2850_v3 = vrot.slane %v2848_v52, 6 }
 0x1d0   : > { %3469 = vrot.lane.b32.xlu0 %v3389_v5, %s4763_s5 }
 0x1d1   : > { %v2574_v42 = vpop.permute.xlu1 %2573 }
 0x1d2   : > { %2662 = vst.msk [vmem:[#allocation2 + $0x50] sm:$0xf] %vm2641_vm9, %v2574_v42  ;;  %v2544_v28 = vpop.permute.xlu0 %2543  ;;  %v2141_v42 = vsel %vm5594_vm15, %v2139_v12, %v2140_v26 }
 0x1d3   : > { %2647 = vst.msk [vmem:[#allocation2 + $0x14] sm:$0xf] %vm2641_vm9, %v2544_v28  ;;  %1932 = vrot.lane.b32.xlu1 %v1813_v45, %s4759_s7  ;;  %v2462_v45 = vrot.slane %v2363_v27, 6  ;;  %v2510_v28 = vrot.slane %v2379_v11, 6 }
 0x1d4   : > { %1930 = vrot.lane.b32.xlu0 %v1803_v51, %s4759_s7  ;;  %v2187_v51 = vrot.slane %v2185_v2, 4  ;;  %v2707_v2 = vld [vmem:[%s4846_s30 + $0x84] sm:$0xf] }
 0x1d5   : > { %v2546_v61 = vpop.permute.xlu1 %2545  ;;  %v2464_v57 = vrot.slane %v2462_v45, 4  ;;  %v2512_v25 = vrot.slane %v2510_v28, 4  ;;  %v3008_v27 = vshrl.u32 %v2707_v2, 16 }
 0x1d6   : > { %2648 = vst.msk [vmem:[#allocation2 + $0x18] sm:$0xf] %vm2641_vm9, %v2546_v61  ;;  %v2576_v43 = vpop.permute.xlu0 %2575  ;;  %v6284_v61 = vld [vmem:[%s4846_s30 + $0x88] sm:$0xf]  ;;  %v2189_v41 = vsel %vm5594_vm15, %v2187_v51, %v2188_v20  ;;  %v2467_v51 = vrot.slane %v2465_v38, 4 }
 0x1d7   : > { %2663 = vst.msk [vmem:[#allocation2 + $0x54] sm:$0xf] %vm2641_vm9, %v2576_v43  ;;  %1936 = vrot.lane.b32.xlu1 %v1833_v35, %s4759_s7  ;;  %v2192_v35 = vsel %vm5594_vm15, %v2190_v24, %v2191_v17  ;;  %v2851_v43 = vshll.u32 %v2691_v30, 16  ;;  %v2513_v44 = vrot.slane %v6284_v61, 6  ;;  %v2466_v26 = vsel %vm5594_vm15, %v2464_v57, %v2465_v38 }
 0x1d8   : > { %1934 = vrot.lane.b32.xlu0 %v1823_v13, %s4759_s7  ;;  %v2470_v24 = vrot.slane %v2468_v50, 4 }
 0x1d9   : > { %v2578_v4 = vpop.permute.xlu1 %2577  ;;  %v2853_v20 = vrot.slane %v2851_v43, 7  ;;  %v2514_v58 = vsel %vm5594_vm15, %v2512_v25, %v2513_v44  ;;  %v2519_v43 = vrot.slane %v6321_v59, 6  ;;  %v2469_v25 = vsel %vm5594_vm15, %v2467_v51, %v2468_v50 }
 0x1da   : > { %2664 = vst.msk [vmem:[#allocation2 + $0x58] sm:$0xf] %vm2641_vm9, %v2578_v4  ;;  %v2548_v10 = vpop.permute.xlu0 %2547  ;;  %v2463_v4 = vsel %vm5594_vm15, %v2461_v39, %v2462_v45  ;;  %v2471_v45 = vrot.slane %v6303_v9, 6  ;;  %v3010_v39 = vrot.slane %v3008_v27, 6  ;;  %v2711_v9 = vld [vmem:[%s4846_s30 + $0x94] sm:$0xf] }
 0x1db   : > { %2649 = vst.msk [vmem:[#allocation2 + $0x1c] sm:$0xf] %vm2641_vm9, %v2548_v10  ;;  %2231 = vrot.lane.b32.xlu1 %v2138_v22, %s4760_s8 }
 0x1dc   : > { %2229 = vrot.lane.b32.xlu0 %v2135_v49, %s4760_s8  ;;  %v2509_v49 = vrot.slane %v2507_v53, 4  ;;  %v2708_v53 = vld [vmem:[%s4846_s30 + $0x88] sm:$0xf]  ;;  %v2472_v56 = vsel %vm5594_vm15, %v2470_v24, %v2471_v45  ;;  %v2710_v24 = vld [vmem:[%s4846_s30 + $0x90] sm:$0xf] }
 0x1dd   : > { %v3095_v7 = vpop.permute.xlu1 %3094 }
 0x1de   : > { %3199 = vst.msk [vmem:[#allocation2 + $0x10] sm:$0xf] %vm3194_vm10, %v3095_v7  ;;  %v2580_v5 = vpop.permute.xlu0 %2579  ;;  %v2858_v7 = vshrl.u32 %v2692_v1, 16 }
 0x1df   : > { %2665 = vst.msk [vmem:[#allocation2 + $0x5c] sm:$0xf] %vm2641_vm9, %v2580_v5  ;;  %2263 = vrot.lane.b32.xlu1 %v2186_v29, %s4760_s8  ;;  %v6306_v29 = vld [vmem:[%s4846_s30 + $0x8c] sm:$0xf]  ;;  %v3011_v5 = vshll.u32 %v2707_v2, 16  ;;  %v2515_v2 = vrot.slane %v2513_v44, 4 }
 0x1e0   : > { %2261 = vrot.lane.b32.xlu0 %v2183_v40, %s4760_s8  ;;  %v2861_v40 = vshll.u32 %v2692_v1, 16  ;;  %v2516_v11 = vrot.slane %v6306_v29, 6  ;;  %v2860_v30 = vrot.slane %v2858_v7, 6 }
 0x1e1   : > { %v3127_v21 = vpop.permute.xlu1 %3126  ;;  %v3013_v61 = vrot.slane %v3011_v5, 7 }
 0x1e2   : > { %3215 = vst.msk [vmem:[#allocation2 + $0x50] sm:$0xf] %vm3194_vm10, %v3127_v21  ;;  %v3097_v33 = vpop.permute.xlu0 %3096  ;;  %v2693_v21 = vld [vmem:[%s4846_s30 + $0x4c] sm:$0xf]  ;;  %v2518_v52 = vrot.slane %v2516_v11, 4 }
 0x1e3   : > { %3200 = vst.msk [vmem:[#allocation2 + $0x14] sm:$0xf] %vm3194_vm10, %v3097_v33  ;;  %2235 = vrot.lane.b32.xlu1 %v2144_v34, %s4760_s8  ;;  %v2511_v34 = vsel %vm5594_vm15, %v2509_v49, %v2510_v28  ;;  %v2854_v33 = vor.u32 %v2853_v20, %v2850_v3  ;;  %v3018_v28 = vshrl.u32 %v2708_v53, 16  ;;  %v2871_v38 = vshll.u32 %v2693_v21, 16 }
 0x1e4   : > { %2233 = vrot.lane.b32.xlu0 %v2141_v42, %s4760_s8  ;;  %v3014_v29 = vor.u32 %v3013_v61, %v3010_v39  ;;  %v2520_v44 = vsel %vm5594_vm15, %v2518_v52, %v2519_v43  ;;  %v3038_v61 = vshrl.u32 %v2710_v24, 16 }
 0x1e5   : > { %v3099_v13 = vpop.permute.xlu1 %3098  ;;  %v3020_v3 = vrot.slane %v3018_v28, 6  ;;  %v3041_v28 = vshll.u32 %v2710_v24, 16  ;;  %v6391_v24 = vld [vmem:[%s4846_s30 + $0x4c] sm:$0xf] }
 0x1e6   : > { %3201 = vst.msk [vmem:[#allocation2 + $0x18] sm:$0xf] %vm3194_vm10, %v3099_v13  ;;  %v3129_v22 = vpop.permute.xlu0 %3128  ;;  %v3021_v13 = vshll.u32 %v2708_v53, 16  ;;  %v2517_v53 = vsel %vm5594_vm15, %v2515_v2, %v2516_v11  ;;  %v3016_v51 = vrot.slane %v3014_v29, 4 }
 0x1e7   : > { %3216 = vst.msk [vmem:[#allocation2 + $0x54] sm:$0xf] %vm3194_vm10, %v3129_v22  ;;  %2267 = vrot.lane.b32.xlu1 %v2192_v35, %s4760_s8  ;;  %v2863_v35 = vrot.slane %v2861_v40, 7  ;;  %v2694_v22 = vld [vmem:[%s4846_s30 + $0x50] sm:$0xf]  ;;  %v2873_v40 = vrot.slane %v2871_v38, 7 }
 0x1e8   : > { %2265 = vrot.lane.b32.xlu0 %v2189_v41, %s4760_s8  ;;  %v2868_v41 = vshrl.u32 %v2693_v21, 16  ;;  %v3023_v20 = vrot.slane %v3021_v13, 7  ;;  %v2881_v50 = vshll.u32 %v2694_v22, 16  ;;  %v3006_v38 = vrot.slane %v6127_v0, 4 }
 0x1e9   : > { %v3131_v10 = vpop.permute.xlu1 %3130  ;;  %v3043_v2 = vrot.slane %v3041_v28, 7 }
 0x1ea   : > { %3217 = vst.msk [vmem:[#allocation2 + $0x58] sm:$0xf] %vm3194_vm10, %v3131_v10  ;;  %v3101_v12 = vpop.permute.xlu0 %3100  ;;  %v6337_v10 = vor.u32 %v2863_v35, %v2860_v30  ;;  %v2870_v7 = vrot.slane %v2868_v41, 6  ;;  %v3024_v30 = vor.u32 %v3023_v20, %v3020_v3  ;;  %v2883_v39 = vrot.slane %v2881_v50, 7  ;;  %v3244_v3 = vld [vmem:[%s4846_s30 + $0x44] sm:$0xf] }
 0x1eb   : > { %3202 = vst.msk [vmem:[#allocation2 + $0x1c] sm:$0xf] %vm3194_vm10, %v3101_v12  ;;  %2559 = vrot.lane.b32.xlu1 %v2466_v26, %s4761_s11  ;;  %v2856_v26 = vrot.slane %v2854_v33, 4  ;;  %v2878_v12 = vshrl.u32 %v2694_v22, 16  ;;  %v3346_v50 = vrot.slane %v3244_v3, 7 }
 0x1ec   : > { %2557 = vrot.lane.b32.xlu0 %v2463_v4, %s4761_s11  ;;  %v2709_v4 = vld [vmem:[%s4846_s30 + $0x8c] sm:$0xf]  ;;  %v2874_v35 = vor.u32 %v2873_v40, %v2870_v7 }
 0x1ed   : > { %v3426_v42 = vpop.permute.xlu1 %3425  ;;  %v3028_v27 = vshrl.u32 %v2709_v4, 16  ;;  %v3031_v5 = vshll.u32 %v2709_v4, 16  ;;  %v3015_v4 = vsel %vm5656_vm3, %v3006_v38, %v3014_v29  ;;  %v6412_v38 = vld [vmem:[%s4846_s30 + $0x8c] sm:$0xf] }
 0x1ee   : > { %3530 = vst.msk [vmem:[#allocation2 + $0x10] sm:$0xf] %vm3525_vm12, %v3426_v42  ;;  %v3133_v57 = vpop.permute.xlu0 %3132  ;;  %v2865_v42 = vsel %vm5656_vm3, %v2856_v26, %v6337_v10  ;;  %v2876_v22 = vrot.slane %v2874_v35, 4 }
 0x1ef   : > { %3218 = vst.msk [vmem:[#allocation2 + $0x5c] sm:$0xf] %vm3194_vm10, %v3133_v57  ;;  %2591 = vrot.lane.b32.xlu1 %v2514_v58, %s4761_s11  ;;  %v2880_v57 = vrot.slane %v2878_v12, 6  ;;  %v3033_v11 = vrot.slane %v3031_v5, 7  ;;  %v3026_v12 = vrot.slane %v3024_v30, 4 }
 0x1f0   : > { %2589 = vrot.lane.b32.xlu0 %v2511_v34, %s4761_s11  ;;  %v2846_v34 = vrot.slane %v6113_v15, 4  ;;  %v3030_v15 = vrot.slane %v3028_v27, 6  ;;  %v3245_v5 = vld [vmem:[%s4846_s30 + $0x48] sm:$0xf] }
 0x1f1   : > { %v3458_v1 = vpop.permute.xlu1 %3457 }
 0x1f2   : > { %3546 = vst.msk [vmem:[#allocation2 + $0x50] sm:$0xf] %vm3525_vm12, %v3458_v1  ;;  %v3428_v49 = vpop.permute.xlu0 %3427  ;;  %v2855_v41 = vsel %vm5656_vm3, %v2846_v34, %v2854_v33  ;;  %v6363_v1 = vor.u32 %v2883_v39, %v2880_v57  ;;  %v3025_v33 = vsel %vm5656_vm3, %v3016_v51, %v3024_v30  ;;  %v3034_v0 = vor.u32 %v3033_v11, %v3030_v15  ;;  %v3261_v11 = vld [vmem:[%s4846_s30 + $0x88] sm:$0xf] }
 0x1f3   : > { %3531 = vst.msk [vmem:[#allocation2 + $0x14] sm:$0xf] %vm3525_vm12, %v3428_v49  ;;  %2563 = vrot.lane.b32.xlu1 %v2472_v56, %s4761_s11  ;;  %v2866_v49 = vrot.slane %v6337_v10, 4  ;;  %v3349_v51 = vrot.slane %v3245_v5, 7  ;;  %v3345_v15 = vrot.slane %v3343_v36, 4 }
 0x1f4   : > { %2561 = vrot.lane.b32.xlu0 %v2469_v25, %s4761_s11  ;;  %v3040_v25 = vrot.slane %v3038_v61, 6  ;;  %v2885_v40 = vsel %vm5656_vm3, %v2876_v22, %v6363_v1  ;;  %v3036_v10 = vrot.slane %v3034_v0, 4  ;;  %v3035_v39 = vsel %vm5656_vm3, %v3026_v12, %v3034_v0  ;;  %v6433_v12 = vld [vmem:[%s4846_s30 + $0x90] sm:$0xf] }
 0x1f5   : > { %v3430_v58 = vpop.permute.xlu1 %3429  ;;  %v2875_v27 = vsel %vm5656_vm3, %v2866_v49, %v2874_v35  ;;  %v1499_v35 = vld [vmem:[%s4846_s30 + $0x8c] sm:$0xf]  ;;  %v3397_v22 = vrot.slane %v3261_v11, 7 }
 0x1f6   : > { %3532 = vst.msk [vmem:[#allocation2 + $0x18] sm:$0xf] %vm3525_vm12, %v3430_v58  ;;  %v3460_v21 = vpop.permute.xlu0 %3459  ;;  %v6381_v29 = vor.u32 %v3043_v2, %v3040_v25  ;;  %v3260_v58 = vld [vmem:[%s4846_s30 + $0x84] sm:$0xf]  ;;  %v1839_v47 = vshll.u32 %v1499_v35, 16  ;;  %v3347_v25 = vsel %vm5689_vm6, %v3345_v15, %v3346_v50  ;;  %v3393_v2 = vrot.slane %v3391_v54, 4 }
 0x1f7   : > { %3547 = vst.msk [vmem:[#allocation2 + $0x54] sm:$0xf] %vm3525_vm12, %v3460_v21  ;;  %2595 = vrot.lane.b32.xlu1 %v2520_v44, %s4761_s11  ;;  %v3394_v30 = vrot.slane %v3260_v58, 7  ;;  %v3351_v58 = vrot.slane %v3349_v51, 4 }
 0x1f8   : > { %2593 = vrot.lane.b32.xlu0 %v2517_v53, %s4761_s11  ;;  %v3045_v21 = vsel %vm5656_vm3, %v3036_v10, %v6381_v29 }
 0x1f9   : > { %v3462_v13 = vpop.permute.xlu1 %3461  ;;  %v3395_v5 = vsel %vm5689_vm6, %v3393_v2, %v3394_v30  ;;  %v1834_v2 = vrot.slane %v6213_v31, 4 }
 0x1fa   : > { %3548 = vst.msk [vmem:[#allocation2 + $0x58] sm:$0xf] %vm3525_vm12, %v3462_v13  ;;  %v3432_v56 = vpop.permute.xlu0 %3431  ;;  %v4662_v52 = vld [vmem:[#allocation2 + $0x10] sm:$0xff]   ;;  %v3352_v13 = vrot.slane %v6391_v24, 7 }
 0x1fb   : > { %3533 = vst.msk [vmem:[#allocation2 + $0x1c] sm:$0xf] %vm3525_vm12, %v3432_v56  ;;  %3112 = vrot.lane.b32.xlu1 %v2865_v42, %s4762_s26  ;;  %4544 = vmatprep.mubr.msk.bf16.mxu0 %vm3731_vm13, %v4662_v52  ;;  %v3348_v42 = vrot.slane %v3346_v50, 4  ;;  %v1836_v56 = vshrl.u32 %v1499_v35, 16  ;;  %v3396_v52 = vrot.slane %v3394_v30, 4 }
 0x1fc   : > { %3110 = vrot.lane.b32.xlu0 %v2855_v41, %s4762_s26  ;;  %v6409_v41 = vld [vmem:[%s4846_s30 + $0x50] sm:$0xf]  ;;  %v3354_v49 = vrot.slane %v3352_v13, 4 }
 0x1fd   : > { %v1925_v26 = vpop.permute.xlu1 %1924  ;;  %v3350_v36 = vsel %vm5689_vm6, %v3348_v42, %v3349_v51  ;;  %v3355_v3 = vrot.slane %v6409_v41, 7  ;;  %v3398_v54 = vsel %vm5689_vm6, %v3396_v52, %v3397_v22  ;;  %v3403_v42 = vrot.slane %v6433_v12, 7 }
 0x1fe   : > { %2008 = vst.msk [vmem:[#allocation2 + $0x64] sm:$0xf] %vm1982_vm7, %v1925_v26  ;;  %v3464_v20 = vpop.permute.xlu0 %3463  ;;  %v4663_v7 = vld [vmem:[#allocation2 + $0x50] sm:$0xff]  }
 0x1ff   : > { %3549 = vst.msk [vmem:[#allocation2 + $0x5c] sm:$0xf] %vm3525_vm12, %v3464_v20  ;;  %3144 = vrot.lane.b32.xlu1 %v3025_v33, %s4762_s26  ;;  %4560 = vmatprep.mubr.msk.bf16.mxu1 %vm3731_vm13, %v4663_v7  ;;  %v1500_v33 = vld [vmem:[%s4846_s30 + $0x90] sm:$0xf]  ;;  %v1501_v26 = vld [vmem:[%s4846_s30 + $0x94] sm:$0xf]  ;;  %v3356_v24 = vsel %vm5689_vm6, %v3354_v49, %v3355_v3 }
 0x200   : > { %3142 = vrot.lane.b32.xlu0 %v3015_v4, %s4762_s26  ;;  %v3400_v20 = vrot.slane %v6412_v38, 7  ;;  %v1838_v7 = vrot.slane %v1836_v56, 5  ;;  %v1846_v10 = vshrl.u32 %v1500_v33, 16  ;;  %v1849_v32 = vshll.u32 %v1500_v33, 16 }
 0x201   : > { %v1929_v44 = vpop.permute.xlu1 %1928  ;;  %v1856_v50 = vshrl.u32 %v1501_v26, 16  ;;  %v3399_v38 = vrot.slane %v3397_v22, 4 }
 0x202   : > { %2010 = vst.msk [vmem:[#allocation2 + $0x6c] sm:$0xf] %vm1982_vm7, %v1929_v44  ;;  %v1927_v53 = vpop.permute.xlu0 %1926  ;;  %v4664_v34 = vld [vmem:[#allocation2 + $0x18] sm:$0xff]   ;;  %v1859_v44 = vshll.u32 %v1501_v26, 16  ;;  %v1851_v30 = vrot.slane %v1849_v32, 6 }
 0x203   : > { %2009 = vst.msk [vmem:[#allocation2 + $0x68] sm:$0xf] %vm1982_vm7, %v1927_v53  ;;  %3116 = vrot.lane.b32.xlu1 %v2885_v40, %s4762_s26  ;;  %4545 = vmatmul.mubr.msk.bf16.gmra.mxu0 %vm3731_vm13, %v4664_v34  ;;  %v1841_v40 = vrot.slane %v1839_v47, 6  ;;  %v1502_v53 = vld [vmem:[%s4846_s30 + $0x98] sm:$0x3]  ;;  %v1858_v51 = vrot.slane %v1856_v50, 5 }
 0x204   : > { %3114 = vrot.lane.b32.xlu0 %v2875_v27, %s4762_s26  ;;  %v1866_v15 = vshrl.u32 %v1502_v53, 16  ;;  %v1869_v11 = vshll.u32 %v1502_v53, 16  ;;  %v2036_v26 = vld [vmem:[%s4846_s30 + $0x4c] sm:$0xf] }
 0x205   : > { %v2224_v57 = vpop.permute.xlu1 %2223  ;;  %v1842_v35 = vor.u32 %v1841_v40, %v1838_v7  ;;  %v2052_v50 = vld [vmem:[%s4846_s30 + $0x8c] sm:$0xf] }
 0x206   : > { %2323 = vst.msk [vmem:[#allocation2 + $0x24] sm:$0xf] %vm2313_vm8, %v2224_v57  ;;  %v2222_v61 = vpop.permute.xlu0 %2221  ;;  %v4665_v28 = vld [vmem:[#allocation2 + $0x58] sm:$0xff]   ;;  %v1848_v57 = vrot.slane %v1846_v10, 5  ;;  %v2146_v10 = vrot.slane %v2036_v26, 6  ;;  %v2194_v53 = vrot.slane %v2052_v50, 6 }
 0x207   : > { %2322 = vst.msk [vmem:[#allocation2 + $0x20] sm:$0xf] %vm2313_vm8, %v2222_v61  ;;  %3148 = vrot.lane.b32.xlu1 %v3045_v21, %s4762_s26  ;;  %4561 = vmatmul.mubr.msk.bf16.vlgmr.msra.gmra.mxu1 %vm3731_vm13, %v4665_v28  ;;  %v3402_v21 = vrot.slane %v3400_v20, 4  ;;  %v3353_v28 = vsel %vm5689_vm6, %v3351_v58, %v3352_v13  ;;  %v1868_v13 = vrot.slane %v1866_v15, 5  ;;  %v1843_v31 = vsel %vm5469_vm11, %v1834_v2, %v1842_v35 }
 0x208   : > { %3146 = vrot.lane.b32.xlu0 %v3035_v39, %s4762_s26  ;;  %v1861_v39 = vrot.slane %v1859_v44, 6  ;;  %v1852_v52 = vor.u32 %v1851_v30, %v1848_v57  ;;  %v2038_v57 = vld [vmem:[%s4846_s30 + $0x54] sm:$0xf]  ;;  %v2196_v6 = vrot.slane %v2194_v53, 4 }
 0x209   : > { %v2256_v0 = vpop.permute.xlu1 %2255  ;;  %v3404_v47 = vsel %vm5689_vm6, %v3402_v21, %v3403_v42  ;;  %v2145_v21 = vrot.slane %v2143_v37, 4  ;;  %v2152_v15 = vrot.slane %v2038_v57, 6 }
 0x20a   : > { %2339 = vst.msk [vmem:[#allocation2 + $0x64] sm:$0xf] %vm2313_vm8, %v2256_v0  ;;  %v2254_v4 = vpop.permute.xlu0 %2253  ;;  %v1862_v33 = vor.u32 %v1861_v39, %v1858_v51  ;;  %v1871_v0 = vrot.slane %v1869_v11, 6  ;;  %v1854_v32 = vrot.slane %v1852_v52, 4 }
 0x20b   : > { %2338 = vst.msk [vmem:[#allocation2 + $0x60] sm:$0xf] %vm2313_vm8, %v2254_v4  ;;  %3443 = vrot.lane.b32.xlu1 %v3350_v36, %s4763_s5  ;;  %v1844_v36 = vrot.slane %v1842_v35, 4  ;;  %v2053_v35 = vld [vmem:[%s4846_s30 + $0x90] sm:$0xf]  ;;  %v2147_v11 = vsel %vm5594_vm15, %v2145_v21, %v2146_v10 }
 0x20c   : > { %3441 = vrot.lane.b32.xlu0 %v3347_v25, %s4763_s5  ;;  %v3401_v25 = vsel %vm5689_vm6, %v3399_v38, %v3400_v20  ;;  %v1864_v7 = vrot.slane %v1862_v33, 4  ;;  %v1872_v40 = vor.u32 %v1871_v0, %v1868_v13  ;;  %v2197_v39 = vrot.slane %v2053_v35, 6 }
 0x20d   : > { %v2228_v27 = vpop.permute.xlu1 %2227  ;;  %v1853_v49 = vsel %vm5469_vm11, %v1844_v36, %v1852_v52  ;;  %v2200_v38 = vrot.slane %v2054_v60, 6  ;;  %v2055_v36 = vld [vmem:[%s4846_s30 + $0x98] sm:$0x3] }
 0x20e   : > { %2325 = vst.msk [vmem:[#allocation2 + $0x2c] sm:$0xf] %vm2313_vm8, %v2228_v27  ;;  %v2226_v34 = vpop.permute.xlu0 %2225  ;;  %v1873_v27 = vsel %vm5469_vm11, %v1864_v7, %v1872_v40  ;;  %v2368_v7 = vld [vmem:[%s4846_s30 + $0x58] sm:$0xf]  ;;  %v2383_v40 = vld [vmem:[%s4846_s30 + $0x94] sm:$0xf] }
 0x20f   : > { %2324 = vst.msk [vmem:[#allocation2 + $0x28] sm:$0xf] %vm2313_vm8, %v2226_v34  ;;  %3475 = vrot.lane.b32.xlu1 %v3398_v54, %s4763_s5  ;;  %v2037_v54 = vld [vmem:[%s4846_s30 + $0x50] sm:$0xf]  ;;  %v2202_v0 = vrot.slane %v2200_v38, 4 }
 0x210   : > { %3473 = vrot.lane.b32.xlu0 %v3395_v5, %s4763_s5  ;;  %v2148_v5 = vrot.slane %v2146_v10, 4  ;;  %v2149_v58 = vrot.slane %v2037_v54, 6  ;;  %v2522_v54 = vrot.slane %v2383_v40, 6 }
 0x211   : > { %v2260_v61 = vpop.permute.xlu1 %2259 }
 0x212   : > { %2341 = vst.msk [vmem:[#allocation2 + $0x6c] sm:$0xf] %vm2313_vm8, %v2260_v61  ;;  %v2258_v56 = vpop.permute.xlu0 %2257  ;;  %v2150_v51 = vsel %vm5594_vm15, %v2148_v5, %v2149_v58  ;;  %v2193_v61 = vrot.slane %v2191_v17, 4  ;;  %v2151_v17 = vrot.slane %v2149_v58, 4  ;;  %v2369_v5 = vld [vmem:[%s4846_s30 + $0x5c] sm:$0xf] }
 0x213   : > { %2340 = vst.msk [vmem:[#allocation2 + $0x68] sm:$0xf] %vm2313_vm8, %v2258_v56  ;;  %3447 = vrot.lane.b32.xlu1 %v3356_v24, %s4763_s5  ;;  %v1863_v24 = vsel %vm5469_vm11, %v1854_v32, %v1862_v33  ;;  %v2198_v56 = vsel %vm5594_vm15, %v2196_v6, %v2197_v39  ;;  %v2367_v33 = vld [vmem:[%s4846_s30 + $0x54] sm:$0xf]  ;;  %v2473_v32 = vrot.slane %v2471_v45, 4  ;;  %v2524_v21 = vrot.slane %v2522_v54, 4 }
 0x214   : > { %3445 = vrot.lane.b32.xlu0 %v3353_v28, %s4763_s5  ;;  %v2195_v16 = vsel %vm5594_vm15, %v2193_v61, %v2194_v53  ;;  %v2474_v2 = vrot.slane %v2367_v33, 6  ;;  %v2480_v57 = vrot.slane %v2369_v5, 6  ;;  %v2521_v6 = vrot.slane %v2519_v43, 4  ;;  %v2386_v33 = vld [vmem:[%s4846_s30 + $0xa0] sm:$0x3] }
 0x215   : > { %v2552_v22 = vpop.permute.xlu1 %2551 }
 0x216   : > { %2651 = vst.msk [vmem:[#allocation2 + $0x24] sm:$0xf] %vm2641_vm9, %v2552_v22  ;;  %v2550_v4 = vpop.permute.xlu0 %2549  ;;  %v2203_v22 = vrot.slane %v2055_v36, 6  ;;  %v2482_v43 = vrot.slane %v2480_v57, 4  ;;  %v2697_v36 = vld [vmem:[%s4846_s30 + $0x5c] sm:$0xf] }
 0x217   : > { %2650 = vst.msk [vmem:[#allocation2 + $0x20] sm:$0xf] %vm2641_vm9, %v2550_v4  ;;  %3479 = vrot.lane.b32.xlu1 %v3404_v47, %s4763_s5  ;;  %v2154_v47 = vrot.slane %v2152_v15, 4  ;;  %v2153_v4 = vsel %vm5594_vm15, %v2151_v17, %v2152_v15  ;;  %v2911_v40 = vshll.u32 %v2697_v36, 16 }
 0x218   : > { %3477 = vrot.lane.b32.xlu0 %v3401_v25, %s4763_s5  ;;  %v2204_v62 = vsel %vm5594_vm15, %v2202_v0, %v2203_v22 }
 0x219   : > { %v2584_v20 = vpop.permute.xlu1 %2583  ;;  %v2156_v25 = vsel %vm5594_vm15, %v2154_v47, %v2155_v8  ;;  %v2476_v8 = vrot.slane %v2474_v2, 4  ;;  %v2712_v47 = vld [vmem:[%s4846_s30 + $0x98] sm:$0xf] }
 0x21a   : > { %2667 = vst.msk [vmem:[#allocation2 + $0x64] sm:$0xf] %vm2641_vm9, %v2584_v20  ;;  %v2582_v44 = vpop.permute.xlu0 %2581  ;;  %v2695_v20 = vld [vmem:[%s4846_s30 + $0x54] sm:$0xf] }
 0x21b   : > { %2666 = vst.msk [vmem:[#allocation2 + $0x60] sm:$0xf] %vm2641_vm9, %v2582_v44  ;;  %1940 = vrot.lane.b32.xlu1 %v1853_v49, %s4759_s7  ;;  %v2199_v49 = vrot.slane %v2197_v39, 4  ;;  %v2888_v58 = vshrl.u32 %v2695_v20, 16  ;;  %v2891_v53 = vshll.u32 %v2695_v20, 16 }
 0x21c   : > { %1938 = vrot.lane.b32.xlu0 %v1843_v31, %s4759_s7  ;;  %v2477_v31 = vrot.slane %v2368_v7, 6  ;;  %v2385_v39 = vld [vmem:[%s4846_s30 + $0x9c] sm:$0xf]  ;;  %v2908_v7 = vshrl.u32 %v2697_v36, 16 }
 0x21d   : > { %v2556_v34 = vpop.permute.xlu1 %2555  ;;  %v2201_v44 = vsel %vm5594_vm15, %v2199_v49, %v2200_v38  ;;  %v2890_v15 = vrot.slane %v2888_v58, 6  ;;  %v2893_v60 = vrot.slane %v2891_v53, 7  ;;  %v3051_v38 = vshll.u32 %v2711_v9, 16 }
 0x21e   : > { %2653 = vst.msk [vmem:[#allocation2 + $0x2c] sm:$0xf] %vm2641_vm9, %v2556_v34  ;;  %v2554_v30 = vpop.permute.xlu0 %2553  ;;  %v2478_v45 = vsel %vm5594_vm15, %v2476_v8, %v2477_v31  ;;  %v2479_v17 = vrot.slane %v2477_v31, 4  ;;  %v3061_v49 = vshll.u32 %v2712_v47, 16  ;;  %v2910_v58 = vrot.slane %v2908_v7, 6 }
 0x21f   : > { %2652 = vst.msk [vmem:[#allocation2 + $0x28] sm:$0xf] %vm2641_vm9, %v2554_v30  ;;  %1944 = vrot.lane.b32.xlu1 %v1873_v27, %s4759_s7  ;;  %v2384_v27 = vld [vmem:[%s4846_s30 + $0x98] sm:$0xf]  ;;  %v2913_v53 = vrot.slane %v2911_v40, 7 }
 0x220   : > { %1942 = vrot.lane.b32.xlu0 %v1863_v24, %s4759_s7  ;;  %v2696_v24 = vld [vmem:[%s4846_s30 + $0x58] sm:$0xf]  ;;  %v2525_v35 = vrot.slane %v2384_v27, 6  ;;  %v2481_v31 = vsel %vm5594_vm15, %v2479_v17, %v2480_v57  ;;  %v2714_v57 = vld [vmem:[%s4846_s30 + $0xa0] sm:$0x7]  ;;  %s175_s7 = sand.u32 1, %s4738_s13  }
 0x221   : > { %v2588_v37 = vpop.permute.xlu1 %2587  ;;  %v2901_v61 = vshll.u32 %v2696_v24, 16  ;;  %s6806_s15 = scalar_lea.sflag [#allocation4], %s175_s7 }
 0x222   : > { %2669 = vst.msk [vmem:[#allocation2 + $0x6c] sm:$0xf] %vm2641_vm9, %v2588_v37  ;;  %v2586_v28 = vpop.permute.xlu0 %2585  ;;  %v2526_v59 = vsel %vm5594_vm15, %v2524_v21, %v2525_v35 }
 0x223   : > { %2668 = vst.msk [vmem:[#allocation2 + $0x68] sm:$0xf] %vm2641_vm9, %v2586_v28  ;;  %2239 = vrot.lane.b32.xlu1 %v2150_v51, %s4760_s8  ;;  %v2475_v51 = vsel %vm5594_vm15, %v2473_v32, %v2474_v2  ;;  %v3048_v28 = vshrl.u32 %v2711_v9, 16  ;;  %v2527_v32 = vrot.slane %v2525_v35, 4  ;;  %v2886_v35 = vrot.slane %v6363_v1, 4 }
 0x224   : > { %2237 = vrot.lane.b32.xlu0 %v2147_v11, %s4760_s8  ;;  %v2898_v11 = vshrl.u32 %v2696_v24, 16 }
 0x225   : > { %v3105_v52 = vpop.permute.xlu1 %3104  ;;  %v3050_v2 = vrot.slane %v3048_v28, 6 }
 0x226   : > { %3204 = vst.msk [vmem:[#allocation2 + $0x24] sm:$0xf] %vm3194_vm10, %v3105_v52  ;;  %v3103_v13 = vpop.permute.xlu0 %3102  ;;  %v2900_v22 = vrot.slane %v2898_v11, 6  ;;  %v3081_v11 = vshll.u32 %v2714_v57, 16 }
 0x227   : > { %3203 = vst.msk [vmem:[#allocation2 + $0x20] sm:$0xf] %vm3194_vm10, %v3103_v13  ;;  %2271 = vrot.lane.b32.xlu1 %v2198_v56, %s4760_s8  ;;  %v2528_v56 = vrot.slane %v2385_v39, 6  ;;  %v2894_v13 = vor.u32 %v2893_v60, %v2890_v15  ;;  %v2914_v60 = vor.u32 %v2913_v53, %v2910_v58 }
 0x228   : > { %2269 = vrot.lane.b32.xlu0 %v2195_v16, %s4760_s8  ;;  %v2523_v16 = vsel %vm5594_vm15, %v2521_v6, %v2522_v54  ;;  %v2713_v54 = vld [vmem:[%s4846_s30 + $0x9c] sm:$0xf] }
 0x229   : > { %v3137_v26 = vpop.permute.xlu1 %3136  ;;  %v2530_v20 = vrot.slane %v2528_v56, 4  ;;  %v3068_v24 = vshrl.u32 %v2713_v54, 16  ;;  %v3071_v9 = vshll.u32 %v2713_v54, 16  ;;  %v2529_v21 = vsel %vm5594_vm15, %v2527_v32, %v2528_v56 }
 0x22a   : > { %3220 = vst.msk [vmem:[#allocation2 + $0x64] sm:$0xf] %vm3194_vm10, %v3137_v26  ;;  %v3135_v10 = vpop.permute.xlu0 %3134  ;;  %v3053_v26 = vrot.slane %v3051_v38, 7  ;;  %v2895_v28 = vsel %vm5656_vm3, %v2886_v35, %v2894_v13  ;;  %v3046_v38 = vrot.slane %v6381_v29, 4  ;;  %v2916_v56 = vrot.slane %v2914_v60, 4 }
 0x22b   : > { %3219 = vst.msk [vmem:[#allocation2 + $0x60] sm:$0xf] %vm3194_vm10, %v3135_v10  ;;  %2243 = vrot.lane.b32.xlu1 %v2156_v25, %s4760_s8  ;;  %v2903_v25 = vrot.slane %v2901_v61, 7  ;;  %v2484_v10 = vsel %vm5594_vm15, %v2482_v43, %v2483_v55  ;;  %v3063_v55 = vrot.slane %v3061_v49, 7  ;;  %v3070_v18 = vrot.slane %v3068_v24, 6 }
 0x22c   : > { %2241 = vrot.lane.b32.xlu0 %v2153_v4, %s4760_s8  ;;  %v3058_v4 = vshrl.u32 %v2712_v47, 16  ;;  %v3054_v5 = vor.u32 %v3053_v26, %v3050_v2  ;;  %v3073_v1 = vrot.slane %v3071_v9, 7  ;;  %v3083_v29 = vrot.slane %v3081_v11, 7  ;;  %v3266_v9 = vld [vmem:[%s4846_s30 + $0x9c] sm:$0xf] }
 0x22d   : > { %v3109_v50 = vpop.permute.xlu1 %3108  ;;  %v6565_v27 = vor.u32 %v2903_v25, %v2900_v22  ;;  %v2925_v25 = vsel %vm5656_vm3, %v2916_v56, %v5836_v63  ;;  %v3405_v24 = vrot.slane %v3403_v42, 4 }
 0x22e   : > { %3206 = vst.msk [vmem:[#allocation2 + $0x2c] sm:$0xf] %vm3194_vm10, %v3109_v50  ;;  %v3107_v34 = vpop.permute.xlu0 %3106  ;;  %v3060_v46 = vrot.slane %v3058_v4, 6  ;;  %v3056_v39 = vrot.slane %v3054_v5, 4  ;;  %v3074_v36 = vor.u32 %v3073_v1, %v3070_v18  ;;  %v3055_v17 = vsel %vm5656_vm3, %v3046_v38, %v3054_v5  ;;  %v3265_v5 = vld [vmem:[%s4846_s30 + $0x98] sm:$0xf] }
 0x22f   : > { %3205 = vst.msk [vmem:[#allocation2 + $0x28] sm:$0xf] %vm3194_vm10, %v3107_v34  ;;  %2275 = vrot.lane.b32.xlu1 %v2204_v62, %s4760_s8  ;;  %v2531_v62 = vrot.slane %v2386_v33, 6  ;;  %v2906_v33 = vrot.slane %v6565_v27, 4  ;;  %v3409_v53 = vrot.slane %v3265_v5, 7 }
 0x230   : > { %2273 = vrot.lane.b32.xlu0 %v2201_v44, %s4760_s8  ;;  %v2896_v44 = vrot.slane %v2894_v13, 4  ;;  %v3064_v15 = vor.u32 %v3063_v55, %v3060_v46  ;;  %v3248_v13 = vld [vmem:[%s4846_s30 + $0x54] sm:$0xf]  ;;  %v3076_v2 = vrot.slane %v3074_v36, 4  ;;  %v3250_v46 = vld [vmem:[%s4846_s30 + $0x5c] sm:$0xf] }
 0x231   : > { %v3141_v30 = vpop.permute.xlu1 %3140  ;;  %v2532_v34 = vsel %vm5594_vm15, %v2530_v20, %v2531_v62  ;;  %v3358_v49 = vrot.slane %v3248_v13, 7  ;;  %v2915_v40 = vsel %vm5656_vm3, %v2906_v33, %v2914_v60  ;;  %v3264_v20 = vld [vmem:[%s4846_s30 + $0x94] sm:$0xf]  ;;  %s4588_s8 = smul.u32 144, %s175_s7 }
 0x232   : > { %3222 = vst.msk [vmem:[#allocation2 + $0x6c] sm:$0xf] %vm3194_vm10, %v3141_v30  ;;  %v3139_v37 = vpop.permute.xlu0 %3138  ;;  %v2905_v6 = vsel %vm5656_vm3, %v2896_v44, %v6565_v27  ;;  %v3065_v47 = vsel %vm5656_vm3, %v3056_v39, %v3064_v15  ;;  %v3066_v4 = vrot.slane %v3064_v15, 4  ;;  %v3406_v54 = vrot.slane %v3264_v20, 7 }
 0x233   : > { %3221 = vst.msk [vmem:[#allocation2 + $0x68] sm:$0xf] %vm3194_vm10, %v3139_v37  ;;  %2567 = vrot.lane.b32.xlu1 %v2478_v45, %s4761_s11  ;;  %v3078_v37 = vshrl.u32 %v2714_v57, 16  ;;  %v3357_v27 = vrot.slane %v3355_v3, 4  ;;  %v3412_v57 = vrot.slane %v3266_v9, 7  ;;  %s6705_s9 = scalar_lea.vmem [#allocation3], %s4588_s8 }
 0x234   : > { %2565 = vrot.lane.b32.xlu0 %v2475_v51, %s4761_s11  ;;  %v3075_v44 = vsel %vm5656_vm3, %v3066_v4, %v3074_v36  ;;  %v3408_v19 = vrot.slane %v3406_v54, 4  ;;  %v3407_v12 = vsel %vm5689_vm6, %v3405_v24, %v3406_v54 }
 0x235   : > { %v3436_v52 = vpop.permute.xlu1 %3435  ;;  %v3359_v3 = vsel %vm5689_vm6, %v3357_v27, %v3358_v49  ;;  %v3414_v15 = vrot.slane %v3412_v57, 4 }
 0x236   : > { %3535 = vst.msk [vmem:[#allocation2 + $0x24] sm:$0xf] %vm3525_vm12, %v3436_v52  ;;  %v3434_v0 = vpop.permute.xlu0 %3433  ;;  %v3080_v52 = vrot.slane %v3078_v37, 6  ;;  %v3411_v37 = vrot.slane %v3409_v53, 4 }
 0x237   : > { %3534 = vst.msk [vmem:[#allocation2 + $0x20] sm:$0xf] %vm3525_vm12, %v3434_v0  ;;  %2599 = vrot.lane.b32.xlu1 %v2526_v59, %s4761_s11 }
 0x238   : > { %2597 = vrot.lane.b32.xlu0 %v2523_v16, %s4761_s11  ;;  %v3084_v26 = vor.u32 %v3083_v29, %v3080_v52 }
 0x239   : > { %v3468_v8 = vpop.permute.xlu1 %3467 }
 0x23a   : > { %3551 = vst.msk [vmem:[#allocation2 + $0x64] sm:$0xf] %vm3525_vm12, %v3468_v8  ;;  %v3466_v50 = vpop.permute.xlu0 %3465  ;;  %v3085_v8 = vsel %vm5656_vm3, %v3076_v2, %v3084_v26 }
 0x23b   : > { %3550 = vst.msk [vmem:[#allocation2 + $0x60] sm:$0xf] %vm3525_vm12, %v3466_v50  ;;  %2571 = vrot.lane.b32.xlu1 %v2484_v10, %s4761_s11  ;;  %v3249_v10 = vld [vmem:[%s4846_s30 + $0x58] sm:$0xf] }
 0x23c   : > { %2569 = vrot.lane.b32.xlu0 %v2481_v31, %s4761_s11  ;;  %v3360_v31 = vrot.slane %v3358_v49, 4  ;;  %v3361_v32 = vrot.slane %v3249_v10, 7  ;;  %v6688_v10 = vld [vmem:[%s6855_s2] ss:$0 sm:$0xff] }
 0x23d   : > { %v3440_v45 = vpop.permute.xlu1 %3439 }
 0x23e   : > { %3537 = vst.msk [vmem:[#allocation2 + $0x2c] sm:$0xf] %vm3525_vm12, %v3440_v45  ;;  %v3438_v30 = vpop.permute.xlu0 %3437  ;;  %v4666_v51 = vld [vmem:[#allocation2 + $0x20] sm:$0xff]   ;;  %v3362_v58 = vsel %vm5689_vm6, %v3360_v31, %v3361_v32  ;;  %v3363_v42 = vrot.slane %v3361_v32, 4 }
 0x23f   : > { %3536 = vst.msk [vmem:[#allocation2 + $0x28] sm:$0xf] %vm3525_vm12, %v3438_v30  ;;  %2603 = vrot.lane.b32.xlu1 %v2532_v34, %s4761_s11  ;;  %4548 = vmatprep.mubr.msk.bf16.mxu0 %vm3731_vm13, %v4666_v51  ;;  %v3364_v34 = vrot.slane %v3250_v46, 7  ;;  %v3267_v51 = vld [vmem:[%s4846_s30 + $0xa0] sm:$0x7] }
 0x240   : > { %2601 = vrot.lane.b32.xlu0 %v2529_v21, %s4761_s11  ;;  %v3410_v21 = vsel %vm5689_vm6, %v3408_v19, %v3409_v53  ;;  %v3415_v60 = vrot.slane %v3267_v51, 7  ;;  %s4199_s11 = sshll.u32 %s6705_s9, 4  ;;  %s6801_s11 = int_to_ptr.vmem [resolvable:$true] %s4199_s11 }
 0x241   : > { %v3472_v61 = vpop.permute.xlu1 %3471  ;;  %v3366_v35 = vrot.slane %v3364_v34, 4  ;;  %v3365_v1 = vsel %vm5689_vm6, %v3363_v42, %v3364_v34  ;;  %s4678_s23 = scalar_lea.vmem %s6801_s11, 2304 }
 0x242   : > { %3553 = vst.msk [vmem:[#allocation2 + $0x6c] sm:$0xf] %vm3525_vm12, %v3472_v61  ;;  %v3470_v59 = vpop.permute.xlu0 %3469  ;;  %v4667_v43 = vld [vmem:[#allocation2 + $0x60] sm:$0xff]   ;;  %v3416_v14 = vsel %vm5689_vm6, %v3414_v15, %v3415_v60  ;;  %v3413_v61 = vsel %vm5689_vm6, %v3411_v37, %v3412_v57  ;;  %p4679_p12 = scmp.ne.s32.totalorder %s6801_s11, %s4678_s23 }
 0x243   : > { %3552 = vst.msk [vmem:[#allocation2 + $0x68] sm:$0xf] %vm3525_vm12, %v3470_v59  ;;  %3120 = vrot.lane.b32.xlu1 %v2905_v6, %s4762_s26  ;;  %4564 = vmatprep.mubr.msk.bf16.mxu1 %vm3731_vm13, %v4667_v43  ;;  %v3368_v39 = vsel %vm5689_vm6, %v3366_v35, %v3367_v23 }
 0x244   : > { %3118 = vrot.lane.b32.xlu0 %v2895_v28, %s4762_s26  ;;  %p4680_p13 = pnand %p4679_p12, %p4826_p4 }
 0x245   : > { %v1933_v16 = vpop.permute.xlu1 %1932 }
 0x246   : > { %2012 = vst.msk [vmem:[#allocation2 + $0x74] sm:$0xf] %vm1982_vm7, %v1933_v16  ;;  %v1931_v0 = vpop.permute.xlu0 %1930  ;;  %v4668_v22 = vld [vmem:[#allocation2 + $0x28] sm:$0xff]   ;;  %p4681_p0 = pneg %p4680_p13 }
 0x247   : > { %2011 = vst.msk [vmem:[#allocation2 + $0x70] sm:$0xf] %vm1982_vm7, %v1931_v0  ;;  %3152 = vrot.lane.b32.xlu1 %v3065_v47, %s4762_s26  ;;  %4549 = vmatmul.mubr.msk.bf16.gmra.mxu0 %vm3731_vm13, %v4668_v22 }
 0x248   : > { %3150 = vrot.lane.b32.xlu0 %v3055_v17, %s4762_s26 }
 0x249   : > { %v1937_v7 = vpop.permute.xlu1 %1936 }
 0x24a   : > { %2014 = vst.msk [vmem:[#allocation2 + $0x7c] sm:$0xf] %vm1982_vm7, %v1937_v7  ;;  %v1935_v62 = vpop.permute.xlu0 %1934  ;;  %v4669_v63 = vld [vmem:[#allocation2 + $0x68] sm:$0xff]  }
 0x24b   : > { %2013 = vst.msk [vmem:[#allocation2 + $0x78] sm:$0xf] %vm1982_vm7, %v1935_v62  ;;  %3124 = vrot.lane.b32.xlu1 %v2925_v25, %s4762_s26  ;;  %4565 = vmatmul.mubr.msk.bf16.gmra.mxu1 %vm3731_vm13, %v4669_v63 }
 0x24c   : > { %3122 = vrot.lane.b32.xlu0 %v2915_v40, %s4762_s26 }
 0x24d   : > { %v2232_v50 = vpop.permute.xlu1 %2231 }
 0x24e   : > { %2327 = vst.msk [vmem:[#allocation2 + $0x34] sm:$0xf] %vm2313_vm8, %v2232_v50  ;;  %v2230_v55 = vpop.permute.xlu0 %2229 }
 0x24f   : > { %2326 = vst.msk [vmem:[#allocation2 + $0x30] sm:$0xf] %vm2313_vm8, %v2230_v55  ;;  %3156 = vrot.lane.b32.xlu1 %v3085_v8, %s4762_s26 }
 0x250   : > { %3154 = vrot.lane.b32.xlu0 %v3075_v44, %s4762_s26  ;;  %s4764_s26 = smov [#allocation3]  }
 0x251   : > { %v2264_v41 = vpop.permute.xlu1 %2263  ;;  %s4682_s27 = sshll.u32 %s4764_s26, 4  ;;  %s4683_s27 = int_to_ptr.vmem [resolvable:$false] %s4682_s27 }
 0x252   : > { %2343 = vst.msk [vmem:[#allocation2 + $0x74] sm:$0xf] %vm2313_vm8, %v2264_v41  ;;  %v2262_v45 = vpop.permute.xlu0 %2261  ;;  %s4684_s28 = scalar_lea.vmem %s4683_s27, 4608  ;;  %p4685_p1 = scmp.lt.s32.totalorder %s6801_s11, %s4683_s27 }
 0x253   : > { %2342 = vst.msk [vmem:[#allocation2 + $0x70] sm:$0xf] %vm2313_vm8, %v2262_v45  ;;  %3451 = vrot.lane.b32.xlu1 %v3362_v58, %s4763_s5  ;;  %p4686_p2 = scmp.lt.s32.totalorder %s4684_s28, %s4678_s23 }
 0x254   : > { %3449 = vrot.lane.b32.xlu0 %v3359_v3, %s4763_s5 }
 0x255   : > { %v2236_v30 = vpop.permute.xlu1 %2235  ;;  %p4687_p3 = por %p4686_p2, %p4685_p1 }
 0x256   : > { %2329 = vst.msk [vmem:[#allocation2 + $0x3c] sm:$0xf] %vm2313_vm8, %v2236_v30  ;;  %v2234_v6 = vpop.permute.xlu0 %2233 }
 0x257   : > { %2328 = vst.msk [vmem:[#allocation2 + $0x38] sm:$0xf] %vm2313_vm8, %v2234_v6  ;;  %3483 = vrot.lane.b32.xlu1 %v3410_v21, %s4763_s5  ;;  %p4688_p5 = pnand %p4687_p3, %p4681_p0 }
 0x258   : > { %3481 = vrot.lane.b32.xlu0 %v3407_v12, %s4763_s5 }
 0x259   : > { %v2268_v18 = vpop.permute.xlu1 %2267 }
 0x25a   : > { %2345 = vst.msk [vmem:[#allocation2 + $0x7c] sm:$0xf] %vm2313_vm8, %v2268_v18  ;;  %v2266_v11 = vpop.permute.xlu0 %2265 }
 0x25b   : > { %2344 = vst.msk [vmem:[#allocation2 + $0x78] sm:$0xf] %vm2313_vm8, %v2266_v11  ;;  %3455 = vrot.lane.b32.xlu1 %v3368_v39, %s4763_s5 }
 0x25c   : > { %3453 = vrot.lane.b32.xlu0 %v3365_v1, %s4763_s5 }
 0x25d   : > { %v2560_v23 = vpop.permute.xlu1 %2559 }
 0x25e   : > { %2655 = vst.msk [vmem:[#allocation2 + $0x34] sm:$0xf] %vm2641_vm9, %v2560_v23  ;;  %v2558_v28 = vpop.permute.xlu0 %2557 }
 0x25f   : > { %2654 = vst.msk [vmem:[#allocation2 + $0x30] sm:$0xf] %vm2641_vm9, %v2558_v28  ;;  %3487 = vrot.lane.b32.xlu1 %v3416_v14, %s4763_s5 }
 0x260   : > { %3485 = vrot.lane.b32.xlu0 %v3413_v61, %s4763_s5 }
 0x261   : > { %v2592_v38 = vpop.permute.xlu1 %2591 }
 0x262   : > { %2671 = vst.msk [vmem:[#allocation2 + $0x74] sm:$0xf] %vm2641_vm9, %v2592_v38  ;;  %v2590_v59 = vpop.permute.xlu0 %2589 }
 0x263   : > { %2670 = vst.msk [vmem:[#allocation2 + $0x70] sm:$0xf] %vm2641_vm9, %v2590_v59 }
 0x265   : > { %v2564_v43 = vpop.permute.xlu1 %2563 }
 0x266   : > { %2657 = vst.msk [vmem:[#allocation2 + $0x3c] sm:$0xf] %vm2641_vm9, %v2564_v43  ;;  %v2562_v48 = vpop.permute.xlu0 %2561 }
 0x267   : > { %2656 = vst.msk [vmem:[#allocation2 + $0x38] sm:$0xf] %vm2641_vm9, %v2562_v48 }
 0x269   : > { %v2596_v56 = vpop.permute.xlu1 %2595 }
 0x26a   : > { %2673 = vst.msk [vmem:[#allocation2 + $0x7c] sm:$0xf] %vm2641_vm9, %v2596_v56  ;;  %v2594_v47 = vpop.permute.xlu0 %2593 }
 0x26b   : > { %2672 = vst.msk [vmem:[#allocation2 + $0x78] sm:$0xf] %vm2641_vm9, %v2594_v47 }
 0x26d   : > { %v3113_v36 = vpop.permute.xlu1 %3112 }
 0x26e   : > { %3208 = vst.msk [vmem:[#allocation2 + $0x34] sm:$0xf] %vm3194_vm10, %v3113_v36  ;;  %v3111_v52 = vpop.permute.xlu0 %3110 }
 0x26f   : > { %3207 = vst.msk [vmem:[#allocation2 + $0x30] sm:$0xf] %vm3194_vm10, %v3111_v52 }
 0x271   : > { %v3145_v29 = vpop.permute.xlu1 %3144 }
 0x272   : > { %3224 = vst.msk [vmem:[#allocation2 + $0x74] sm:$0xf] %vm3194_vm10, %v3145_v29  ;;  %v3143_v16 = vpop.permute.xlu0 %3142 }
 0x273   : > { %3223 = vst.msk [vmem:[#allocation2 + $0x70] sm:$0xf] %vm3194_vm10, %v3143_v16 }
 0x275   : > { %v3117_v17 = vpop.permute.xlu1 %3116 }
 0x276   : > { %3210 = vst.msk [vmem:[#allocation2 + $0x3c] sm:$0xf] %vm3194_vm10, %v3117_v17  ;;  %v3115_v33 = vpop.permute.xlu0 %3114 }
 0x277   : > { %3209 = vst.msk [vmem:[#allocation2 + $0x38] sm:$0xf] %vm3194_vm10, %v3115_v33 }
 0x279   : > { %v3149_v13 = vpop.permute.xlu1 %3148 }
 0x27a   : > { %3226 = vst.msk [vmem:[#allocation2 + $0x7c] sm:$0xf] %vm3194_vm10, %v3149_v13  ;;  %v3147_v0 = vpop.permute.xlu0 %3146 }
 0x27b   : > { %3225 = vst.msk [vmem:[#allocation2 + $0x78] sm:$0xf] %vm3194_vm10, %v3147_v0 }
 0x27d   : > { %v3444_v22 = vpop.permute.xlu1 %3443 }
 0x27e   : > { %3539 = vst.msk [vmem:[#allocation2 + $0x34] sm:$0xf] %vm3525_vm12, %v3444_v22  ;;  %v3442_v25 = vpop.permute.xlu0 %3441 }
 0x27f   : > { %3538 = vst.msk [vmem:[#allocation2 + $0x30] sm:$0xf] %vm3525_vm12, %v3442_v25 }
 0x281   : > { %v3476_v2 = vpop.permute.xlu1 %3475 }
 0x282   : > { %3555 = vst.msk [vmem:[#allocation2 + $0x74] sm:$0xf] %vm3525_vm12, %v3476_v2  ;;  %v3474_v26 = vpop.permute.xlu0 %3473 }
 0x283   : > { %3554 = vst.msk [vmem:[#allocation2 + $0x70] sm:$0xf] %vm3525_vm12, %v3474_v26 }
 0x285   : > { %v3448_v4 = vpop.permute.xlu1 %3447 }
 0x286   : > { %3541 = vst.msk [vmem:[#allocation2 + $0x3c] sm:$0xf] %vm3525_vm12, %v3448_v4  ;;  %v3446_v49 = vpop.permute.xlu0 %3445  ;;  %v4670_v7 = vld [vmem:[#allocation2 + $0x30] sm:$0xff]  }
 0x287   : > { %3540 = vst.msk [vmem:[#allocation2 + $0x38] sm:$0xf] %vm3525_vm12, %v3446_v49  ;;  %v4542_v40 = vpop.f32.mrf.mxu0  ;;  %4552 = vmatprep.mubr.msk.bf16.mxu0 %vm3731_vm13, %v4670_v7 }
 0x288   : > { %v3833_v31 = vadd.f32 %v4542_v40, %v6688_v10 }
 0x289   : > { %v3480_v20 = vpop.permute.xlu1 %3479  ;;  %v3824_v63 = vpop.f32.mrf.mxu0 }
 0x28a   : > { %3557 = vst.msk [vmem:[#allocation2 + $0x7c] sm:$0xf] %vm3525_vm12, %v3480_v20  ;;  %v3478_v62 = vpop.permute.xlu0 %3477  ;;  %v4671_v8 = vld [vmem:[#allocation2 + $0x70] sm:$0xff]   ;;  %v3825_v54 = vadd.f32 %v6688_v10, %v3824_v63  ;;  %v3969_v55 = vmax.f32 %v3833_v31, 0.0 }
 0x28b   : > { %3556 = vst.msk [vmem:[#allocation2 + $0x78] sm:$0xf] %vm3525_vm12, %v3478_v62  ;;  %v4543_v32 = vpop.f32.mrf.mxu0  ;;  %4568 = vmatprep.mubr.msk.bf16.mxu1 %vm3731_vm13, %v4671_v8 }
 0x28c   : > { %v3836_v50 = vadd.f32 %v4543_v32, %v6688_v10  ;;  %v3967_v53 = vmax.f32 %v3825_v54, 0.0 }
 0x28d   : > { %v1941_v44 = vpop.permute.xlu1 %1940  ;;  %v3827_v5 = vpop.f32.mrf.mxu0 }
 0x28e   : > { %2016 = vst.msk [vmem:[#allocation2 + $0x84] sm:$0xf] %vm1982_vm7, %v1941_v44  ;;  %v1939_v27 = vpop.permute.xlu0 %1938  ;;  %v4672_v46 = vld [vmem:[#allocation2 + $0x38] sm:$0xff]   ;;  %v3970_v58 = vmax.f32 %v3836_v50, 0.0  ;;  %v3828_v19 = vadd.f32 %v6688_v10, %v3827_v5 }
 0x28f   : > { %2015 = vst.msk [vmem:[#allocation2 + $0x80] sm:$0xf] %vm1982_vm7, %v1939_v27  ;;  %4553 = vmatmul.mubr.msk.bf16.gmra.mxu0 %vm3731_vm13, %v4672_v46 }
 0x290   : > { %v4408_v34 = vpack.c.bf16 %v3970_v58, %v3969_v55  ;;  %v3968_v41 = vmax.f32 %v3828_v19, 0.0 }
 0x291   : > { %v1945_v3 = vpop.permute.xlu1 %1944 }
 0x292   : > { %2018 = vst.msk [vmem:[#allocation2 + $0x8c] sm:$0xf] %vm1982_vm7, %v1945_v3  ;;  %v1943_v24 = vpop.permute.xlu0 %1942  ;;  %v4673_v9 = vld [vmem:[#allocation2 + $0x78] sm:$0xff]   ;;  %4490 = vst [vmem:[%s6705_s9 + $0x8] sm:$0xff] %v4408_v34   ;;  %v4403_v45 = vpack.c.bf16 %v3968_v41, %v3967_v53 }
 0x293   : > { %2017 = vst.msk [vmem:[#allocation2 + $0x88] sm:$0xf] %vm1982_vm7, %v1943_v24  ;;  %4569 = vmatmul.mubr.msk.bf16.gmra.mxu1 %vm3731_vm13, %v4673_v9 }
 0x294   : > { %4404 = vst [vmem:[%s6705_s9] sm:$0xff] %v4403_v45  }
 0x295   : > { %v2240_v21 = vpop.permute.xlu1 %2239 }
 0x296   : > { %2331 = vst.msk [vmem:[#allocation2 + $0x44] sm:$0xf] %vm2313_vm8, %v2240_v21  ;;  %v2238_v35 = vpop.permute.xlu0 %2237 }
 0x297   : > { %2330 = vst.msk [vmem:[#allocation2 + $0x40] sm:$0xf] %vm2313_vm8, %v2238_v35 }
 0x299   : > { %v2272_v57 = vpop.permute.xlu1 %2271 }
 0x29a   : > { %2347 = vst.msk [vmem:[#allocation2 + $0x84] sm:$0xf] %vm2313_vm8, %v2272_v57  ;;  %v2270_v30 = vpop.permute.xlu0 %2269 }
 0x29b   : > { %2346 = vst.msk [vmem:[#allocation2 + $0x80] sm:$0xf] %vm2313_vm8, %v2270_v30 }
 0x29d   : > { %v2244_v12 = vpop.permute.xlu1 %2243 }
 0x29e   : > { %2333 = vst.msk [vmem:[#allocation2 + $0x4c] sm:$0xf] %vm2313_vm8, %v2244_v12  ;;  %v2242_v42 = vpop.permute.xlu0 %2241 }
 0x29f   : > { %2332 = vst.msk [vmem:[#allocation2 + $0x48] sm:$0xf] %vm2313_vm8, %v2242_v42 }
 0x2a1   : > { %v2276_v51 = vpop.permute.xlu1 %2275 }
 0x2a2   : > { %2349 = vst.msk [vmem:[#allocation2 + $0x8c] sm:$0xf] %vm2313_vm8, %v2276_v51  ;;  %v2274_v6 = vpop.permute.xlu0 %2273 }
 0x2a3   : > { %2348 = vst.msk [vmem:[#allocation2 + $0x88] sm:$0xf] %vm2313_vm8, %v2274_v6 }
 0x2a5   : > { %v2568_v39 = vpop.permute.xlu1 %2567 }
 0x2a6   : > { %2659 = vst.msk [vmem:[#allocation2 + $0x44] sm:$0xf] %vm2641_vm9, %v2568_v39  ;;  %v2566_v15 = vpop.permute.xlu0 %2565 }
 0x2a7   : > { %2658 = vst.msk [vmem:[#allocation2 + $0x40] sm:$0xf] %vm2641_vm9, %v2566_v15 }
 0x2a9   : > { %v2600_v60 = vpop.permute.xlu1 %2599 }
 0x2aa   : > { %2675 = vst.msk [vmem:[#allocation2 + $0x84] sm:$0xf] %vm2641_vm9, %v2600_v60  ;;  %v2598_v18 = vpop.permute.xlu0 %2597 }
 0x2ab   : > { %2674 = vst.msk [vmem:[#allocation2 + $0x80] sm:$0xf] %vm2641_vm9, %v2598_v18 }
 0x2ad   : > { %v2572_v1 = vpop.permute.xlu1 %2571 }
 0x2ae   : > { %2661 = vst.msk [vmem:[#allocation2 + $0x4c] sm:$0xf] %vm2641_vm9, %v2572_v1  ;;  %v2570_v37 = vpop.permute.xlu0 %2569 }
 0x2af   : > { %2660 = vst.msk [vmem:[#allocation2 + $0x48] sm:$0xf] %vm2641_vm9, %v2570_v37 }
 0x2b1   : > { %v2604_v11 = vpop.permute.xlu1 %2603 }
 0x2b2   : > { %2677 = vst.msk [vmem:[#allocation2 + $0x8c] sm:$0xf] %vm2641_vm9, %v2604_v11  ;;  %v2602_v14 = vpop.permute.xlu0 %2601 }
 0x2b3   : > { %2676 = vst.msk [vmem:[#allocation2 + $0x88] sm:$0xf] %vm2641_vm9, %v2602_v14 }
 0x2b5   : > { %v3121_v23 = vpop.permute.xlu1 %3120 }
 0x2b6   : > { %3212 = vst.msk [vmem:[#allocation2 + $0x44] sm:$0xf] %vm3194_vm10, %v3121_v23  ;;  %v3119_v61 = vpop.permute.xlu0 %3118 }
 0x2b7   : > { %3211 = vst.msk [vmem:[#allocation2 + $0x40] sm:$0xf] %vm3194_vm10, %v3119_v61 }
 0x2b9   : > { %v3153_v28 = vpop.permute.xlu1 %3152 }
 0x2ba   : > { %3228 = vst.msk [vmem:[#allocation2 + $0x84] sm:$0xf] %vm3194_vm10, %v3153_v28  ;;  %v3151_v38 = vpop.permute.xlu0 %3150 }
 0x2bb   : > { %3227 = vst.msk [vmem:[#allocation2 + $0x80] sm:$0xf] %vm3194_vm10, %v3151_v38 }
 0x2bd   : > { %v3125_v59 = vpop.permute.xlu1 %3124 }
 0x2be   : > { %3214 = vst.msk [vmem:[#allocation2 + $0x4c] sm:$0xf] %vm3194_vm10, %v3125_v59  ;;  %v3123_v43 = vpop.permute.xlu0 %3122 }
 0x2bf   : > { %3213 = vst.msk [vmem:[#allocation2 + $0x48] sm:$0xf] %vm3194_vm10, %v3123_v43 }
 0x2c1   : > { %v3157_v48 = vpop.permute.xlu1 %3156 }
 0x2c2   : > { %3230 = vst.msk [vmem:[#allocation2 + $0x8c] sm:$0xf] %vm3194_vm10, %v3157_v48  ;;  %v3155_v56 = vpop.permute.xlu0 %3154 }
 0x2c3   : > { %3229 = vst.msk [vmem:[#allocation2 + $0x88] sm:$0xf] %vm3194_vm10, %v3155_v56  ;;  %v4546_v47 = vpop.f32.mrf.mxu0 }
 0x2c4   : > { %v3849_v16 = vadd.f32 %v4546_v47, %v6688_v10 }
 0x2c5   : > { %v3452_v36 = vpop.permute.xlu1 %3451  ;;  %v3840_v29 = vpop.f32.mrf.mxu0 }
 0x2c6   : > { %3543 = vst.msk [vmem:[#allocation2 + $0x44] sm:$0xf] %vm3525_vm12, %v3452_v36  ;;  %v3450_v52 = vpop.permute.xlu0 %3449  ;;  %v3841_v13 = vadd.f32 %v6688_v10, %v3840_v29  ;;  %v3973_v26 = vmax.f32 %v3849_v16, 0.0 }
 0x2c7   : > { %3542 = vst.msk [vmem:[#allocation2 + $0x40] sm:$0xf] %vm3525_vm12, %v3450_v52  ;;  %v4547_v17 = vpop.f32.mrf.mxu0  ;;  %v4562_v33 = vpop.f32.mrf.mxu1 }
 0x2c8   : > { %v3852_v0 = vadd.f32 %v4547_v17, %v6688_v10  ;;  %v3913_v40 = vadd.f32 %v4562_v33, %v6688_v10  ;;  %v3971_v20 = vmax.f32 %v3841_v13, 0.0 }
 0x2c9   : > { %v3484_v22 = vpop.permute.xlu1 %3483  ;;  %v3843_v2 = vpop.f32.mrf.mxu0 }
 0x2ca   : > { %3559 = vst.msk [vmem:[#allocation2 + $0x84] sm:$0xf] %vm3525_vm12, %v3484_v22  ;;  %v3482_v25 = vpop.permute.xlu0 %3481  ;;  %v3974_v4 = vmax.f32 %v3852_v0, 0.0  ;;  %v3844_v49 = vadd.f32 %v6688_v10, %v3843_v2  ;;  %v3904_v7 = vpop.f32.mrf.mxu1  ;;  %v3989_v46 = vmax.f32 %v3913_v40, 0.0 }
 0x2cb   : > { %3558 = vst.msk [vmem:[#allocation2 + $0x80] sm:$0xf] %vm3525_vm12, %v3482_v25  ;;  %v3905_v32 = vadd.f32 %v6688_v10, %v3904_v7 }
 0x2cc   : > { %v4418_v62 = vpack.c.bf16 %v3974_v4, %v3973_v26  ;;  %v3972_v63 = vmax.f32 %v3844_v49, 0.0  ;;  %v4563_v8 = vpop.f32.mrf.mxu1 }
 0x2cd   : > { %v3456_v31 = vpop.permute.xlu1 %3455  ;;  %v3916_v54 = vadd.f32 %v4563_v8, %v6688_v10  ;;  %v3987_v53 = vmax.f32 %v3905_v32, 0.0 }
 0x2ce   : > { %3545 = vst.msk [vmem:[#allocation2 + $0x4c] sm:$0xf] %vm3525_vm12, %v3456_v31  ;;  %v3454_v50 = vpop.permute.xlu0 %3453  ;;  %v4674_v44 = vld [vmem:[#allocation2 + $0x40] sm:$0xff]   ;;  %4492 = vst [vmem:[%s6705_s9 + $0x18] sm:$0xff] %v4418_v62   ;;  %v4413_v27 = vpack.c.bf16 %v3972_v63, %v3971_v20  ;;  %v3907_v5 = vpop.f32.mrf.mxu1 }
 0x2cf   : > { %3544 = vst.msk [vmem:[#allocation2 + $0x48] sm:$0xf] %vm3525_vm12, %v3454_v50  ;;  %v3990_v55 = vmax.f32 %v3916_v54, 0.0  ;;  %v3908_v58 = vadd.f32 %v6688_v10, %v3907_v5  ;;  %4556 = vmatprep.mubr.msk.bf16.mxu0 %vm3731_vm13, %v4674_v44 }
 0x2d0   : > { %4491 = vst [vmem:[%s6705_s9 + $0x10] sm:$0xff] %v4413_v27  }
 0x2d1   : > { %v3488_v19 = vpop.permute.xlu1 %3487  ;;  %v4458_v34 = vpack.c.bf16 %v3990_v55, %v3989_v46  ;;  %v3988_v41 = vmax.f32 %v3908_v58, 0.0 }
 0x2d2   : > { %3561 = vst.msk [vmem:[#allocation2 + $0x8c] sm:$0xf] %vm3525_vm12, %v3488_v19  ;;  %v3486_v3 = vpop.permute.xlu0 %3485  ;;  %v4675_v24 = vld [vmem:[#allocation2 + $0x80] sm:$0xff]  }
 0x2d3   : > { %3560 = vst.msk [vmem:[#allocation2 + $0x88] sm:$0xf] %vm3525_vm12, %v3486_v3  ;;  %4500 = vst [vmem:[%s6705_s9 + $0x58] sm:$0xff] %v4458_v34   ;;  %v4453_v9 = vpack.c.bf16 %v3988_v41, %v3987_v53  ;;  %4572 = vmatprep.mubr.msk.bf16.mxu1 %vm3731_vm13, %v4675_v24 }
 0x2d5   : > { %4499 = vst [vmem:[%s6705_s9 + $0x50] sm:$0xff] %v4453_v9  }
 0x2d6   : > { %v4676_v45 = vld [vmem:[#allocation2 + $0x48] sm:$0xff]  }
 0x2d7   : > { %4557 = vmatmul.mubr.msk.bf16.gmra.mxu0 %vm3731_vm13, %v4676_v45 }
 0x2da   : > { %v4677_v21 = vld [vmem:[#allocation2 + $0x88] sm:$0xff]  }
 0x2db   : > { %4573 = vmatmul.mubr.msk.bf16.gmra.mxu1 %vm3731_vm13, %v4677_v21 }
 0x307   : > { %v4550_v35 = vpop.f32.mrf.mxu0 }
 0x308   : > { %v3865_v30 = vadd.f32 %v4550_v35, %v6688_v10 }
 0x309   : > { %v3856_v57 = vpop.f32.mrf.mxu0 }
 0x30a   : > { %v3857_v12 = vadd.f32 %v6688_v10, %v3856_v57  ;;  %v3977_v60 = vmax.f32 %v3865_v30, 0.0 }
 0x30b   : > { %v4551_v42 = vpop.f32.mrf.mxu0  ;;  %v4566_v51 = vpop.f32.mrf.mxu1 }
 0x30c   : > { %v3868_v6 = vadd.f32 %v4551_v42, %v6688_v10  ;;  %v3929_v1 = vadd.f32 %v4566_v51, %v6688_v10  ;;  %v3975_v11 = vmax.f32 %v3857_v12, 0.0 }
 0x30d   : > { %v3859_v39 = vpop.f32.mrf.mxu0  ;;  %v3920_v15 = vpop.f32.mrf.mxu1 }
 0x30e   : > { %v3978_v18 = vmax.f32 %v3868_v6, 0.0  ;;  %v3860_v37 = vadd.f32 %v6688_v10, %v3859_v39  ;;  %v3921_v28 = vadd.f32 %v6688_v10, %v3920_v15  ;;  %v3993_v43 = vmax.f32 %v3929_v1, 0.0 }
 0x30f   : > { %v4567_v14 = vpop.f32.mrf.mxu1 }
 0x310   : > { %v4428_v23 = vpack.c.bf16 %v3978_v18, %v3977_v60  ;;  %v3976_v61 = vmax.f32 %v3860_v37, 0.0  ;;  %v3932_v38 = vadd.f32 %v4567_v14, %v6688_v10  ;;  %v3991_v36 = vmax.f32 %v3921_v28, 0.0 }
 0x311   : > { %v3923_v59 = vpop.f32.mrf.mxu1 }
 0x312   : > { %4494 = vst [vmem:[%s6705_s9 + $0x28] sm:$0xff] %v4428_v23   ;;  %v4423_v48 = vpack.c.bf16 %v3976_v61, %v3975_v11  ;;  %v3994_v56 = vmax.f32 %v3932_v38, 0.0  ;;  %v3924_v47 = vadd.f32 %v6688_v10, %v3923_v59 }
 0x314   : > { %4493 = vst [vmem:[%s6705_s9 + $0x20] sm:$0xff] %v4423_v48   ;;  %v4468_v52 = vpack.c.bf16 %v3994_v56, %v3993_v43  ;;  %v3992_v29 = vmax.f32 %v3924_v47, 0.0 }
 0x316   : > { %4502 = vst [vmem:[%s6705_s9 + $0x68] sm:$0xff] %v4468_v52   ;;  %v4463_v16 = vpack.c.bf16 %v3992_v29, %v3991_v36 }
 0x318   : > { %4501 = vst [vmem:[%s6705_s9 + $0x60] sm:$0xff] %v4463_v16  }
 0x34f   : > { %v4554_v17 = vpop.f32.mrf.mxu0 }
 0x350   : > { %v3881_v13 = vadd.f32 %v4554_v17, %v6688_v10 }
 0x351   : > { %v3872_v33 = vpop.f32.mrf.mxu0 }
 0x352   : > { %v3873_v0 = vadd.f32 %v6688_v10, %v3872_v33  ;;  %v3981_v49 = vmax.f32 %v3881_v13, 0.0 }
 0x353   : > { %v4555_v22 = vpop.f32.mrf.mxu0  ;;  %v4570_v25 = vpop.f32.mrf.mxu1 }
 0x354   : > { %v3884_v2 = vadd.f32 %v4555_v22, %v6688_v10  ;;  %v3945_v40 = vadd.f32 %v4570_v25, %v6688_v10  ;;  %v3979_v62 = vmax.f32 %v3873_v0, 0.0 }
 0x355   : > { %v3875_v26 = vpop.f32.mrf.mxu0  ;;  %v3936_v4 = vpop.f32.mrf.mxu1 }
 0x356   : > { %v3982_v7 = vmax.f32 %v3884_v2, 0.0  ;;  %v3876_v20 = vadd.f32 %v6688_v10, %v3875_v26  ;;  %v3937_v32 = vadd.f32 %v6688_v10, %v3936_v4  ;;  %v3997_v44 = vmax.f32 %v3945_v40, 0.0 }
 0x357   : > { %v4571_v63 = vpop.f32.mrf.mxu1 }
 0x358   : > { %v4438_v8 = vpack.c.bf16 %v3982_v7, %v3981_v49  ;;  %v3980_v31 = vmax.f32 %v3876_v20, 0.0  ;;  %v3948_v54 = vadd.f32 %v4571_v63, %v6688_v10  ;;  %v3995_v55 = vmax.f32 %v3937_v32, 0.0 }
 0x359   : > { %v3939_v50 = vpop.f32.mrf.mxu1 }
 0x35a   : > { %4496 = vst [vmem:[%s6705_s9 + $0x38] sm:$0xff] %v4438_v8   ;;  %v4433_v27 = vpack.c.bf16 %v3980_v31, %v3979_v62  ;;  %v3998_v5 = vmax.f32 %v3948_v54, 0.0  ;;  %v3940_v46 = vadd.f32 %v6688_v10, %v3939_v50 }
 0x35c   : > { %4495 = vst [vmem:[%s6705_s9 + $0x30] sm:$0xff] %v4433_v27   ;;  %v4478_v58 = vpack.c.bf16 %v3998_v5, %v3997_v44  ;;  %v3996_v19 = vmax.f32 %v3940_v46, 0.0 }
 0x35e   : > { %4504 = vst [vmem:[%s6705_s9 + $0x78] sm:$0xff] %v4478_v58   ;;  %v4473_v53 = vpack.c.bf16 %v3996_v19, %v3995_v55 }
 0x360   : > { %4503 = vst [vmem:[%s6705_s9 + $0x70] sm:$0xff] %v4473_v53  }
 0x397   : > { %v4558_v34 = vpop.f32.mrf.mxu0 }
 0x398   : > { %v3897_v3 = vadd.f32 %v4558_v34, %v6688_v10 }
 0x399   : > { %v3888_v41 = vpop.f32.mrf.mxu0 }
 0x39a   : > { %v3889_v24 = vadd.f32 %v6688_v10, %v3888_v41  ;;  %v3985_v30 = vmax.f32 %v3897_v3, 0.0 }
 0x39b   : > { %v4559_v9 = vpop.f32.mrf.mxu0  ;;  %v4574_v45 = vpop.f32.mrf.mxu1 }
 0x39c   : > { %v3900_v21 = vadd.f32 %v4559_v9, %v6688_v10  ;;  %v3961_v42 = vadd.f32 %v4574_v45, %v6688_v10  ;;  %v3983_v6 = vmax.f32 %v3889_v24, 0.0 }
 0x39d   : > { %v3891_v35 = vpop.f32.mrf.mxu0  ;;  %v3952_v57 = vpop.f32.mrf.mxu1 }
 0x39e   : > { %v3986_v12 = vmax.f32 %v3900_v21, 0.0  ;;  %v3892_v51 = vadd.f32 %v6688_v10, %v3891_v35  ;;  %v3953_v18 = vadd.f32 %v6688_v10, %v3952_v57  ;;  %v4001_v11 = vmax.f32 %v3961_v42, 0.0 }
 0x39f   : > { %v4575_v39 = vpop.f32.mrf.mxu1 }
 0x3a0   : > { %v4448_v15 = vpack.c.bf16 %v3986_v12, %v3985_v30  ;;  %v3984_v60 = vmax.f32 %v3892_v51, 0.0  ;;  %v3964_v1 = vadd.f32 %v4575_v39, %v6688_v10  ;;  %v3999_v28 = vmax.f32 %v3953_v18, 0.0 }
 0x3a1   : > { %v3955_v37 = vpop.f32.mrf.mxu1 }
 0x3a2   : > { %4498 = vst [vmem:[%s6705_s9 + $0x48] sm:$0xff] %v4448_v15   ;;  %v4443_v14 = vpack.c.bf16 %v3984_v60, %v3983_v6  ;;  %v4002_v23 = vmax.f32 %v3964_v1, 0.0  ;;  %v3956_v61 = vadd.f32 %v6688_v10, %v3955_v37 }
 0x3a4   : > { %4497 = vst [vmem:[%s6705_s9 + $0x40] sm:$0xff] %v4443_v14   ;;  %v4488_v38 = vpack.c.bf16 %v4002_v23, %v4001_v11  ;;  %v4000_v59 = vmax.f32 %v3956_v61, 0.0 }
 0x3a6   : > { %4506 = vst [vmem:[%s6705_s9 + $0x88] sm:$0xff] %v4488_v38   ;;  %v4483_v43 = vpack.c.bf16 %v4000_v59, %v3999_v28 }
 0x3a8   : > { %4505 = vst [vmem:[%s6705_s9 + $0x80] sm:$0xff] %v4483_v43  }
 0x3a9   : > { %4691 = shalt.err (!%p4688_p5)
}
 0x3aa   : > { %s4692_s29 = scalar_lea.hbm %s6799_s21, 2304  ;;  %s4696_s6 = scalar_lea.hbm %s6856_s3, 4608 }
 0x3ab   : > { %p4693_p6 = scmp.ne.s32.totalorder %s6799_s21, %s4692_s29  ;;  %p4697_p10 = scmp.lt.s32.totalorder %s6799_s21, %s6856_s3 }
 0x3ac   : > { %p4698_p11 = scmp.lt.s32.totalorder %s4696_s6, %s4692_s29 }
 0x3ad   : > { %p4694_p7 = pnand %p4693_p6, %p4826_p4 }
 0x3ae   : > { %p4699_p12 = por %p4698_p11, %p4697_p10 }
 0x3af   : > { %p4695_p9 = pneg %p4694_p7 }
 0x3b1   : > { %p4700_p13 = pnand %p4699_p12, %p4695_p9 }
 0x3b3   : > { %4703 = shalt.err (!%p4700_p13)
}
 0x3b4   : > { %s4765_s9 = smov 4  }
 0x3b5   : > { %4591 = dma.vmem_to_hbm [thread:$0]  (%p4826_p4), %s6801_s11, 2304, %s6799_s21, %s6806_s15, %s4763_s5, %s4763_s5, %s4765_s9  }
 0x3b6 PF: > { %p4597_p0 = scmp.ge.s32.totalorder %s4754_s17, 2  ;;  %s4214_s10 = sand.u32 1, %s4734_s12  }
 0x3b7   : > { %s4215_s18 = scalar_lea.sflag [#allocation4], %s4214_s10 }
 0x3b8   : > { %p4594_p1 = pnand %p4597_p0, %p4833_p8 }
 0x3ba   : > { %p4595_p2 = pneg %p4594_p1 }
 0x3bc   : > { %4729 = dma.done.wait (%p4595_p2), %s4215_s18, 2304  }
 0x3bd   : > { %4731 = vsyncadd (%p4595_p2), %s4215_s18, 4294964992  ;;  %s16_s17 = sadd.s32 1, %s4754_s17   ;;  %s6871_s12 = smov %s4738_s13 }
 0x3be   : > { %p13_p3 = scmp.ge.s32.totalorder %s16_s17, 4   ;;  %s6872_s13 = smov %s4742_s14 }
 0x3bf   : > { %s6873_s14 = smov %s4839_s25  ;;  %s6874_s15 = smov %s4750_s16 }
 0x3c0   : > { %s6875_s16 = smov %s6877_s20  ;;  %15 = sbr.rel (!%p13_p3) target bundleno = 4 (0x4), region = 67 }
 0x3c5   :  { %4220 = vsyncpa [#allocation4], 1 }
 0x3c6   :  { %4222 = vsyncpa [#allocation4 + $0x1], 1 }

</bundles_post_ra>
